<compile_context>
chip_gen: v5e
topology: v5e:2x2
jax: 0.10.0
libtpu: 0.0.40
codegen_flags: <defaults>
</compile_context>

<pallas_src>
import functools

import jax
import jax.numpy as jnp
from jax.experimental import pallas as pl
from jax.experimental.pallas import tpu as pltpu


_TARGET_OUT_TILE_BYTES = 4 * 1024 * 1024     # ~4 MiB output tile: HBM-bound sweet spot
_MIN_GRID_STEPS = 8                          # enough steps for pipelining + 2 TCs (v7x)
_VMEM_LIMIT_CAP = 48 * 1024 * 1024           # stay well under v7x's 64 MiB VMEM


def _upsample_rows_kernel(x_ref, o_ref, *, scale, w, group):
    """One row-tile step.

    x_ref: (TM, group*w)                  -- `group` consecutive input rows per kernel row
    o_ref: (TM, group*scale*scale*w)

    Output layout per kernel row (exactly row-major NCHW flat order):
        for p in range(group):            # input row within the group
          for k in range(scale):          # the `scale` output image-rows it expands to
            lane-repeat(x_p, scale)       # width scale*w
    """
    s = scale
    x = x_ref[...]                               # (TM, group*w)
    rw = jnp.repeat(x, s, axis=1)                # (TM, group*s*w) lane-nearest repeat

    if group == 1:
        # Wide-W path: `s` static slice stores of rw (each s*w lanes, >=256
        # when w>=128, unmasked).  No concatenated temporary.
        for k in range(s):
            o_ref[:, k * s * w:(k + 1) * s * w] = rw
    else:
        # Small-W path: assemble ONE lane-dense output row and do a single
        # full-width unmasked store (group*s*s*w lanes, multiple of 128 by
        # construction of `group`).
        pieces = []
        for p in range(group):
            c = rw[:, p * s * w:(p + 1) * s * w]
            pieces.extend([c] * s)
        o_ref[...] = jnp.concatenate(pieces, axis=1)


def _pick_group(rows, w):
    """Input rows per kernel row so loads/stores are lane-dense (>=128 lanes)."""
    if w >= 128 or rows <= 1:
        return 1
    target = -(-128 // w)                        # ceil(128 / w)
    hi = min(rows, 8 * target)
    # Prefer a divisor of `rows` that makes the input row an exact multiple of 128.
    for g in range(target, hi + 1):
        if rows % g == 0 and (g * w) % 128 == 0:
            return g
    for g in range(target, hi + 1):
        if rows % g == 0:
            return g
    return 1


def upsample_nearest(x, scale_factor=2):
    """Nearest-neighbor upsample of an NCHW tensor by an integer scale factor."""
    if int(scale_factor) != scale_factor:
        # TODO(synk): fractional scales need a floor(i/scale) gather; not implemented.
        raise ValueError("upsample_nearest only supports integer scale_factor")
    s = int(scale_factor)
    n, c, h, w = x.shape
    if s == 1:
        return x

    rows = n * c * h
    itemsize = jnp.dtype(x.dtype).itemsize
    pack = max(1, 4 // itemsize) * 8             # sublane pack: f32->8, bf16->16, int8->32

    g = _pick_group(rows, w)
    rows_k = rows // g
    in_w = g * w
    out_w = g * s * s * w

    # Guard: minimal (one-pack-row) double-buffered footprint must fit VMEM.
    min_bytes = 2 * pack * (in_w + out_w) * itemsize
    if min_bytes > _VMEM_LIMIT_CAP:
        # TODO(synk): add a lane-dimension (W) tile for extremely wide rows.
        raise ValueError("row width too large for a single VMEM tile; W tiling not implemented")

    # Row-tile size: ~4 MiB of output per step, but keep >= _MIN_GRID_STEPS grid
    # steps when the problem has that many rows, so the pipeline truly overlaps
    # and the 1-D "parallel" axis can shard across v7x's two TensorCores.
    tm_bytes_cap = max(pack, (_TARGET_OUT_TILE_BYTES // (out_w * itemsize) // pack) * pack)
    steps_cap = rows_k // _MIN_GRID_STEPS
    tm_steps_cap = (steps_cap // pack) * pack if steps_cap >= pack else pack
    tm = min(tm_bytes_cap, tm_steps_cap)
    if rows_k < pack:
        tm = rows_k                              # block equals the full (sub-pack) row dim

    grid = (pl.cdiv(rows_k, tm),)

    x2d = x.reshape(rows_k, in_w)                # free row-major view
    out2d_shape = jax.ShapeDtypeStruct((rows_k, out_w), x.dtype)

    in_bytes = rows_k * in_w * itemsize
    out_bytes = rows_k * out_w * itemsize

    # Double-buffered in+out tiles with 2x safety for in-kernel temporaries;
    # capped well inside v7x's 64 MiB.
    vmem_limit = min(_VMEM_LIMIT_CAP,
                     max(16 * 1024 * 1024, 4 * tm * (in_w + out_w) * itemsize))

    out2d = pl.pallas_call(
        functools.partial(_upsample_rows_kernel, scale=s, w=w, group=g),
        out_shape=out2d_shape,
        grid=grid,
        in_specs=[pl.BlockSpec((tm, in_w), lambda i: (i, 0))],
        out_specs=pl.BlockSpec((tm, out_w), lambda i: (i, 0)),
        compiler_params=pltpu.CompilerParams(
            dimension_semantics=("parallel",),
            vmem_limit_bytes=vmem_limit,
        ),
        cost_estimate=pl.CostEstimate(
            flops=0, transcendentals=0, bytes_accessed=in_bytes + out_bytes
        ),
    )(x2d)

    # Free row-major reshape back to NCHW.
    return out2d.reshape(n, c, s * h, s * w)


if __name__ == "__main__":
    key = jax.random.PRNGKey(0)
    k0, k1 = jax.random.split(key)

    # Spec-sized f32 test (small-W grouped path: W=16 -> 8 input rows / kernel row).
    x = jax.random.normal(k0, (2, 4, 16, 16), dtype=jnp.float32)
    out = jax.block_until_ready(upsample_nearest(x, scale_factor=2))
    ref = jnp.repeat(jnp.repeat(x, 2, axis=2), 2, axis=3)
    assert out.shape == (2, 4, 32, 32), out.shape
    assert out.dtype == x.dtype
    assert jnp.array_equal(out, ref), "f32 mismatch vs. reference nearest upsample"

    # bf16 test (16-row sublane pack).
    xb = x.astype(jnp.bfloat16)
    outb = jax.block_until_ready(upsample_nearest(xb, scale_factor=2))
    refb = jnp.repeat(jnp.repeat(xb, 2, axis=2), 2, axis=3)
    assert outb.shape == (2, 4, 32, 32)
    assert outb.dtype == jnp.bfloat16
    assert jnp.array_equal(outb, refb), "bf16 mismatch vs. reference nearest upsample"

    # Wide-W path (W >= 128): ungrouped, slice stores straight to the output tile.
    xw = jax.random.normal(k1, (1, 2, 8, 128), dtype=jnp.float32)
    outw = jax.block_until_ready(upsample_nearest(xw, scale_factor=2))
    refw = jnp.repeat(jnp.repeat(xw, 2, axis=2), 2, axis=3)
    assert outw.shape == (1, 2, 16, 256)
    assert jnp.array_equal(outw, refw), "wide-W mismatch vs. reference nearest upsample"

    print("KERNEL_OK")
</pallas_src>

<mosaic_0001>
module attributes {stable_mosaic.version = 11 : i64} {
  func.func @_upsample_rows_kernel(%arg0: i32, %arg1: memref<8x128xf32, #tpu.memory_space<vmem>>, %arg2: memref<8x512xf32, #tpu.memory_space<vmem>>) attributes {dimension_semantics = [#tpu.dimension_semantics<parallel>], iteration_bounds = array<i64: 2>, scalar_prefetch = 0 : i64, scratch_operands = 0 : i64, tpu.core_type = #tpu.core_type<tc>, window_params = [{transform_indices = @transform_0, window_bounds = array<i64: 8, 128>}, {transform_indices = @transform_1, window_bounds = array<i64: 8, 512>}]} {
    %c0 = arith.constant 0 : index
    %c0_0 = arith.constant 0 : index
    %0 = vector.load %arg1[%c0, %c0_0] : memref<8x128xf32, #tpu.memory_space<vmem>>, vector<8x128xf32>
    %1 = vector.shape_cast %0 : vector<8x128xf32> to vector<8x128x1xf32>
    %2 = vector.broadcast %1 : vector<8x128x1xf32> to vector<8x128x2xf32>
    %3 = vector.shape_cast %2 : vector<8x128x2xf32> to vector<8x256xf32>
    %4 = vector.extract_strided_slice %3 {offsets = [0, 0], sizes = [8, 32], strides = [1, 1]} : vector<8x256xf32> to vector<8x32xf32>
    %5 = vector.extract_strided_slice %3 {offsets = [0, 32], sizes = [8, 32], strides = [1, 1]} : vector<8x256xf32> to vector<8x32xf32>
    %6 = vector.extract_strided_slice %3 {offsets = [0, 64], sizes = [8, 32], strides = [1, 1]} : vector<8x256xf32> to vector<8x32xf32>
    %7 = vector.extract_strided_slice %3 {offsets = [0, 96], sizes = [8, 32], strides = [1, 1]} : vector<8x256xf32> to vector<8x32xf32>
    %8 = vector.extract_strided_slice %3 {offsets = [0, 128], sizes = [8, 32], strides = [1, 1]} : vector<8x256xf32> to vector<8x32xf32>
    %9 = vector.extract_strided_slice %3 {offsets = [0, 160], sizes = [8, 32], strides = [1, 1]} : vector<8x256xf32> to vector<8x32xf32>
    %10 = vector.extract_strided_slice %3 {offsets = [0, 192], sizes = [8, 32], strides = [1, 1]} : vector<8x256xf32> to vector<8x32xf32>
    %11 = vector.extract_strided_slice %3 {offsets = [0, 224], sizes = [8, 32], strides = [1, 1]} : vector<8x256xf32> to vector<8x32xf32>
    %12 = tpu.concatenate %4, %4, %5, %5, %6, %6, %7, %7, %8, %8, %9, %9, %10, %10, %11, %11 in 1 : vector<8x32xf32>, vector<8x32xf32>, vector<8x32xf32>, vector<8x32xf32>, vector<8x32xf32>, vector<8x32xf32>, vector<8x32xf32>, vector<8x32xf32>, vector<8x32xf32>, vector<8x32xf32>, vector<8x32xf32>, vector<8x32xf32>, vector<8x32xf32>, vector<8x32xf32>, vector<8x32xf32>, vector<8x32xf32> -> vector<8x512xf32>
    %c0_1 = arith.constant 0 : index
    %c0_2 = arith.constant 0 : index
    %13 = vector.load %arg2[%c0_1, %c0_2] : memref<8x512xf32, #tpu.memory_space<vmem>>, vector<8x512xf32>
    tpu.vector_store %arg2[%c0_1, %c0_2], %12 {strides = array<i32>} : memref<8x512xf32, #tpu.memory_space<vmem>>, vector<8x512xf32>,
    return
  }
  func.func @transform_0(%arg0: i32) -> (i32, i32) {
    %c0_i32 = arith.constant 0 : i32
    %c0_i32_0 = arith.constant 0 : i32
    return %arg0, %c0_i32 : i32, i32
  }
  func.func @transform_1(%arg0: i32) -> (i32, i32) {
    %c0_i32 = arith.constant 0 : i32
    %c0_i32_0 = arith.constant 0 : i32
    return %arg0, %c0_i32 : i32, i32
  }
}

</mosaic_0001>

<bundles_post_ra>
// kernel: tpu_custom_call.1
= control target key start
LH: loop header
LB: loop body
LE: loop exit
PB: predicated region body
PF: predicated region fallthrough
CT: control target
= control target key end

     0   :  { %6 = vsyncpa [#allocation3], 0  ;;  %s6043_s0 = inlined_call_operand.hbm [shape: f32[16,128], index: 0, kind: input, shape index: {}]   ;;  %s6044_s1 = inlined_call_operand.hbm [shape: f32[16,512], index: 1, kind: output, shape index: {}]  }
   0x1   :  { %8 = vsyncpa [#allocation3 + $0x1], 0 }
   0x2   :  { %9 = vsyncpa [#allocation4], 0 }
   0x3   :  { %11 = vsyncpa [#allocation4 + $0x1], 0  ;;  %s3937_s6 = smov 0   ;;  %s3939_s7 = smov 0  }
   0x4   :  { %s3941_s8 = smov 0   ;;  %s3943_s9 = smov 0  }
   0x5 LB: > { %s3958_s10 = sadd.s32 4294967295, %s3860_s9   ;;  %s3520_s11 = sadd.s32 4294967294, %s3860_s9   ;;  %s3860_s9 = sphi %s3943_s9, %s6438_s9   ;;  %s3856_s8 = sphi %s3941_s8, %s6437_s8   ;;  %s3852_s7 = sphi %s3939_s7, %s6436_s7   ;;  %s3848_s6 = sphi %s3937_s6, %s6435_s6  }
   0x6   : > { %s3962_s12 = sadd.s32 1, %s3860_s9   ;;  %s24_s13 = sadd.s32 1, %s3856_s8 }
   0x7   : > { %s21_s14 = ssub.s32 %s3860_s9, %s3962_s12  ;;  %p31_p0 = scmp.ne.s32.totalorder %s3856_s8, %s3852_s7 }
   0x8   : > { %p22_p1 = scmp.eq.s32.totalorder %s21_s14, 0  ;;  %p32_p2 = scmp.eq.s32.totalorder %s3860_s9, 0 }
   0x9   : > { %p37_p3 = scmp.ne.s32.totalorder %s3852_s7, %s3848_s6  ;;  %p38_p4 = scmp.eq.s32.totalorder %s3958_s10, 0 }
   0xa   : > { %s3974_s15 = scalar_select %p22_p1, %s3856_s8, %s24_s13  }
   0xb   : > { %p3976_p5 = por %p32_p2, %p31_p0  ;;  %p3980_p6 = por %p38_p4, %p37_p3 }
   0xc   : > { %p61_p7 = scmp.eq.s32.totalorder %s3958_s10, 1  ;;  %p67_p8 = scmp.eq.s32.totalorder %s3520_s11, 1 }
   0xd   : > { %p3546_p10 = scmp.lt.s32.totalorder %s3860_s9, 2  ;;  %s87_s20 = sand.u32 1, %s3856_s8  }
   0xe   : > { %p3987_p11 = por %p61_p7, %p31_p0  ;;  %p3991_p12 = por %p67_p8, %p37_p3 }
   0xf   : > { %s3524_s21 = sshll.u32 %s3860_s9, 3  ;;  %s3523_s22 = sshll.u32 %s87_s20, 3 }
  0x10   : > { %s95_s25 = scalar_lea.hbm %s6043_s0, %s3524_s21  ;;  %s91_s27 = scalar_lea.vmem [#allocation2], %s3523_s22 }
  0x11   : > { %s97_s26 = sshll.u32 %s95_s25, 4  ;;  %s99_s28 = sshll.u32 %s91_s27, 4  ;;  %s98_s26 = int_to_ptr.hbm [resolvable:$true] %s97_s26  ;;  %s100_s28 = int_to_ptr.vmem [resolvable:$true] %s99_s28 }
  0x12   : > { %p4002_p13 = pnand %p3546_p10, %p3976_p5  ;;  %p3525_p0 = scmp.ge.s32.totalorder %s3860_s9, 1 }
  0x13   : > { %p104_p1 = scmp.lt.s32.totalorder %s3860_s9, 3  ;;  %s88_s30 = scalar_lea.sflag [#allocation3], %s87_s20 }
  0x14   : > { %s3764_s2 = sshra.s32 %s98_s26, 4  ;;  %p3768_p3 = pneg %p4002_p13  ;;  %s3765_s2 = int_to_ptr.hbm [resolvable:$true] %s3764_s2 }
  0x15   : > { %s3766_s3 = scalar_lea.hbm %s3765_s2, 8  ;;  %s3771_s11 = scalar_lea.hbm %s6043_s0, 16 }
  0x16   : > { %p3767_p2 = scmp.ne.s32.totalorder %s3765_s2, %s3766_s3  ;;  %p3772_p5 = scmp.lt.s32.totalorder %s3765_s2, %s6043_s0 }
  0x17   : > { %p3773_p8 = scmp.lt.s32.totalorder %s3771_s11, %s3766_s3 }
  0x18   : > { %p3769_p4 = pnand %p3768_p3, %p3767_p2 }
  0x19   : > { %p3774_p10 = por %p3773_p8, %p3772_p5 }
  0x1a   : > { %p3770_p7 = pneg %p3769_p4 }
  0x1c   : > { %p3775_p9 = pnand %p3774_p10, %p3770_p7 }
  0x1e   : > { %3778 = shalt.err (!%p3775_p9)
}
  0x1f   : > { %3541 = dma.hbm_to_vmem [thread:$0]  (!%p4002_p13), %s98_s26, 128, %s100_s28, %s88_s30  }
  0x20   : > { %p105_p2 = pnand %p3525_p0, %p104_p1 }
  0x22   : > { %108 = sbr.rel (%p105_p2) target bundleno = 1433 (0x599), region = 24 }
  0x27   : > { %s4023_s16 = sand.u32 1, %s3852_s7  }
  0x28   : > { %s3526_s20 = sshll.u32 %s4023_s16, 3  ;;  %s111_s21 = scalar_lea.sflag [#allocation3], %s4023_s16 }
  0x29   : > { %s114_s22 = scalar_lea.vmem [#allocation2], %s3526_s20 }
  0x2a   : > { %3839 = dma.done.wait (%p3980_p6), %s111_s21, 128  }
  0x2b   : > { %3841 = vsyncadd (%p3980_p6), %s111_s21, 4294967168  ;;  %v136_v0 = vlaneseq  ;;  %v4042_v4 = vld [vmem:[%s114_s22] sm:$0xff]  ;;  %vm912_vm0 = vcmask 1047556   ;;  %s3864_s17 = smov 2   ;;  %s3865_s23 = smov 6   ;;  %vm3208_vm1 = vcmask 15360  }
  0x2c   : > { %v4045_v5 = vperm.slane %v4042_v4, 0  ;;  %v4051_v6 = vperm.slane %v4042_v4, 3  ;;  %v4105_v16 = vperm.slane %v4042_v4, 4  ;;  %v232_v19 = vperm.slane %v4042_v4, 1  ;;  %s3866_s24 = smov 4   ;;  %s3867_s25 = smov 8  }
  0x2d   : > { %v4031_v1 = vshrl.u32 %v136_v0, 7  ;;  %v4129_v20 = vperm.slane %v4042_v4, 5  ;;  %v4156_v23 = vperm.slane %v4042_v4, 6  ;;  %v329_v24 = vperm.slane %v4042_v4, 2  ;;  %s3868_s26 = smov 12   ;;  %s3869_s27 = smov 10  }
  0x2e   : > { %v4177_v25 = vperm.slane %v4042_v4, 7  ;;  %s3870_s28 = smov 14   ;;  %s3871_s29 = smov 18   ;;  %vm3210_vm2 = vcmask 31744   ;;  %vm3212_vm3 = vcmask 48128   ;;  %vm3214_vm4 = vcmask 64512  }
  0x2f   : > { %3645 = vset.pattern.permute.xlu0 %v4031_v1  ;;  %v4035_v2 = vadd.s32 32, %v4031_v1  ;;  %v4038_v3 = vadd.s32 16, %v4031_v1  ;;  %v4054_v7 = vadd.s32 40, %v4031_v1  ;;  %v4057_v8 = vadd.s32 24, %v4031_v1  ;;  %s3872_s30 = smov 16   ;;  %s3873_s2 = smov 20  }
  0x30   : > { %v4066_v9 = vadd.s32 56, %v4031_v1  ;;  %v4069_v10 = vadd.s32 48, %v4031_v1  ;;  %v4075_v11 = vadd.s32 80, %v4031_v1  ;;  %v4081_v12 = vadd.s32 72, %v4031_v1  ;;  %s3874_s3 = smov 24   ;;  %s3875_s4 = smov 22  }
  0x31   : > { %3648 = vset.pattern.permute.xlu2 %v4035_v2  ;;  %3646 = vset.pattern.permute.xlu1 %v4038_v3  ;;  %v4087_v13 = vadd.s32 120, %v4031_v1  ;;  %v4093_v14 = vadd.s32 96, %v4031_v1  ;;  %v4096_v15 = vadd.s32 88, %v4031_v1  ;;  %v4108_v17 = vadd.s32 112, %v4031_v1  ;;  %s3876_s5 = smov 26   ;;  %s3877_s11 = smov 30  }
  0x32   : > { %v4117_v18 = vadd.s32 8, %v4031_v1  ;;  %v4135_v21 = vadd.s32 64, %v4031_v1  ;;  %v4143_v22 = vadd.s32 104, %v4031_v1  ;;  %s3878_s13 = smov 28   ;;  %s3879_s14 = smov 32   ;;  %vm3216_vm5 = vcmask 80896  }
  0x33   : > { %s6110_s20 = smov 36   ;;  %s6109_s21 = smov 34   ;;  %vm3218_vm6 = vcmask 97280   ;;  %vm3220_vm7 = vcmask 113664   ;;  %vm3222_vm8 = vcmask 130048   ;;  %vm3224_vm9 = vcmask 146432  }
  0x34   : > { %s6113_s22 = smov 38   ;;  %vm3226_vm10 = vcmask 162816   ;;  %vm3228_vm11 = vcmask 179200   ;;  %vm3230_vm12 = vcmask 195584   ;;  %vm6154_vm13 = vcmask 211968  }
  0x35   : > { %vm6153_vm14 = vcmask 228352   ;;  %vm6151_vm15 = vcmask 244736  }
  0x37   : > { %140 = vperm.xlu0 %3645, %v4045_v5  }
  0x39   : > { %164 = vperm.xlu2 %3648, %v4045_v5   ;;  %152 = vperm.xlu1 %3646, %v4045_v5  }
  0x3f   : > { %431 = vperm.xlu0 %3645, %v4051_v6  }
  0x41   : > { %3649 = vset.pattern.permute.xlu2 %v4054_v7  ;;  %3647 = vset.pattern.permute.xlu1 %v4057_v8 }
  0x47   : > { %3688 = vset.pattern.permute.xlu0 %v4054_v7 }
  0x49   : > { %170 = vperm.xlu2 %3649, %v4045_v5   ;;  %158 = vperm.xlu1 %3647, %v4045_v5  }
  0x4f   : > { %461 = vperm.xlu0 %3688, %v4051_v6  }
  0x51   : > { %3651 = vset.pattern.permute.xlu2 %v4066_v9  ;;  %3650 = vset.pattern.permute.xlu1 %v4069_v10 }
  0x57   : > { %3693 = vset.pattern.permute.xlu0 %v4075_v11 }
  0x59   : > { %182 = vperm.xlu2 %3651, %v4045_v5   ;;  %176 = vperm.xlu1 %3650, %v4045_v5  }
  0x5f   : > { %491 = vperm.xlu0 %3693, %v4051_v6  }
  0x61   : > { %3653 = vset.pattern.permute.xlu2 %v4075_v11  ;;  %3652 = vset.pattern.permute.xlu1 %v4081_v12 }
  0x67   : > { %3698 = vset.pattern.permute.xlu0 %v4087_v13 }
  0x69   : > { %200 = vperm.xlu2 %3653, %v4045_v5   ;;  %194 = vperm.xlu1 %3652, %v4045_v5  }
  0x6f   : > { %521 = vperm.xlu0 %3698, %v4051_v6  }
  0x71   : > { %3655 = vset.pattern.permute.xlu2 %v4093_v14  ;;  %3654 = vset.pattern.permute.xlu1 %v4096_v15 }
  0x77   : > { %3703 = vset.pattern.permute.xlu0 %v4035_v2 }
  0x79   : > { %212 = vperm.xlu2 %3655, %v4045_v5   ;;  %206 = vperm.xlu1 %3654, %v4045_v5  }
  0x7f   : > { %552 = vperm.xlu0 %3703, %v4105_v16  }
  0x81   : > { %3657 = vset.pattern.permute.xlu2 %v4087_v13  ;;  %3656 = vset.pattern.permute.xlu1 %v4108_v17 }
  0x87   : > { %3708 = vset.pattern.permute.xlu0 %v4081_v12 }
  0x89   : > { %230 = vperm.xlu2 %3657, %v4045_v5   ;;  %224 = vperm.xlu1 %3656, %v4045_v5  }
  0x8f   : > { %582 = vperm.xlu0 %3708, %v4105_v16  }
  0x91   : > { %3659 = vset.pattern.permute.xlu2 %v4117_v18  ;;  %3658 = vset.pattern.permute.xlu1 %v4031_v1 }
  0x93   : > { %v4225_v26 = vpop.permute.xlu2 %164 }
  0x97   : > { %3713 = vset.pattern.permute.xlu0 %v4108_v17 }
  0x99   : > { %243 = vperm.xlu2 %3659, %v232_v19   ;;  %237 = vperm.xlu1 %3658, %v232_v19  }
  0x9f   : > { %612 = vperm.xlu0 %3713, %v4105_v16  }
  0xa1   : > { %3661 = vset.pattern.permute.xlu2 %v4035_v2  ;;  %3660 = vset.pattern.permute.xlu1 %v4057_v8 }
  0xa3   : > { %v4229_v27 = vpop.permute.xlu2 %170 }
  0xa7   : > { %3718 = vset.pattern.permute.xlu0 %v4057_v8 }
  0xa9   : > { %261 = vperm.xlu2 %3661, %v232_v19   ;;  %255 = vperm.xlu1 %3660, %v232_v19   ;;  %v4329_v60 = vpop.permute.xlu0 %140 }
  0xab   : > { %v4241_v30 = vpop.permute.xlu1 %152 }
  0xaf   : > { %643 = vperm.xlu0 %3718, %v4129_v20  }
  0xb1   : > { %3663 = vset.pattern.permute.xlu2 %v4069_v10  ;;  %3662 = vset.pattern.permute.xlu1 %v4054_v7  ;;  %v4337_v63 = vpop.permute.xlu0 %431 }
  0xb3   : > { %v4233_v28 = vpop.permute.xlu2 %182 }
  0xb4   : > { %6205 = vst [vmem:[#allocation8_spill] sm:$0xff] %v4233_v28 }
  0xb7   : > { %3719 = vset.pattern.permute.xlu0 %v4135_v21 }
  0xb9   : > { %273 = vperm.xlu2 %3663, %v232_v19   ;;  %267 = vperm.xlu1 %3662, %v232_v19  }
  0xbb   : > { %v4247_v32 = vpop.permute.xlu1 %158 }
  0xbf   : > { %188 = vperm.xlu0 %3719, %v4045_v5  }
  0xc1   : > { %3665 = vset.pattern.permute.xlu2 %v4081_v12  ;;  %3664 = vset.pattern.permute.xlu1 %v4135_v21 }
  0xc3   : > { %v4237_v29 = vpop.permute.xlu2 %200 }
  0xc4   : > { %6206 = vst [vmem:[#allocation9_spill] sm:$0xff] %v4237_v29 }
  0xc7   : > { %673 = vperm.xlu0 %3719, %v4129_v20  }
  0xc9   : > { %291 = vperm.xlu2 %3665, %v232_v19   ;;  %285 = vperm.xlu1 %3664, %v232_v19  }
  0xcb   : > { %v4253_v34 = vpop.permute.xlu1 %176 }
  0xcc   : > { %6209 = vst [vmem:[#allocation12_spill] sm:$0xff] %v4253_v34 }
  0xcf   : > { %3724 = vset.pattern.permute.xlu0 %v4143_v22 }
  0xd1   : > { %3667 = vset.pattern.permute.xlu2 %v4096_v15  ;;  %3666 = vset.pattern.permute.xlu1 %v4075_v11 }
  0xd3   : > { %v4243_v31 = vpop.permute.xlu2 %212 }
  0xd4   : > { %6207 = vst [vmem:[#allocation10_spill] sm:$0xff] %v4243_v31 }
  0xd7   : > { %218 = vperm.xlu0 %3724, %v4045_v5  }
  0xd9   : > { %303 = vperm.xlu2 %3667, %v232_v19   ;;  %297 = vperm.xlu1 %3666, %v232_v19  }
  0xdb   : > { %v4259_v36 = vpop.permute.xlu1 %194 }
  0xdc   : > { %6210 = vst [vmem:[#allocation13_spill] sm:$0xff] %v4259_v36 }
  0xdf   : > { %703 = vperm.xlu0 %3724, %v4129_v20  }
  0xe1   : > { %3669 = vset.pattern.permute.xlu2 %v4108_v17  ;;  %3668 = vset.pattern.permute.xlu1 %v4143_v22 }
  0xe3   : > { %v4249_v33 = vpop.permute.xlu2 %230 }
  0xe4   : > { %6208 = vst [vmem:[#allocation11_spill] sm:$0xff] %v4249_v33 }
  0xe7   : > { %3729 = vset.pattern.permute.xlu0 %v4038_v3 }
  0xe9   : > { %321 = vperm.xlu2 %3669, %v232_v19   ;;  %315 = vperm.xlu1 %3668, %v232_v19  }
  0xeb   : > { %v4265_v38 = vpop.permute.xlu1 %206 }
  0xec   : > { %6211 = vst [vmem:[#allocation14_spill] sm:$0xff] %v4265_v38 }
  0xef   : > { %249 = vperm.xlu0 %3729, %v232_v19  }
  0xf1   : > { %3671 = vset.pattern.permute.xlu2 %v4031_v1  ;;  %3670 = vset.pattern.permute.xlu1 %v4087_v13 }
  0xf3   : > { %v4255_v35 = vpop.permute.xlu2 %243 }
  0xf7   : > { %734 = vperm.xlu0 %3729, %v4156_v23  }
  0xf9   : > { %334 = vperm.xlu2 %3671, %v329_v24   ;;  %327 = vperm.xlu1 %3670, %v232_v19  }
  0xfb   : > { %v4271_v40 = vpop.permute.xlu1 %224 }
  0xfc   : > { %6213 = vst [vmem:[#allocation16_spill] sm:$0xff] %v4271_v40 }
  0xff   : > { %3734 = vset.pattern.permute.xlu0 %v4066_v9 }
 0x101   : > { %3673 = vset.pattern.permute.xlu2 %v4057_v8  ;;  %3672 = vset.pattern.permute.xlu1 %v4038_v3 }
 0x103   : > { %v4261_v37 = vpop.permute.xlu2 %261 }
 0x107   : > { %279 = vperm.xlu0 %3734, %v232_v19  }
 0x109   : > { %352 = vperm.xlu2 %3673, %v329_v24   ;;  %346 = vperm.xlu1 %3672, %v329_v24  }
 0x10b   : > { %v4277_v42 = vpop.permute.xlu1 %237 }
 0x10f   : > { %764 = vperm.xlu0 %3734, %v4156_v23  }
 0x111   : > { %3675 = vset.pattern.permute.xlu2 %v4054_v7  ;;  %3674 = vset.pattern.permute.xlu1 %v4035_v2 }
 0x113   : > { %v4267_v39 = vpop.permute.xlu2 %273 }
 0x114   : > { %6212 = vst [vmem:[#allocation15_spill] sm:$0xff] %v4267_v39 }
 0x117   : > { %3739 = vset.pattern.permute.xlu0 %v4093_v14 }
 0x119   : > { %364 = vperm.xlu2 %3675, %v329_v24   ;;  %358 = vperm.xlu1 %3674, %v329_v24  }
 0x11b   : > { %v4283_v44 = vpop.permute.xlu1 %255 }
 0x11f   : > { %309 = vperm.xlu0 %3739, %v232_v19  }
 0x121   : > { %3677 = vset.pattern.permute.xlu2 %v4135_v21  ;;  %3676 = vset.pattern.permute.xlu1 %v4066_v9 }
 0x123   : > { %v4273_v41 = vpop.permute.xlu2 %291 }
 0x124   : > { %6214 = vst [vmem:[#allocation17_spill] sm:$0xff] %v4273_v41 }
 0x127   : > { %794 = vperm.xlu0 %3739, %v4156_v23  }
 0x129   : > { %382 = vperm.xlu2 %3677, %v329_v24   ;;  %376 = vperm.xlu1 %3676, %v329_v24  }
 0x12b   : > { %v4289_v46 = vpop.permute.xlu1 %267 }
 0x12f   : > { %3744 = vset.pattern.permute.xlu0 %v4117_v18 }
 0x131   : > { %3679 = vset.pattern.permute.xlu2 %v4075_v11  ;;  %3678 = vset.pattern.permute.xlu1 %v4081_v12 }
 0x133   : > { %v4279_v43 = vpop.permute.xlu2 %303 }
 0x134   : > { %6215 = vst [vmem:[#allocation18_spill] sm:$0xff] %v4279_v43 }
 0x137   : > { %146 = vperm.xlu0 %3744, %v4045_v5   ;;  %v4345_v5 = vpop.permute.xlu0 %461 }
 0x139   : > { %394 = vperm.xlu2 %3679, %v329_v24   ;;  %388 = vperm.xlu1 %3678, %v329_v24  }
 0x13b   : > { %v4295_v48 = vpop.permute.xlu1 %285 }
 0x13c   : > { %6217 = vst [vmem:[#allocation20_spill] sm:$0xff] %v4295_v48 }
 0x13f   : > { %340 = vperm.xlu0 %3744, %v329_v24  }
 0x141   : > { %3681 = vset.pattern.permute.xlu2 %v4143_v22  ;;  %3680 = vset.pattern.permute.xlu1 %v4093_v14 }
 0x143   : > { %v4285_v45 = vpop.permute.xlu2 %321 }
 0x144   : > { %6216 = vst [vmem:[#allocation19_spill] sm:$0xff] %v4285_v45 }
 0x147   : > { %825 = vperm.xlu0 %3744, %v4177_v25  }
 0x149   : > { %412 = vperm.xlu2 %3681, %v329_v24   ;;  %406 = vperm.xlu1 %3680, %v329_v24  }
 0x14b   : > { %v4301_v50 = vpop.permute.xlu1 %297 }
 0x14c   : > { %6218 = vst [vmem:[#allocation21_spill] sm:$0xff] %v4301_v50 }
 0x14f   : > { %3749 = vset.pattern.permute.xlu0 %v4069_v10 }
 0x151   : > { %3683 = vset.pattern.permute.xlu2 %v4087_v13  ;;  %3682 = vset.pattern.permute.xlu1 %v4108_v17 }
 0x153   : > { %v4291_v47 = vpop.permute.xlu2 %334 }
 0x157   : > { %370 = vperm.xlu0 %3749, %v329_v24  }
 0x159   : > { %424 = vperm.xlu2 %3683, %v329_v24   ;;  %418 = vperm.xlu1 %3682, %v329_v24  }
 0x15b   : > { %v4307_v52 = vpop.permute.xlu1 %315 }
 0x15c   : > { %6219 = vst [vmem:[#allocation22_spill] sm:$0xff] %v4307_v52 }
 0x15f   : > { %855 = vperm.xlu0 %3749, %v4177_v25  }
 0x161   : > { %3685 = vset.pattern.permute.xlu2 %v4038_v3  ;;  %3684 = vset.pattern.permute.xlu1 %v4117_v18 }
 0x163   : > { %v4297_v49 = vpop.permute.xlu2 %352 }
 0x167   : > { %3754 = vset.pattern.permute.xlu0 %v4096_v15 }
 0x169   : > { %443 = vperm.xlu2 %3685, %v4051_v6   ;;  %437 = vperm.xlu1 %3684, %v4051_v6  }
 0x16b   : > { %v4313_v54 = vpop.permute.xlu1 %327 }
 0x16c   : > { %6221 = vst [vmem:[#allocation24_spill] sm:$0xff] %v4313_v54 }
 0x16f   : > { %400 = vperm.xlu0 %3754, %v329_v24  }
 0x171   : > { %3687 = vset.pattern.permute.xlu2 %v4035_v2  ;;  %3686 = vset.pattern.permute.xlu1 %v4057_v8 }
 0x173   : > { %v4303_v51 = vpop.permute.xlu2 %364 }
 0x177   : > { %885 = vperm.xlu0 %3754, %v4177_v25  }
 0x179   : > { %455 = vperm.xlu2 %3687, %v4051_v6   ;;  %449 = vperm.xlu1 %3686, %v4051_v6  }
 0x17b   : > { %v4319_v56 = vpop.permute.xlu1 %346 }
 0x17f   : > { %3763 = vset.pattern.permute.xlu0 %v4087_v13 }
 0x181   : > { %3690 = vset.pattern.permute.xlu2 %v4066_v9  ;;  %3689 = vset.pattern.permute.xlu1 %v4069_v10 }
 0x183   : > { %v4309_v53 = vpop.permute.xlu2 %382 }
 0x184   : > { %6220 = vst [vmem:[#allocation23_spill] sm:$0xff] %v4309_v53 }
 0x189   : > { %473 = vperm.xlu2 %3690, %v4051_v6   ;;  %467 = vperm.xlu1 %3689, %v4051_v6  }
 0x18b   : > { %v4325_v58 = vpop.permute.xlu1 %358 }
 0x191   : > { %3692 = vset.pattern.permute.xlu2 %v4081_v12  ;;  %3691 = vset.pattern.permute.xlu1 %v4135_v21 }
 0x193   : > { %v4315_v55 = vpop.permute.xlu2 %394 }
 0x194   : > { %6222 = vst [vmem:[#allocation25_spill] sm:$0xff] %v4315_v55 }
 0x199   : > { %485 = vperm.xlu2 %3692, %v4051_v6   ;;  %479 = vperm.xlu1 %3691, %v4051_v6  }
 0x19b   : > { %v4333_v61 = vpop.permute.xlu1 %376 }
 0x19c   : > { %6225 = vst [vmem:[#allocation28_spill] sm:$0xff] %v4333_v61 }
 0x1a1   : > { %3695 = vset.pattern.permute.xlu2 %v4093_v14  ;;  %3694 = vset.pattern.permute.xlu1 %v4096_v15 }
 0x1a3   : > { %v4321_v57 = vpop.permute.xlu2 %412 }
 0x1a4   : > { %6223 = vst [vmem:[#allocation26_spill] sm:$0xff] %v4321_v57 }
 0x1a9   : > { %503 = vperm.xlu2 %3695, %v4051_v6   ;;  %497 = vperm.xlu1 %3694, %v4051_v6  }
 0x1ab   : > { %v4341_v0 = vpop.permute.xlu1 %388 }
 0x1ac   : > { %6226 = vst [vmem:[#allocation29_spill] sm:$0xff] %v4341_v0 }
 0x1b1   : > { %3697 = vset.pattern.permute.xlu2 %v4108_v17  ;;  %3696 = vset.pattern.permute.xlu1 %v4143_v22 }
 0x1b3   : > { %v4327_v59 = vpop.permute.xlu2 %424 }
 0x1b4   : > { %6224 = vst [vmem:[#allocation27_spill] sm:$0xff] %v4327_v59 }
 0x1b9   : > { %515 = vperm.xlu2 %3697, %v4051_v6   ;;  %509 = vperm.xlu1 %3696, %v4051_v6  }
 0x1bb   : > { %v4349_v6 = vpop.permute.xlu1 %406 }
 0x1bc   : > { %6227 = vst [vmem:[#allocation30_spill] sm:$0xff] %v4349_v6 }
 0x1c1   : > { %3700 = vset.pattern.permute.xlu2 %v4117_v18  ;;  %3699 = vset.pattern.permute.xlu1 %v4031_v1 }
 0x1c3   : > { %v4335_v62 = vpop.permute.xlu2 %443 }
 0x1c9   : > { %534 = vperm.xlu2 %3700, %v4105_v16   ;;  %528 = vperm.xlu1 %3699, %v4105_v16  }
 0x1cb   : > { %v4357_v19 = vpop.permute.xlu1 %418 }
 0x1cc   : > { %6230 = vst [vmem:[#allocation33_spill] sm:$0xff] %v4357_v19 }
 0x1d1   : > { %3702 = vset.pattern.permute.xlu2 %v4057_v8  ;;  %3701 = vset.pattern.permute.xlu1 %v4038_v3 }
 0x1d3   : > { %v4343_v4 = vpop.permute.xlu2 %455 }
 0x1d9   : > { %546 = vperm.xlu2 %3702, %v4105_v16   ;;  %540 = vperm.xlu1 %3701, %v4105_v16  }
 0x1db   : > { %v4363_v24 = vpop.permute.xlu1 %437 }
 0x1e1   : > { %3705 = vset.pattern.permute.xlu2 %v4069_v10  ;;  %3704 = vset.pattern.permute.xlu1 %v4054_v7 }
 0x1e9   : > { %564 = vperm.xlu2 %3705, %v4105_v16   ;;  %558 = vperm.xlu1 %3704, %v4105_v16  }
 0x1eb   : > { %v4371_v59 = vpop.permute.xlu1 %449 }
 0x1f1   : > { %3707 = vset.pattern.permute.xlu2 %v4135_v21  ;;  %3706 = vset.pattern.permute.xlu1 %v4066_v9 }
 0x1f9   : > { %576 = vperm.xlu2 %3707, %v4105_v16   ;;  %570 = vperm.xlu1 %3706, %v4105_v16  }
 0x1fb   : > { %v4379_v45 = vpop.permute.xlu1 %467 }
 0x1fc   : > { %6235 = vst [vmem:[#allocation38_spill] sm:$0xff] %v4379_v45 }
 0x201   : > { %3710 = vset.pattern.permute.xlu2 %v4096_v15  ;;  %3709 = vset.pattern.permute.xlu1 %v4075_v11 }
 0x209   : > { %594 = vperm.xlu2 %3710, %v4105_v16   ;;  %588 = vperm.xlu1 %3709, %v4105_v16  }
 0x211   : > { %3712 = vset.pattern.permute.xlu2 %v4143_v22  ;;  %3711 = vset.pattern.permute.xlu1 %v4093_v14 }
 0x219   : > { %606 = vperm.xlu2 %3712, %v4105_v16   ;;  %600 = vperm.xlu1 %3711, %v4105_v16  }
 0x221   : > { %3715 = vset.pattern.permute.xlu2 %v4031_v1  ;;  %3714 = vset.pattern.permute.xlu1 %v4087_v13 }
 0x229   : > { %625 = vperm.xlu2 %3715, %v4129_v20   ;;  %618 = vperm.xlu1 %3714, %v4105_v16   ;;  %v4351_v16 = vpop.permute.xlu2 %473 }
 0x22a   : > { %6228 = vst [vmem:[#allocation31_spill] sm:$0xff] %v4351_v16 }
 0x231   : > { %3717 = vset.pattern.permute.xlu2 %v4038_v3  ;;  %3716 = vset.pattern.permute.xlu1 %v4117_v18 }
 0x239   : > { %637 = vperm.xlu2 %3717, %v4129_v20   ;;  %631 = vperm.xlu1 %3716, %v4129_v20  }
 0x241   : > { %3721 = vset.pattern.permute.xlu2 %v4054_v7  ;;  %3720 = vset.pattern.permute.xlu1 %v4035_v2 }
 0x249   : > { %655 = vperm.xlu2 %3721, %v4129_v20   ;;  %649 = vperm.xlu1 %3720, %v4129_v20  }
 0x251   : > { %3723 = vset.pattern.permute.xlu2 %v4066_v9  ;;  %3722 = vset.pattern.permute.xlu1 %v4069_v10 }
 0x259   : > { %667 = vperm.xlu2 %3723, %v4129_v20   ;;  %661 = vperm.xlu1 %3722, %v4129_v20  }
 0x261   : > { %3726 = vset.pattern.permute.xlu2 %v4075_v11  ;;  %3725 = vset.pattern.permute.xlu1 %v4081_v12 }
 0x269   : > { %685 = vperm.xlu2 %3726, %v4129_v20   ;;  %679 = vperm.xlu1 %3725, %v4129_v20  }
 0x271   : > { %3728 = vset.pattern.permute.xlu2 %v4093_v14  ;;  %3727 = vset.pattern.permute.xlu1 %v4096_v15 }
 0x279   : > { %697 = vperm.xlu2 %3728, %v4129_v20   ;;  %691 = vperm.xlu1 %3727, %v4129_v20  }
 0x281   : > { %3731 = vset.pattern.permute.xlu2 %v4087_v13  ;;  %3730 = vset.pattern.permute.xlu1 %v4108_v17 }
 0x289   : > { %715 = vperm.xlu2 %3731, %v4129_v20   ;;  %709 = vperm.xlu1 %3730, %v4129_v20   ;;  %v4359_v20 = vpop.permute.xlu2 %485 }
 0x28a   : > { %6231 = vst [vmem:[#allocation34_spill] sm:$0xff] %v4359_v20 }
 0x291   : > { %3733 = vset.pattern.permute.xlu2 %v4117_v18  ;;  %3732 = vset.pattern.permute.xlu1 %v4031_v1  ;;  %v4355_v18 = vpop.permute.xlu0 %491  ;;  %v4365_v33 = vpop.permute.xlu2 %503 }
 0x292   : > { %6229 = vst [vmem:[#allocation32_spill] sm:$0xff] %v4355_v18 }
 0x293   : > { %6232 = vst [vmem:[#allocation35_spill] sm:$0xff] %v4365_v33 }
 0x299   : > { %728 = vperm.xlu2 %3733, %v4156_v23   ;;  %722 = vperm.xlu1 %3732, %v4156_v23   ;;  %v4367_v54 = vpop.permute.xlu0 %521  ;;  %v4373_v40 = vpop.permute.xlu2 %515 }
 0x29a   : > { %6233 = vst [vmem:[#allocation36_spill] sm:$0xff] %v4367_v54 }
 0x29b   : > { %6234 = vst [vmem:[#allocation37_spill] sm:$0xff] %v4373_v40 }
 0x2a1   : > { %3736 = vset.pattern.permute.xlu2 %v4035_v2  ;;  %3735 = vset.pattern.permute.xlu1 %v4057_v8  ;;  %v4375_v19 = vpop.permute.xlu0 %552  ;;  %v4381_v52 = vpop.permute.xlu2 %534 }
 0x2a9   : > { %746 = vperm.xlu2 %3736, %v4156_v23   ;;  %740 = vperm.xlu1 %3735, %v4156_v23   ;;  %v4383_v57 = vpop.permute.xlu0 %582  ;;  %v4389_v54 = vpop.permute.xlu2 %546 }
 0x2aa   : > { %6236 = vst [vmem:[#allocation39_spill] sm:$0xff] %v4383_v57 }
 0x2b1   : > { %3738 = vset.pattern.permute.xlu2 %v4069_v10  ;;  %3737 = vset.pattern.permute.xlu1 %v4054_v7  ;;  %v4387_v10 = vpop.permute.xlu1 %479  ;;  %v4393_v40 = vpop.permute.xlu0 %612 }
 0x2b2   : > { %6237 = vst [vmem:[#allocation40_spill] sm:$0xff] %v4387_v10  ;;  %v4397_v6 = vpop.permute.xlu2 %564 }
 0x2b3   : > { %6238 = vst [vmem:[#allocation41_spill] sm:$0xff] %v4393_v40 }
 0x2b4   : > { %6240 = vst [vmem:[#allocation43_spill] sm:$0xff] %v4397_v6 }
 0x2b9   : > { %758 = vperm.xlu2 %3738, %v4156_v23   ;;  %752 = vperm.xlu1 %3737, %v4156_v23   ;;  %v4395_v31 = vpop.permute.xlu1 %497  ;;  %v4405_v43 = vpop.permute.xlu0 %643 }
 0x2ba   : > { %6239 = vst [vmem:[#allocation42_spill] sm:$0xff] %v4395_v31  ;;  %v4403_v38 = vpop.permute.xlu2 %576 }
 0x2bb   : > { %6242 = vst [vmem:[#allocation45_spill] sm:$0xff] %v4403_v38 }
 0x2c1   : > { %3741 = vset.pattern.permute.xlu2 %v4081_v12  ;;  %3740 = vset.pattern.permute.xlu1 %v4135_v21  ;;  %v4401_v33 = vpop.permute.xlu1 %509  ;;  %v4413_v31 = vpop.permute.xlu0 %188 }
 0x2c2   : > { %6241 = vst [vmem:[#allocation44_spill] sm:$0xff] %v4401_v33  ;;  %v4411_v40 = vpop.permute.xlu2 %594 }
 0x2c3   : > { %6243 = vst [vmem:[#allocation46_spill] sm:$0xff] %v4411_v40 }
 0x2c4   : > { %6244 = vst [vmem:[#allocation47_spill] sm:$0xff] %v4413_v31  ;;  %v924_v31 = vrot.slane %v4337_v63, 4 }
 0x2c9   : > { %776 = vperm.xlu2 %3741, %v4156_v23   ;;  %770 = vperm.xlu1 %3740, %v4156_v23   ;;  %v4409_v29 = vpop.permute.xlu1 %528  ;;  %v4421_v55 = vpop.permute.xlu0 %673 }
 0x2ca   : > { %v4419_v33 = vpop.permute.xlu2 %606  ;;  %6246 = vst [vmem:[#allocation49_spill] sm:$0xff] %v4421_v55 }
 0x2cb   : > { %6245 = vst [vmem:[#allocation48_spill] sm:$0xff] %v4419_v33 }
 0x2d1   : > { %3743 = vset.pattern.permute.xlu2 %v4096_v15  ;;  %3742 = vset.pattern.permute.xlu1 %v4075_v11  ;;  %v4417_v15 = vpop.permute.xlu1 %540  ;;  %v4431_v40 = vpop.permute.xlu0 %218 }
 0x2d2   : > { %v4427_v18 = vpop.permute.xlu2 %625  ;;  %6247 = vst [vmem:[#allocation50_spill] sm:$0xff] %v4431_v40 }
 0x2d9   : > { %788 = vperm.xlu2 %3743, %v4156_v23   ;;  %782 = vperm.xlu1 %3742, %v4156_v23   ;;  %v4425_v50 = vpop.permute.xlu1 %558  ;;  %v4443_v0 = vpop.permute.xlu0 %703 }
 0x2da   : > { %v4435_v57 = vpop.permute.xlu2 %637  ;;  %6250 = vst [vmem:[#allocation53_spill] sm:$0xff] %v4443_v0 }
 0x2e1   : > { %3746 = vset.pattern.permute.xlu2 %v4108_v17  ;;  %3745 = vset.pattern.permute.xlu1 %v4143_v22  ;;  %v4433_v36 = vpop.permute.xlu1 %570  ;;  %v4451_v20 = vpop.permute.xlu0 %249 }
 0x2e2   : > { %6248 = vst [vmem:[#allocation51_spill] sm:$0xff] %v4433_v36  ;;  %v4441_v41 = vpop.permute.xlu2 %655  ;;  %v926_v36 = vrot.slane %v4277_v42, 4 }
 0x2e9   : > { %806 = vperm.xlu2 %3746, %v4156_v23   ;;  %800 = vperm.xlu1 %3745, %v4156_v23   ;;  %v4439_v33 = vpop.permute.xlu1 %588  ;;  %v4459_v38 = vpop.permute.xlu0 %734 }
 0x2ea   : > { %6249 = vst [vmem:[#allocation52_spill] sm:$0xff] %v4439_v33  ;;  %v4449_v40 = vpop.permute.xlu2 %667 }
 0x2eb   : > { %6252 = vst [vmem:[#allocation55_spill] sm:$0xff] %v4449_v40 }
 0x2f1   : > { %3748 = vset.pattern.permute.xlu2 %v4031_v1  ;;  %3747 = vset.pattern.permute.xlu1 %v4087_v13  ;;  %v4447_v1 = vpop.permute.xlu1 %600  ;;  %v4469_v0 = vpop.permute.xlu0 %279 }
 0x2f2   : > { %6251 = vst [vmem:[#allocation54_spill] sm:$0xff] %v4447_v1  ;;  %v4457_v33 = vpop.permute.xlu2 %685 }
 0x2f3   : > { %6254 = vst [vmem:[#allocation57_spill] sm:$0xff] %v4457_v33 }
 0x2f4   : > { %6256 = vst [vmem:[#allocation59_spill] sm:$0xff] %v4469_v0  ;;  %v950_v0 = vrot.slane %v4427_v18, 4 }
 0x2f9   : > { %819 = vperm.xlu2 %3748, %v4177_v25   ;;  %812 = vperm.xlu1 %3747, %v4156_v23   ;;  %v4455_v23 = vpop.permute.xlu1 %618  ;;  %v4481_v33 = vpop.permute.xlu0 %764 }
 0x2fa   : > { %6253 = vst [vmem:[#allocation56_spill] sm:$0xff] %v4455_v23 }
 0x2fb   : > { %6259 = vst [vmem:[#allocation62_spill] sm:$0xff] %v4481_v33 }
 0x301   : > { %3751 = vset.pattern.permute.xlu2 %v4057_v8  ;;  %3750 = vset.pattern.permute.xlu1 %v4038_v3  ;;  %v4463_v3 = vpop.permute.xlu1 %631  ;;  %v4465_v8 = vpop.permute.xlu2 %697 }
 0x302   : > { %6255 = vst [vmem:[#allocation58_spill] sm:$0xff] %v4465_v8  ;;  %v4489_v48 = vpop.permute.xlu0 %309 }
 0x303   : > { %6261 = vst [vmem:[#allocation64_spill] sm:$0xff] %v4489_v48 }
 0x309   : > { %837 = vperm.xlu2 %3751, %v4177_v25   ;;  %831 = vperm.xlu1 %3750, %v4177_v25   ;;  %v4471_v1 = vpop.permute.xlu1 %649  ;;  %v4473_v23 = vpop.permute.xlu2 %715 }
 0x30a   : > { %6257 = vst [vmem:[#allocation60_spill] sm:$0xff] %v4473_v23  ;;  %v4497_v23 = vpop.permute.xlu0 %794 }
 0x30b   : > { %6263 = vst [vmem:[#allocation66_spill] sm:$0xff] %v4497_v23  ;;  %v911_v23 = vrot.slane %v4291_v47, 4 }
 0x311   : > { %3753 = vset.pattern.permute.xlu2 %v4054_v7  ;;  %3752 = vset.pattern.permute.xlu1 %v4035_v2  ;;  %v4477_v7 = vpop.permute.xlu1 %661  ;;  %v4479_v2 = vpop.permute.xlu2 %728 }
 0x312   : > { %6258 = vst [vmem:[#allocation61_spill] sm:$0xff] %v4477_v7 }
 0x319   : > { %849 = vperm.xlu2 %3753, %v4177_v25   ;;  %843 = vperm.xlu1 %3752, %v4177_v25   ;;  %v4485_v8 = vpop.permute.xlu1 %679  ;;  %v4487_v55 = vpop.permute.xlu2 %746 }
 0x31a   : > { %6260 = vst [vmem:[#allocation63_spill] sm:$0xff] %v4485_v8 }
 0x321   : > { %3756 = vset.pattern.permute.xlu2 %v4135_v21  ;;  %3755 = vset.pattern.permute.xlu1 %v4066_v9  ;;  %v4493_v9 = vpop.permute.xlu1 %691  ;;  %v4495_v21 = vpop.permute.xlu2 %758 }
 0x322   : > { %6262 = vst [vmem:[#allocation65_spill] sm:$0xff] %v4493_v9  ;;  %v3862_v9 = vmov 1983009808  }
 0x323   : > { %v917_v53 = vunpack.c.l.s4 %v3862_v9  ;;  %v925_v9 = vsel %vm912_vm0, %v924_v31, %v4277_v42  ;;  %v938_v42 = vrot.slane %v4409_v29, 4 }
 0x329   : > { %867 = vperm.xlu2 %3756, %v4177_v25   ;;  %861 = vperm.xlu1 %3755, %v4177_v25   ;;  %v4501_v10 = vpop.permute.xlu1 %709  ;;  %v4503_v8 = vpop.permute.xlu2 %776 }
 0x32a   : > { %6264 = vst [vmem:[#allocation67_spill] sm:$0xff] %v4501_v10  ;;  %v4515_v10 = vunpack.c.0.s8 %v917_v53 }
 0x32b   : > { %6265 = vst [vmem:[#allocation68_spill] sm:$0xff] %v4503_v8 }
 0x32c   : > { %v931_v53 = vperm.slane %v925_v9, %v4515_v10 }
 0x32e   : > { %v960_v9 = vrot.slane %v931_v53, 4 }
 0x331   : > { %3758 = vset.pattern.permute.xlu2 %v4075_v11  ;;  %3757 = vset.pattern.permute.xlu1 %v4081_v12  ;;  %v4507_v11 = vpop.permute.xlu0 %146  ;;  %v723_v12 = vpop.permute.xlu1 %722 }
 0x332   : > { %v939_v34 = vsel %vm912_vm0, %v723_v12, %v938_v42 }
 0x333   : > { %v4509_v48 = vpop.permute.xlu2 %788  ;;  %v947_v42 = vperm.slane %v939_v34, %v4515_v10 }
 0x334   : > { %6266 = vst [vmem:[#allocation69_spill] sm:$0xff] %v4509_v48  ;;  %v936_v48 = vrot.slane %v723_v12, 4 }
 0x336   : > { %v937_v40 = vsel %vm912_vm0, %v936_v48, %v4409_v29 }
 0x337   : > { %v943_v16 = vperm.slane %v937_v40, %v4515_v10 }
 0x339   : > { %879 = vperm.xlu2 %3758, %v4177_v25   ;;  %873 = vperm.xlu1 %3757, %v4177_v25   ;;  %v4526_v28 = vpop.permute.xlu0 %340 }
 0x341   : > { %3760 = vset.pattern.permute.xlu2 %v4143_v22  ;;  %3759 = vset.pattern.permute.xlu1 %v4093_v14  ;;  %v913_v14 = vsel %vm912_vm0, %v911_v23, %v4329_v60  ;;  %v4519_v22 = vpop.permute.xlu1 %740  ;;  %v914_v23 = vrot.slane %v4329_v60, 4  ;;  %v826_v12 = vpop.permute.xlu0 %825 }
 0x342   : > { %v919_v33 = vperm.slane %v913_v14, %v4515_v10  ;;  %v3863_v14 = vmov 1934713408  }
 0x343   : > { %v4521_v8 = vpop.permute.xlu2 %806  ;;  %v965_v61 = vunpack.c.l.s4 %v3863_v14  ;;  %v915_v14 = vsel %vm912_vm0, %v4291_v47, %v914_v23 }
 0x344   : > { %6267 = vst [vmem:[#allocation70_spill] sm:$0xff] %v4521_v8  ;;  %v927_v8 = vsel %vm912_vm0, %v4337_v63, %v926_v36  ;;  %v962_v31 = vrot.slane %v919_v33, 4  ;;  %v961_v29 = vsel %vm912_vm0, %v960_v9, %v919_v33  ;;  %v1036_v33 = vrot.slane %v4363_v24, 4 }
 0x345   : > { %v4551_v39 = vunpack.c.0.s8 %v965_v61  ;;  %v923_v47 = vperm.slane %v915_v14, %v4515_v10 }
 0x346   : > { %v963_v6 = vsel %vm912_vm0, %v931_v53, %v962_v31  ;;  %v1048_v53 = vrot.slane %v4479_v2, 4  ;;  %v1037_v7 = vsel %vm912_vm0, %v1036_v33, %v4255_v35 }
 0x347   : > { %v4558_v9 = vperm.slane %v961_v29, %v4551_v39  ;;  %v971_v61 = vperm.slane %v963_v6, %v4551_v39  ;;  %v4587_v33 = vperm.slane %v1037_v7, %v4515_v10 }
 0x349   : > { %897 = vperm.xlu2 %3760, %v4177_v25   ;;  %891 = vperm.xlu1 %3759, %v4177_v25   ;;  %v4540_v48 = vpop.permute.xlu1 %752  ;;  %v1014_v45 = vrot.slane %v971_v61, 4 }
 0x351   : > { %3762 = vset.pattern.permute.xlu2 %v4087_v13  ;;  %3761 = vset.pattern.permute.xlu1 %v4108_v17  ;;  %v935_v17 = vperm.slane %v927_v8, %v4515_v10 }
 0x353   : > { %v820_v60 = vpop.permute.xlu2 %819  ;;  %v972_v31 = vrot.slane %v935_v17, 4 }
 0x354   : > { %v948_v36 = vrot.slane %v820_v60, 4  ;;  %v951_v13 = vsel %vm912_vm0, %v820_v60, %v950_v0  ;;  %v986_v0 = vrot.slane %v943_v16, 4 }
 0x355   : > { %v959_v63 = vperm.slane %v951_v13, %v4515_v10  ;;  %v1060_v13 = vrot.slane %v826_v12, 4 }
 0x356   : > { %v949_v40 = vsel %vm912_vm0, %v948_v36, %v4427_v18  ;;  %v998_v36 = vrot.slane %v947_v42, 4 }
 0x357   : > { %v955_v8 = vperm.slane %v949_v40, %v4515_v10  ;;  %v996_v60 = vrot.slane %v959_v63, 4  ;;  %v4567_v40 = vpop.permute.xlu1 %770 }
 0x358   : > { %6268 = vst [vmem:[#allocation71_spill] sm:$0xff] %v4567_v40 }
 0x359   : > { %v984_v18 = vrot.slane %v955_v8, 4  ;;  %909 = vperm.xlu2 %3762, %v4177_v25   ;;  %903 = vperm.xlu1 %3761, %v4177_v25   ;;  %v987_v34 = vsel %vm912_vm0, %v955_v8, %v986_v0  ;;  %v997_v14 = vsel %vm912_vm0, %v996_v60, %v947_v42  ;;  %v1061_v25 = vsel %vm912_vm0, %v1060_v13, %v4463_v3 }
 0x35a   : > { %v995_v23 = vperm.slane %v987_v34, %v4551_v39  ;;  %v1010_v0 = vrot.slane %v4558_v9, 4  ;;  %v974_v8 = vrot.slane %v923_v47, 4  ;;  %v999_v34 = vsel %vm912_vm0, %v959_v63, %v998_v36 }
 0x35b   : > { %v985_v29 = vsel %vm912_vm0, %v984_v18, %v943_v16  ;;  %v1024_v16 = vrot.slane %v4526_v28, 4  ;;  %v1049_v42 = vsel %vm912_vm0, %v1048_v53, %v4381_v52  ;;  %v1003_v13 = vperm.slane %v997_v14, %v4551_v39 }
 0x35c   : > { %v4576_v6 = vperm.slane %v985_v29, %v4551_v39  ;;  %v1012_v40 = vrot.slane %v995_v23, 4  ;;  %v1067_v18 = vperm.slane %v1061_v25, %v4515_v10  ;;  %v973_v63 = vsel %vm912_vm0, %v972_v31, %v923_v47 }
 0x35d   : > { %v1062_v36 = vrot.slane %v4463_v3, 4  ;;  %v1015_v29 = vsel %vm912_vm0, %v995_v23, %v1014_v45  ;;  %v1055_v14 = vperm.slane %v1049_v42, %v4515_v10  ;;  %v1025_v7 = vsel %vm912_vm0, %v1024_v16, %v4507_v11 }
 0x35e   : > { %v1011_v60 = vsel %vm912_vm0, %v4576_v6, %v1010_v0  ;;  %v1013_v53 = vsel %vm912_vm0, %v1012_v40, %v971_v61  ;;  %v1007_v0 = vperm.slane %v999_v34, %v4551_v39  ;;  %v979_v47 = vperm.slane %v973_v63, %v4551_v39 }
 0x35f   : > { %2705 = vrot.lane.b32.xlu0 %v1011_v60, %s3864_s17  ;;  %v1016_v3 = vrot.slane %v1003_v13, 4  ;;  %v975_v45 = vsel %vm912_vm0, %v935_v17, %v974_v8  ;;  %v1072_v61 = vrot.slane %v4587_v33, 4  ;;  %v1096_v23 = vrot.slane %v1067_v18, 4  ;;  %v4604_v31 = vpop.permute.xlu1 %782 }
 0x360   : > { %v1050_v40 = vrot.slane %v4381_v52, 4  ;;  %v1063_v25 = vsel %vm912_vm0, %v826_v12, %v1062_v36  ;;  %v1020_v34 = vrot.slane %v1007_v0, 4  ;;  %v1038_v42 = vrot.slane %v4255_v35, 4 }
 0x361   : > { %2713 = vrot.lane.b32.xlu2 %v1015_v29, %s3865_s23  ;;  %2709 = vrot.lane.b32.xlu1 %v1013_v53, %s3866_s24  ;;  %v1031_v60 = vperm.slane %v1025_v7, %v4515_v10  ;;  %v983_v16 = vperm.slane %v975_v45, %v4551_v39  ;;  %v1097_v63 = vsel %vm912_vm0, %v1096_v23, %v1055_v14  ;;  %v1026_v17 = vrot.slane %v4507_v11, 4 }
 0x362   : > { %v1051_v8 = vsel %vm912_vm0, %v4479_v2, %v1050_v40  ;;  %v1017_v29 = vsel %vm912_vm0, %v1016_v3, %v979_v47  ;;  %v1018_v53 = vrot.slane %v979_v47, 4  ;;  %v1071_v52 = vperm.slane %v1063_v25, %v4515_v10 }
 0x363   : > { %v1098_v12 = vrot.slane %v1055_v14, 4  ;;  %v1073_v35 = vsel %vm912_vm0, %v1072_v61, %v1031_v60  ;;  %v1039_v36 = vsel %vm912_vm0, %v4363_v24, %v1038_v42  ;;  %v1021_v7 = vsel %vm912_vm0, %v1020_v34, %v983_v16 }
 0x364   : > { %v1019_v11 = vsel %vm912_vm0, %v1003_v13, %v1018_v53  ;;  %v1103_v2 = vperm.slane %v1097_v63, %v4551_v39  ;;  %v1059_v3 = vperm.slane %v1051_v8, %v4515_v10  ;;  %v1027_v14 = vsel %vm912_vm0, %v4526_v28, %v1026_v17 }
 0x365   : > { %v1079_v47 = vperm.slane %v1073_v35, %v4551_v39  ;;  %v1074_v24 = vrot.slane %v1031_v60, 4  ;;  %v1047_v45 = vperm.slane %v1039_v36, %v4515_v10  ;;  %v1108_v61 = vrot.slane %v1071_v52, 4 }
 0x366   : > { %v1099_v23 = vsel %vm912_vm0, %v1067_v18, %v1098_v12  ;;  %v1022_v40 = vrot.slane %v983_v16, 4  ;;  %v1120_v25 = vrot.slane %v1103_v2, 4  ;;  %v1035_v42 = vperm.slane %v1027_v14, %v4515_v10 }
 0x367   : > { %2717 = vrot.lane.b32.xlu0 %v1017_v29, %s3867_s25  ;;  %v4631_v13 = vpop.permute.xlu1 %800  ;;  %v1109_v34 = vsel %vm912_vm0, %v1108_v61, %v1059_v3  ;;  %v1122_v8 = vrot.slane %v1079_v47, 4  ;;  %v1107_v28 = vperm.slane %v1099_v23, %v4551_v39  ;;  %v1084_v17 = vrot.slane %v1047_v45, 4 }
 0x368   : > { %v1023_v63 = vsel %vm912_vm0, %v1007_v0, %v1022_v40  ;;  %v1075_v60 = vsel %vm912_vm0, %v4587_v33, %v1074_v24  ;;  %v1148_v18 = vrot.slane %v4335_v62, 4  ;;  %v1121_v29 = vsel %vm912_vm0, %v1120_v25, %v1079_v47 }
 0x369   : > { %2725 = vrot.lane.b32.xlu2 %v1021_v7, %s3868_s26  ;;  %2721 = vrot.lane.b32.xlu1 %v1019_v11, %s3869_s27  ;;  %v1123_v16 = vsel %vm912_vm0, %v1103_v2, %v1122_v8  ;;  %v1115_v53 = vperm.slane %v1109_v34, %v4551_v39  ;;  %v1110_v12 = vrot.slane %v1059_v3, 4  ;;  %v1086_v0 = vrot.slane %v1035_v42, 4 }
 0x36a   : > { %v1083_v35 = vperm.slane %v1075_v60, %v4551_v39  ;;  %v1124_v36 = vrot.slane %v1107_v28, 4  ;;  %v1085_v7 = vsel %vm912_vm0, %v1084_v17, %v1035_v42  ;;  %v1160_v11 = vrot.slane %v4459_v38, 4 }
 0x36b   : > { %v1149_v2 = vsel %vm912_vm0, %v1148_v18, %v4451_v20  ;;  %v1128_v3 = vrot.slane %v1115_v53, 4  ;;  %v1136_v14 = vrot.slane %v4319_v56, 4  ;;  %v1150_v47 = vrot.slane %v4451_v20, 4 }
 0x36c   : > { %v1111_v24 = vsel %vm912_vm0, %v1071_v52, %v1110_v12  ;;  %v1087_v61 = vsel %vm912_vm0, %v1047_v45, %v1086_v0  ;;  %v1125_v23 = vsel %vm912_vm0, %v1124_v36, %v1083_v35  ;;  %v1091_v40 = vperm.slane %v1085_v7, %v4551_v39 }
 0x36d   : > { %v1126_v25 = vrot.slane %v1083_v35, 4  ;;  %v1155_v34 = vperm.slane %v1149_v2, %v4515_v10  ;;  %v1161_v42 = vsel %vm912_vm0, %v1160_v11, %v4417_v15  ;;  %v1119_v52 = vperm.slane %v1111_v24, %v4551_v39 }
 0x36e   : > { %v1095_v45 = vperm.slane %v1087_v61, %v4551_v39  ;;  %v1137_v8 = vsel %vm912_vm0, %v1136_v14, %v4241_v30  ;;  %v1151_v17 = vsel %vm912_vm0, %v4335_v62, %v1150_v47  ;;  %v1174_v60 = vrot.slane %v4435_v57, 4 }
 0x36f   : > { %2729 = vrot.lane.b32.xlu0 %v1023_v63, %s3870_s28  ;;  %v4648_v33 = vpop.permute.xlu1 %812  ;;  %v1129_v63 = vsel %vm912_vm0, %v1128_v3, %v1091_v40  ;;  %v1127_v20 = vsel %vm912_vm0, %v1107_v28, %v1126_v25  ;;  %v1138_v28 = vrot.slane %v4241_v30, 4  ;;  %v1184_v18 = vrot.slane %v1155_v34, 4 }
 0x370   : > { %v1130_v36 = vrot.slane %v1091_v40, 4  ;;  %v1132_v7 = vrot.slane %v1119_v52, 4  ;;  %v1143_v11 = vperm.slane %v1137_v8, %v4515_v10  ;;  %v4682_v2 = vperm.slane %v1151_v17, %v4515_v10 }
 0x371   : > { %2737 = vrot.lane.b32.xlu2 %v1123_v16, %s3871_s29  ;;  %2733 = vrot.lane.b32.xlu1 %v1121_v29, %s3872_s30  ;;  %v1167_v16 = vperm.slane %v1161_v42, %v4515_v10  ;;  %v4677_v29 = vpop.permute.xlu2 %837  ;;  %v1162_v62 = vrot.slane %v4417_v15, 4  ;;  %v1134_v3 = vrot.slane %v1095_v45, 4  ;;  %v1139_v40 = vsel %vm912_vm0, %v4319_v56, %v1138_v28 }
 0x372   : > { %v1284_v30 = vrot.slane %v4677_v29, 4  ;;  %v1131_v24 = vsel %vm912_vm0, %v1115_v53, %v1130_v36  ;;  %v1133_v25 = vsel %vm912_vm0, %v1132_v7, %v1095_v45  ;;  %v1185_v42 = vsel %vm912_vm0, %v1184_v18, %v1143_v11 }
 0x373   : > { %v1210_v61 = vrot.slane %v1167_v16, 4  ;;  %v1135_v15 = vsel %vm912_vm0, %v1119_v52, %v1134_v3  ;;  %v1196_v56 = vrot.slane %v4682_v2, 4  ;;  %v1260_v17 = vrot.slane %v4371_v59, 4 }
 0x374   : > { %v1285_v52 = vsel %vm912_vm0, %v1284_v30, %v4405_v43  ;;  %v1147_v36 = vperm.slane %v1139_v40, %v4515_v10 }
 0x375   : > { %v4715_v7 = vperm.slane %v1285_v52, %v4515_v10  ;;  %v1261_v30 = vsel %vm912_vm0, %v1260_v17, %v4283_v44 }
 0x377   : > { %2741 = vrot.lane.b32.xlu0 %v1125_v23, %s3873_s2 }
 0x379   : > { %2749 = vrot.lane.b32.xlu2 %v1129_v63, %s3874_s3  ;;  %2745 = vrot.lane.b32.xlu1 %v1127_v20, %s3875_s4  ;;  %v1163_v63 = vsel %vm912_vm0, %v4459_v38, %v1162_v62  ;;  %v1191_v38 = vperm.slane %v1185_v42, %v4551_v39 }
 0x37a   : > { %v1171_v18 = vperm.slane %v1163_v63, %v4515_v10 }
 0x37b   : > { %v832_v12 = vpop.permute.xlu1 %831 }
 0x37c   : > { %v1172_v0 = vrot.slane %v832_v12, 4  ;;  %v1175_v35 = vsel %vm912_vm0, %v832_v12, %v1174_v60  ;;  %v1272_v12 = vrot.slane %v4519_v22, 4  ;;  %v1222_v63 = vrot.slane %v1171_v18, 4 }
 0x37d   : > { %v1183_v47 = vperm.slane %v1175_v35, %v4515_v10 }
 0x37e   : > { %v1173_v14 = vsel %vm912_vm0, %v1172_v0, %v4435_v57  ;;  %v1186_v57 = vrot.slane %v1143_v11, 4 }
 0x37f   : > { %v1179_v23 = vperm.slane %v1173_v14, %v4515_v10  ;;  %2753 = vrot.lane.b32.xlu0 %v1131_v24, %s3876_s5  ;;  %v1220_v45 = vrot.slane %v1183_v47, 4  ;;  %v1273_v14 = vsel %vm912_vm0, %v1272_v12, %v4389_v54 }
 0x380   : > { %v1187_v28 = vsel %vm912_vm0, %v1155_v34, %v1186_v57  ;;  %v1197_v34 = vsel %vm912_vm0, %v1196_v56, %v1147_v36  ;;  %v1267_v57 = vperm.slane %v1261_v30, %v4515_v10  ;;  %v1223_v56 = vsel %vm912_vm0, %v1183_v47, %v1222_v63 }
 0x381   : > { %v1208_v53 = vrot.slane %v1179_v23, 4  ;;  %2761 = vrot.lane.b32.xlu2 %v1135_v15, %s3877_s11  ;;  %2757 = vrot.lane.b32.xlu1 %v1133_v25, %s3878_s13  ;;  %v1211_v20 = vsel %vm912_vm0, %v1179_v23, %v1210_v61  ;;  %v1195_v62 = vperm.slane %v1187_v28, %v4551_v39  ;;  %v1221_v3 = vsel %vm912_vm0, %v1220_v45, %v1171_v18 }
 0x382   : > { %v1219_v8 = vperm.slane %v1211_v20, %v4551_v39  ;;  %v1320_v23 = vrot.slane %v4715_v7, 4  ;;  %v1227_v15 = vperm.slane %v1221_v3, %v4551_v39  ;;  %v1248_v25 = vrot.slane %v4297_v49, 4 }
 0x383   : > { %v1209_v60 = vsel %vm912_vm0, %v1208_v53, %v1167_v16  ;;  %v1234_v16 = vrot.slane %v1191_v38, 4  ;;  %v1203_v42 = vperm.slane %v1197_v34, %v4551_v39  ;;  %v1279_v53 = vperm.slane %v1273_v14, %v4515_v10 }
 0x384   : > { %v1215_v0 = vperm.slane %v1209_v60, %v4551_v39  ;;  %v1236_v35 = vrot.slane %v1219_v8, 4  ;;  %v1198_v20 = vrot.slane %v1147_v36, 4  ;;  %v1240_v52 = vrot.slane %v1227_v15, 4 }
 0x385   : > { %v1321_v45 = vsel %vm912_vm0, %v1320_v23, %v1279_v53  ;;  %v1249_v17 = vsel %vm912_vm0, %v1248_v25, %v4247_v32  ;;  %v1242_v60 = vrot.slane %v1203_v42, 4  ;;  %v1286_v28 = vrot.slane %v4405_v43, 4 }
 0x386   : > { %v1232_v11 = vrot.slane %v1215_v0, 4  ;;  %v1237_v61 = vsel %vm912_vm0, %v1236_v35, %v1195_v62  ;;  %v1235_v40 = vsel %vm912_vm0, %v1215_v0, %v1234_v16  ;;  %v1296_v12 = vrot.slane %v1267_v57, 4  ;;  %v4761_v16 = vpop.permute.xlu2 %849 }
 0x387   : > { %v1199_v0 = vsel %vm912_vm0, %v4682_v2, %v1198_v20  ;;  %v1243_v35 = vsel %vm912_vm0, %v1227_v15, %v1242_v60  ;;  %v1231_v47 = vperm.slane %v1223_v56, %v4551_v39  ;;  %v4747_v36 = vperm.slane %v1321_v45, %v4551_v39 }
 0x388   : > { %v1233_v24 = vsel %vm912_vm0, %v1232_v11, %v1191_v38  ;;  %v1238_v38 = vrot.slane %v1195_v62, 4  ;;  %v1262_v11 = vrot.slane %v4283_v44, 4  ;;  %v1255_v62 = vperm.slane %v1249_v17, %v4515_v10 }
 0x389   : > { %2765 = vrot.lane.b32.xlu0 %v1233_v24, %s3879_s14  ;;  %2773 = vrot.lane.b32.xlu2 %v1237_v61, %s6110_s20  ;;  %v1241_v43 = vsel %vm912_vm0, %v1240_v52, %v1203_v42  ;;  %v1274_v2 = vrot.slane %v4389_v54, 4  ;;  %s6111_s20 = smov 40   ;;  %v1207_v44 = vperm.slane %v1199_v0, %v4551_v39  ;;  %v1322_v14 = vrot.slane %v1279_v53, 4 }
 0x38a   : > { %2769 = vrot.lane.b32.xlu1 %v1235_v40, %s6109_s21  ;;  %v1239_v18 = vsel %vm912_vm0, %v1219_v8, %v1238_v38  ;;  %s6112_s21 = smov 42   ;;  %v1287_v8 = vsel %vm912_vm0, %v4677_v29, %v1286_v28  ;;  %v1263_v3 = vsel %vm912_vm0, %v4371_v59, %v1262_v11  ;;  %v1297_v34 = vsel %vm912_vm0, %v1296_v12, %v1255_v62 }
 0x38b   : > { %v1275_v30 = vsel %vm912_vm0, %v4519_v22, %v1274_v2  ;;  %v844_v54 = vpop.permute.xlu1 %843  ;;  %v1244_v24 = vrot.slane %v1231_v47, 4  ;;  %v1344_v29 = vrot.slane %v4747_v36, 4  ;;  %v1298_v61 = vrot.slane %v1255_v62, 4 }
 0x38c   : > { %v1295_v23 = vperm.slane %v1287_v8, %v4515_v10  ;;  %v1250_v40 = vrot.slane %v4247_v32, 4  ;;  %v1303_v15 = vperm.slane %v1297_v34, %v4551_v39  ;;  %v1246_v59 = vrot.slane %v1207_v44, 4 }
 0x38d   : > { %v1323_v25 = vsel %vm912_vm0, %v4715_v7, %v1322_v14  ;;  %v1271_v42 = vperm.slane %v1263_v3, %v4515_v10  ;;  %v1283_v22 = vperm.slane %v1275_v30, %v4515_v10  ;;  %v1396_v63 = vrot.slane %v844_v54, 4 }
 0x38e   : > { %v1299_v53 = vsel %vm912_vm0, %v1267_v57, %v1298_v61  ;;  %v1372_v20 = vrot.slane %v4343_v4, 4  ;;  %v1245_v56 = vsel %vm912_vm0, %v1244_v24, %v1207_v44  ;;  %v1345_v52 = vsel %vm912_vm0, %v1344_v29, %v1303_v15  ;;  %v4786_v28 = vpop.permute.xlu2 %867 }
 0x38f   : > { %v1251_v32 = vsel %vm912_vm0, %v4297_v49, %v1250_v40  ;;  %v1332_v45 = vrot.slane %v1295_v23, 4  ;;  %v1247_v7 = vsel %vm912_vm0, %v1231_v47, %v1246_v59  ;;  %v1331_v57 = vperm.slane %v1323_v25, %v4551_v39 }
 0x390   : > { %v1307_v17 = vperm.slane %v1299_v53, %v4551_v39  ;;  %v1308_v38 = vrot.slane %v1271_v42, 4  ;;  %v1334_v60 = vrot.slane %v1283_v22, 4  ;;  %v1397_v49 = vsel %vm912_vm0, %v1396_v63, %v4471_v1 }
 0x391   : > { %2777 = vrot.lane.b32.xlu0 %v1239_v18, %s6113_s22  ;;  %2785 = vrot.lane.b32.xlu2 %v1243_v35, %s6112_s21  ;;  %s6115_s21 = smov 48   ;;  %s6114_s22 = smov 46   ;;  %v1259_v12 = vperm.slane %v1251_v32, %v4515_v10  ;;  %v1373_v0 = vsel %vm912_vm0, %v1372_v20, %v4261_v37  ;;  %v1384_v18 = vrot.slane %v4487_v55, 4  ;;  %v1348_v47 = vrot.slane %v1331_v57, 4 }
 0x392   : > { %2781 = vrot.lane.b32.xlu1 %v1241_v43, %s6111_s20  ;;  %s6116_s20 = smov 44   ;;  %v1335_v35 = vsel %vm912_vm0, %v1295_v23, %v1334_v60  ;;  %v1333_v11 = vsel %vm912_vm0, %v1332_v45, %v1283_v22  ;;  %v1360_v62 = vrot.slane %v4325_v58, 4  ;;  %v1403_v43 = vperm.slane %v1397_v49, %v4515_v10 }
 0x393   : > { %v1346_v2 = vrot.slane %v1303_v15, 4  ;;  %v1350_v8 = vrot.slane %v1307_v17, 4  ;;  %v4799_v44 = vperm.slane %v1373_v0, %v4515_v10  ;;  %v1398_v3 = vrot.slane %v4471_v1, 4 }
 0x394   : > { %v1309_v34 = vsel %vm912_vm0, %v1308_v38, %v1259_v12  ;;  %v1339_v24 = vperm.slane %v1333_v11, %v4551_v39  ;;  %v1343_v29 = vperm.slane %v1335_v35, %v4551_v39  ;;  %v1310_v61 = vrot.slane %v1259_v12, 4 }
 0x395   : > { %v1347_v30 = vsel %vm912_vm0, %v4747_v36, %v1346_v2  ;;  %v1351_v14 = vsel %vm912_vm0, %v1331_v57, %v1350_v8  ;;  %v1385_v23 = vsel %vm912_vm0, %v1384_v18, %v4375_v19  ;;  %v1349_v1 = vsel %vm912_vm0, %v1348_v47, %v1307_v17 }
 0x396   : > { %v1361_v36 = vsel %vm912_vm0, %v1360_v62, %v4225_v26  ;;  %v1399_v40 = vsel %vm912_vm0, %v844_v54, %v1398_v3  ;;  %v1432_v15 = vrot.slane %v1403_v43, 4  ;;  %v1408_v59 = vrot.slane %v4799_v44, 4  ;;  %v4818_v25 = vpop.permute.xlu2 %879 }
 0x397   : > { %v1315_v22 = vperm.slane %v1309_v34, %v4551_v39  ;;  %v1311_v63 = vsel %vm912_vm0, %v1271_v42, %v1310_v61  ;;  %v1391_v53 = vperm.slane %v1385_v23, %v4515_v10  ;;  %v1352_v20 = vrot.slane %v1339_v24, 4  ;;  %v4855_v61 = vpop.permute.xlu0 %370 }
 0x398   : > { %v4825_v54 = vperm.slane %v1399_v40, %v4515_v10  ;;  %v1374_v32 = vrot.slane %v4261_v37, 4  ;;  %v1386_v45 = vrot.slane %v4375_v19, 4  ;;  %v1362_v11 = vrot.slane %v4225_v26, 4 }
 0x399   : > { %2789 = vrot.lane.b32.xlu0 %v1245_v56, %s6116_s20  ;;  %2797 = vrot.lane.b32.xlu2 %v1345_v52, %s6115_s21  ;;  %s6118_s21 = smov 54   ;;  %s6117_s20 = smov 52   ;;  %v1356_v56 = vrot.slane %v1343_v29, 4  ;;  %v1367_v52 = vperm.slane %v1361_v36, %v4515_v10  ;;  %v1433_v57 = vsel %vm912_vm0, %v1432_v15, %v1391_v53  ;;  %v1354_v17 = vrot.slane %v1315_v22, 4 }
 0x39a   : > { %2793 = vrot.lane.b32.xlu1 %v1247_v7, %s6114_s22  ;;  %s6119_s22 = smov 50   ;;  %v1319_v7 = vperm.slane %v1311_v63, %v4551_v39  ;;  %v1375_v38 = vsel %vm912_vm0, %v4343_v4, %v1374_v32  ;;  %v1387_v60 = vsel %vm912_vm0, %v4487_v55, %v1386_v45  ;;  %v1353_v49 = vsel %vm912_vm0, %v1352_v20, %v1315_v22 }
 0x39b   : > { %v1409_v42 = vsel %vm912_vm0, %v1408_v59, %v1367_v52  ;;  %v1444_v37 = vrot.slane %v4825_v54, 4  ;;  %v1355_v19 = vsel %vm912_vm0, %v1339_v24, %v1354_v17  ;;  %v1439_v0 = vperm.slane %v1433_v57, %v4551_v39  ;;  %v4875_v63 = vpop.permute.xlu1 %861 }
 0x39c   : > { %v1357_v12 = vsel %vm912_vm0, %v1356_v56, %v1319_v7  ;;  %v1415_v55 = vperm.slane %v1409_v42, %v4551_v39  ;;  %v1383_v4 = vperm.slane %v1375_v38, %v4515_v10  ;;  %v1395_v18 = vperm.slane %v1387_v60, %v4515_v10 }
 0x39d   : > { %v1434_v35 = vrot.slane %v1391_v53, 4  ;;  %v1410_v62 = vrot.slane %v1367_v52, 4  ;;  %v1456_v8 = vrot.slane %v1439_v0, 4  ;;  %v1363_v34 = vsel %vm912_vm0, %v4325_v58, %v1362_v11 }
 0x39e   : > { %v1445_v2 = vsel %vm912_vm0, %v1444_v37, %v1395_v18  ;;  %v1458_v24 = vrot.slane %v1415_v55, 4  ;;  %v1420_v23 = vrot.slane %v1383_v4, 4  ;;  %v1484_v15 = vrot.slane %v4345_v5, 4 }
 0x39f   : > { %v1435_v3 = vsel %vm912_vm0, %v1403_v43, %v1434_v35  ;;  %v1411_v26 = vsel %vm912_vm0, %v4799_v44, %v1410_v62  ;;  %v4864_v58 = vperm.slane %v1445_v2, %v4551_v39  ;;  %v1371_v59 = vperm.slane %v1363_v34, %v4515_v10  ;;  %v4892_v37 = vpop.permute.xlu0 %855 }
 0x3a0   : > { %v1459_v40 = vsel %vm912_vm0, %v1439_v0, %v1458_v24  ;;  %v1443_v43 = vperm.slane %v1435_v3, %v4551_v39  ;;  %v1457_v44 = vsel %vm912_vm0, %v1456_v8, %v1415_v55  ;;  %v1472_v22 = vrot.slane %v4303_v51, 4 }
 0x3a1   : > { %2801 = vrot.lane.b32.xlu0 %v1347_v30, %s6119_s22  ;;  %2809 = vrot.lane.b32.xlu2 %v1351_v14, %s6118_s21  ;;  %s6121_s21 = smov 60   ;;  %s6120_s22 = smov 58   ;;  %v1508_v30 = vrot.slane %v4761_v16, 4  ;;  %v1358_v14 = vrot.slane %v1319_v7, 4  ;;  %v1419_v20 = vperm.slane %v1411_v26, %v4551_v39  ;;  %v1421_v56 = vsel %vm912_vm0, %v1420_v23, %v1371_v59 }
 0x3a2   : > { %2805 = vrot.lane.b32.xlu1 %v1349_v1, %s6117_s20  ;;  %s6122_s20 = smov 56   ;;  %v1496_v1 = vrot.slane %v4540_v48, 4  ;;  %v1446_v52 = vrot.slane %v1395_v18, 4  ;;  %v1460_v45 = vrot.slane %v1443_v43, 4  ;;  %v1464_v7 = vrot.slane %v4864_v58, 4 }
 0x3a3   : > { %v4847_v47 = vpop.permute.xlu2 %897  ;;  %v1359_v36 = vsel %vm912_vm0, %v1343_v29, %v1358_v14  ;;  %v1509_v29 = vsel %vm912_vm0, %v1508_v30, %v4441_v41  ;;  %v1485_v57 = vsel %vm912_vm0, %v1484_v15, %v4289_v46  ;;  %v1422_v17 = vrot.slane %v1371_v59, 4 }
 0x3a4   : > { %v1497_v32 = vsel %vm912_vm0, %v1496_v1, %v4425_v50  ;;  %v1515_v42 = vperm.slane %v1509_v29, %v4515_v10  ;;  %v1447_v38 = vsel %vm912_vm0, %v4825_v54, %v1446_v52  ;;  %v1427_v60 = vperm.slane %v1421_v56, %v4551_v39 }
 0x3a5   : > { %v1462_v0 = vrot.slane %v1419_v20, 4  ;;  %v1491_v55 = vperm.slane %v1485_v57, %v4515_v10  ;;  %v1473_v18 = vsel %vm912_vm0, %v1472_v22, %v4229_v27  ;;  %v1461_v35 = vsel %vm912_vm0, %v1460_v45, %v1419_v20  ;;  %v6269_v57 = vld [vmem:[#allocation38_spill] sm:$0xff] }
 0x3a6   : > { %v1465_v54 = vsel %vm912_vm0, %v1464_v7, %v1427_v60  ;;  %v1510_v11 = vrot.slane %v4441_v41, 4  ;;  %v1544_v62 = vrot.slane %v1515_v42, 4  ;;  %v1479_v8 = vperm.slane %v1473_v18, %v4515_v10 }
 0x3a7   : > { %v1474_v14 = vrot.slane %v4229_v27, 4  ;;  %v1520_v23 = vrot.slane %v1491_v55, 4  ;;  %v1620_v27 = vrot.slane %v4892_v37, 4  ;;  %v4935_v52 = vpop.permute.xlu0 %400 }
 0x3a8   : > { %v1511_v41 = vsel %vm912_vm0, %v4761_v16, %v1510_v11  ;;  %v1522_v59 = vrot.slane %v1479_v8, 4 }
 0x3a9   : > { %2813 = vrot.lane.b32.xlu0 %v1353_v49, %s6122_s20  ;;  %2821 = vrot.lane.b32.xlu2 %v1357_v12, %s6121_s21  ;;  %s6125_s21 = smov 66   ;;  %s6123_s20 = smov 64   ;;  %v1486_v49 = vrot.slane %v4289_v46, 4  ;;  %v1423_v12 = vsel %vm912_vm0, %v1383_v4, %v1422_v17  ;;  %v1463_v46 = vsel %vm912_vm0, %v1443_v43, %v1462_v0  ;;  %v1455_v4 = vperm.slane %v1447_v38, %v4551_v39 }
 0x3aa   : > { %2817 = vrot.lane.b32.xlu1 %v1355_v19, %s6120_s22  ;;  %s6126_s22 = smov 62   ;;  %v1503_v19 = vperm.slane %v1497_v32, %v4515_v10  ;;  %v1431_v2 = vperm.slane %v1423_v12, %v4551_v39  ;;  %v4922_v16 = vperm.slane %v1511_v41, %v4515_v10  ;;  %v1466_v43 = vrot.slane %v1427_v60, 4 }
 0x3ab   : > { %v4910_v34 = vpop.permute.xlu1 %873  ;;  %v1487_v24 = vsel %vm912_vm0, %v4345_v5, %v1486_v49  ;;  %v1468_v1 = vrot.slane %v1455_v4, 4  ;;  %v1521_v5 = vsel %vm912_vm0, %v1520_v23, %v1479_v8  ;;  %v1596_v17 = vrot.slane %v6269_v57, 4  ;;  %v6270_v49 = vld [vmem:[#allocation61_spill] sm:$0xff] }
 0x3ac   : > { %v1546_v3 = vrot.slane %v1503_v19, 4  ;;  %v1545_v26 = vsel %vm912_vm0, %v1544_v62, %v1503_v19  ;;  %v1470_v15 = vrot.slane %v1431_v2, 4  ;;  %v1467_v29 = vsel %vm912_vm0, %v4864_v58, %v1466_v43 }
 0x3ad   : > { %v1551_v20 = vperm.slane %v1545_v26, %v4551_v39  ;;  %v1495_v56 = vperm.slane %v1487_v24, %v4515_v10  ;;  %v1608_v58 = vrot.slane %v4495_v21, 4  ;;  %v1556_v45 = vrot.slane %v4922_v16, 4 }
 0x3ae   : > { %v1471_v22 = vsel %vm912_vm0, %v1455_v4, %v1470_v15  ;;  %v1527_v38 = vperm.slane %v1521_v5, %v4551_v39  ;;  %v1523_v60 = vsel %vm912_vm0, %v1491_v55, %v1522_v59  ;;  %v1621_v12 = vsel %vm912_vm0, %v1620_v27, %v6270_v49 }
 0x3af   : > { %v1568_v0 = vrot.slane %v1551_v20, 4  ;;  %v1531_v62 = vperm.slane %v1523_v60, %v4551_v39  ;;  %v4963_v55 = vperm.slane %v1621_v12, %v4515_v10  ;;  %v4969_v23 = vpop.permute.xlu0 %885 }
 0x3b0   : > { %v1570_v8 = vrot.slane %v1527_v38, 4 }
 0x3b1   : > { %2825 = vrot.lane.b32.xlu0 %v1359_v36, %s6126_s22  ;;  %2833 = vrot.lane.b32.xlu2 %v1459_v40, %s6125_s21  ;;  %s6128_s21 = smov 72   ;;  %s6127_s22 = smov 70   ;;  %v1547_v36 = vsel %vm912_vm0, %v1515_v42, %v1546_v3  ;;  %v1475_v40 = vsel %vm912_vm0, %v4303_v51, %v1474_v14  ;;  %v6272_v3 = vld [vmem:[#allocation15_spill] sm:$0xff]  ;;  %v1569_v14 = vsel %vm912_vm0, %v1568_v0, %v1527_v38  ;;  %v1656_v59 = vrot.slane %v4963_v55, 4 }
 0x3b2   : > { %2829 = vrot.lane.b32.xlu1 %v1457_v44, %s6123_s20  ;;  %s6129_s20 = smov 68   ;;  %v1498_v44 = vrot.slane %v4425_v50, 4  ;;  %v4932_v51 = vperm.slane %v1547_v36, %v4551_v39  ;;  %v1469_v50 = vsel %vm912_vm0, %v1468_v1, %v1431_v2  ;;  %v1483_v7 = vperm.slane %v1475_v40, %v4515_v10 }
 0x3b3   : > { %v4877_v53 = vpop.permute.xlu2 %909  ;;  %v1597_v41 = vsel %vm912_vm0, %v1596_v17, %v6272_v3  ;;  %v1571_v26 = vsel %vm912_vm0, %v1551_v20, %v1570_v8  ;;  %v1584_v40 = vrot.slane %v4855_v61, 4  ;;  %v1008_v20 = vrot.slane %v4576_v6, 4 }
 0x3b4   : > { %v1499_v32 = vsel %vm912_vm0, %v4540_v48, %v1498_v44  ;;  %v1572_v18 = vrot.slane %v4932_v51, 4  ;;  %v1534_v2 = vrot.slane %v1483_v7, 4  ;;  %v1603_v15 = vperm.slane %v1597_v41, %v4515_v10 }
 0x3b5   : > { %v1507_v19 = vperm.slane %v1499_v32, %v4515_v10  ;;  %v1574_v17 = vrot.slane %v1531_v62, 4 }
 0x3b6   : > { %v1573_v24 = vsel %vm912_vm0, %v1572_v18, %v1531_v62  ;;  %v1632_v12 = vrot.slane %v1603_v15, 4 }
 0x3b7   : > { %v1558_v27 = vrot.slane %v1507_v19, 4  ;;  %v1575_v6 = vsel %vm912_vm0, %v4932_v51, %v1574_v17  ;;  %v1009_v51 = vsel %vm912_vm0, %v1008_v20, %v4558_v9 }
 0x3b9   : > { %2837 = vrot.lane.b32.xlu0 %v1461_v35, %s6129_s20  ;;  %2845 = vrot.lane.b32.xlu2 %v1465_v54, %s6128_s21  ;;  %s6131_s21 = smov 78   ;;  %s6130_s20 = smov 76   ;;  %v1532_v35 = vrot.slane %v1495_v56, 4  ;;  %v6271_v54 = vld [vmem:[#allocation43_spill] sm:$0xff]  ;;  %v1559_v32 = vsel %vm912_vm0, %v4922_v16, %v1558_v27  ;;  %v1732_v27 = vrot.slane %v4875_v63, 4 }
 0x3ba   : > { %2841 = vrot.lane.b32.xlu1 %v1463_v46, %s6127_s22  ;;  %s6132_s22 = smov 74   ;;  %v1609_v11 = vsel %vm912_vm0, %v1608_v58, %v6271_v54  ;;  %v1557_v46 = vsel %vm912_vm0, %v1556_v45, %v1507_v19  ;;  %v6273_v45 = vld [vmem:[#allocation12_spill] sm:$0xff]  ;;  %v1622_v19 = vrot.slane %v6270_v49, 4  ;;  %v1567_v0 = vperm.slane %v1559_v32, %v4551_v39 }
 0x3bb   : > { %v4912_v30 = vpop.permute.xlu2 %2713  ;;  %v4947_v48 = vpop.permute.xlu1 %891  ;;  %v1533_v4 = vsel %vm912_vm0, %v1532_v35, %v1483_v7  ;;  %v4972_v1 = vperm.slane %v1609_v11, %v4515_v10  ;;  %v1563_v36 = vperm.slane %v1557_v46, %v4551_v39  ;;  %v1585_v7 = vsel %vm912_vm0, %v1584_v40, %v6273_v45 }
 0x3bc   : > { %v1539_v43 = vperm.slane %v1533_v4, %v4551_v39  ;;  %v1591_v35 = vperm.slane %v1585_v7, %v4515_v10  ;;  %v1580_v41 = vrot.slane %v1567_v0, 4 }
 0x3bd   : > { %v1657_v58 = vsel %vm912_vm0, %v1656_v59, %v4972_v1  ;;  %v1658_v62 = vrot.slane %v4972_v1, 4 }
 0x3be   : > { %v1578_v38 = vrot.slane %v1539_v43, 4  ;;  %v5004_v18 = vperm.slane %v1657_v58, %v4551_v39  ;;  %v1633_v9 = vsel %vm912_vm0, %v1632_v12, %v1591_v35  ;;  %v1634_v1 = vrot.slane %v1591_v35, 4 }
 0x3c0   : > { %v1579_v16 = vsel %vm912_vm0, %v1563_v36, %v1578_v38 }
 0x3c1   : > { %2849 = vrot.lane.b32.xlu0 %v1467_v29, %s6132_s22  ;;  %2857 = vrot.lane.b32.xlu2 %v1471_v22, %s6131_s21  ;;  %s6134_s21 = smov 84   ;;  %s6133_s22 = smov 82   ;;  %v1535_v29 = vsel %vm912_vm0, %v1495_v56, %v1534_v2  ;;  %v1598_v22 = vrot.slane %v6272_v3, 4  ;;  %v1610_v56 = vrot.slane %v6271_v54, 4  ;;  %v1623_v3 = vsel %vm912_vm0, %v4892_v37, %v1622_v19 }
 0x3c2   : > { %2853 = vrot.lane.b32.xlu1 %v1469_v50, %s6130_s20  ;;  %s6135_s20 = smov 80   ;;  %v1576_v50 = vrot.slane %v1563_v36, 4  ;;  %v1543_v60 = vperm.slane %v1535_v29, %v4551_v39  ;;  %v1659_v37 = vsel %vm912_vm0, %v4963_v55, %v1658_v62  ;;  %v1631_v59 = vperm.slane %v1623_v3, %v4515_v10  ;;  %v6279_v3 = vld [vmem:[#allocation8_spill] sm:$0xff] }
 0x3c3   : > { %v4949_v42 = vpop.permute.xlu2 %2725  ;;  %v1611_v11 = vsel %vm912_vm0, %v4495_v21, %v1610_v56  ;;  %v1599_v4 = vsel %vm912_vm0, %v6269_v57, %v1598_v22  ;;  %v1635_v29 = vsel %vm912_vm0, %v1603_v15, %v1634_v1  ;;  %v1667_v15 = vperm.slane %v1659_v37, %v4551_v39 }
 0x3c4   : > { %v1577_v49 = vsel %vm912_vm0, %v1576_v50, %v1539_v43  ;;  %v5031_v36 = vperm.slane %v1599_v4, %v4515_v10  ;;  %v1582_v40 = vrot.slane %v1543_v60, 4  ;;  %v1639_v43 = vperm.slane %v1633_v9, %v4551_v39 }
 0x3c5   : > { %v1581_v32 = vsel %vm912_vm0, %v1580_v41, %v1543_v60  ;;  %v1643_v38 = vperm.slane %v1635_v29, %v4551_v39  ;;  %v6276_v60 = vld [vmem:[#allocation59_spill] sm:$0xff]  ;;  %v1668_v19 = vrot.slane %v1631_v59, 4 }
 0x3c6   : > { %v1583_v55 = vsel %vm912_vm0, %v1567_v0, %v1582_v40  ;;  %v1710_v12 = vrot.slane %v6276_v60, 4  ;;  %v1644_v56 = vrot.slane %v5031_v36, 4 }
 0x3c9   : > { %2861 = vrot.lane.b32.xlu0 %v1569_v14, %s6135_s20  ;;  %2869 = vrot.lane.b32.xlu2 %v1573_v24, %s6134_s21  ;;  %s6137_s21 = smov 90   ;;  %s6136_s20 = smov 88   ;;  %v1680_v14 = vrot.slane %v5004_v18, 4  ;;  %v1586_v24 = vrot.slane %v6273_v45, 4 }
 0x3ca   : > { %2865 = vrot.lane.b32.xlu1 %v1571_v26, %s6133_s22  ;;  %s6138_s22 = smov 86   ;;  %v1619_v26 = vperm.slane %v1611_v11, %v4515_v10 }
 0x3cb   : > { %v4983_v44 = vpop.permute.xlu1 %903  ;;  %v4985_v5 = vpop.permute.xlu2 %2737  ;;  %v1587_v22 = vsel %vm912_vm0, %v4855_v61, %v1586_v24  ;;  %v1681_v50 = vsel %vm912_vm0, %v1680_v14, %v1639_v43  ;;  %v6275_v61 = vld [vmem:[#allocation28_spill] sm:$0xff]  ;;  %v1682_v14 = vrot.slane %v1639_v43, 4  ;;  %v1686_v24 = vrot.slane %v1643_v38, 4 }
 0x3cc   : > { %v1670_v58 = vrot.slane %v1619_v26, 4  ;;  %v1696_v7 = vrot.slane %v6275_v61, 4 }
 0x3cd   : > { %v1687_v40 = vsel %vm912_vm0, %v1667_v15, %v1686_v24 }
 0x3ce   : > { %v1671_v9 = vsel %vm912_vm0, %v1631_v59, %v1670_v58 }
 0x3cf   : > { %v5082_v59 = vperm.slane %v1671_v9, %v4551_v39 }
 0x3d1   : > { %2873 = vrot.lane.b32.xlu0 %v1575_v6, %s6138_s22  ;;  %2881 = vrot.lane.b32.xlu2 %v1579_v16, %s6137_s21  ;;  %v2706_v54 = vpop.permute.xlu0 %2705  ;;  %s6140_s21 = smov 96   ;;  %s6139_s22 = smov 94   ;;  %v6277_v6 = vld [vmem:[#allocation55_spill] sm:$0xff] }
 0x3d2   : > { %2877 = vrot.lane.b32.xlu1 %v1577_v49, %s6136_s20  ;;  %v3209_v46 = vsel %vm3208_vm1, %v1009_v51, %v2706_v54  ;;  %s6142_s20 = smov 92   ;;  %v1733_v16 = vsel %vm912_vm0, %v1732_v27, %v6277_v6  ;;  %v6278_v49 = vld [vmem:[#allocation62_spill] sm:$0xff]  ;;  %v1595_v54 = vperm.slane %v1587_v22, %v4515_v10  ;;  %v6280_v27 = vld [vmem:[#allocation51_spill] sm:$0xff] }
 0x3d3   : > { %v2710_v2 = vpop.permute.xlu1 %2709  ;;  %v5019_v8 = vpop.permute.xlu2 %2749  ;;  %v1720_v51 = vrot.slane %v6278_v49, 4  ;;  %v5070_v41 = vperm.slane %v1733_v16, %v4515_v10 }
 0x3d4   : > { %v3211_v21 = vsel %vm3210_vm2, %v3209_v46, %v2710_v2  ;;  %v1684_v46 = vrot.slane %v1667_v15, 4  ;;  %v1669_v2 = vsel %vm912_vm0, %v1668_v19, %v1619_v26  ;;  %v1683_v26 = vsel %vm912_vm0, %v5004_v18, %v1682_v14 }
 0x3d5   : > { %v3213_v57 = vsel %vm3212_vm3, %v3211_v21, %v4912_v30  ;;  %v6274_v30 = vld [vmem:[#allocation31_spill] sm:$0xff]  ;;  %v1697_v21 = vsel %vm912_vm0, %v1696_v7, %v6279_v3  ;;  %v1675_v37 = vperm.slane %v1669_v2, %v4551_v39  ;;  %v1646_v43 = vrot.slane %v1595_v54, 4 }
 0x3d6   : > { %v1708_v20 = vrot.slane %v6274_v30, 4  ;;  %v1721_v29 = vsel %vm912_vm0, %v1720_v51, %v6280_v27  ;;  %v1685_v22 = vsel %vm912_vm0, %v1684_v46, %v1643_v38  ;;  %v1698_v19 = vrot.slane %v6279_v3, 4 }
 0x3d7   : > { %v1711_v46 = vsel %vm912_vm0, %v6274_v30, %v1710_v12 }
 0x3d8   : > { %v1709_v11 = vsel %vm912_vm0, %v1708_v20, %v6276_v60  ;;  %v1688_v60 = vrot.slane %v1675_v37, 4 }
 0x3d9   : > { %2885 = vrot.lane.b32.xlu0 %v1581_v32, %s6142_s20  ;;  %2893 = vrot.lane.b32.xlu2 %v1681_v50, %s6140_s21  ;;  %v2718_v45 = vpop.permute.xlu0 %2717  ;;  %v5073_v1 = vperm.slane %v1709_v11, %v4515_v10  ;;  %s6144_s21 = smov 102   ;;  %v1768_v32 = vrot.slane %v5070_v41, 4  ;;  %s6143_s20 = smov 100  }
 0x3da   : > { %2889 = vrot.lane.b32.xlu1 %v1583_v55, %s6139_s22  ;;  %v3215_v17 = vsel %vm3214_vm4, %v3213_v57, %v2718_v45  ;;  %v1734_v57 = vrot.slane %v6277_v6, 4  ;;  %s6145_s22 = smov 98   ;;  %v1722_v55 = vrot.slane %v6280_v27, 4  ;;  %v1703_v6 = vperm.slane %v1697_v21, %v4515_v10 }
 0x3db   : > { %v2722_v0 = vpop.permute.xlu1 %2721  ;;  %v5056_v35 = vpop.permute.xlu2 %2761  ;;  %v1744_v58 = vrot.slane %v5073_v1, 4  ;;  %v1719_v21 = vperm.slane %v1711_v46, %v4515_v10 }
 0x3dc   : > { %v3217_v62 = vsel %vm3216_vm5, %v3215_v17, %v2722_v0  ;;  %v1735_v20 = vsel %vm912_vm0, %v4875_v63, %v1734_v57  ;;  %v1647_v63 = vsel %vm912_vm0, %v5031_v36, %v1646_v43  ;;  %v1727_v17 = vperm.slane %v1721_v29, %v4515_v10 }
 0x3dd   : > { %v3219_v4 = vsel %vm3218_vm6, %v3217_v62, %v4949_v42  ;;  %v1645_v42 = vsel %vm912_vm0, %v1644_v56, %v1595_v54  ;;  %v1692_v56 = vrot.slane %v5082_v59, 4  ;;  %v5107_v16 = vperm.slane %v1735_v20, %v4515_v10 }
 0x3de   : > { %v1651_v7 = vperm.slane %v1645_v42, %v4551_v39  ;;  %v1655_v51 = vperm.slane %v1647_v63, %v4551_v39  ;;  %v1769_v36 = vsel %vm912_vm0, %v1768_v32, %v1727_v17  ;;  %v1699_v54 = vsel %vm912_vm0, %v6275_v61, %v1698_v19  ;;  %v6282_v32 = vld [vmem:[#allocation23_spill] sm:$0xff] }
 0x3df   : > { %v1745_v62 = vsel %vm912_vm0, %v1744_v58, %v1703_v6  ;;  %v1780_v9 = vrot.slane %v5107_v16, 4  ;;  %v1775_v30 = vperm.slane %v1769_v36, %v4551_v39  ;;  %v1770_v24 = vrot.slane %v1727_v17, 4  ;;  %v6284_v19 = vld [vmem:[#allocation71_spill] sm:$0xff] }
 0x3e0   : > { %v1690_v11 = vrot.slane %v1651_v7, 4  ;;  %v1689_v2 = vsel %vm912_vm0, %v1688_v60, %v1651_v7  ;;  %v1694_v58 = vrot.slane %v1655_v51, 4  ;;  %v6283_v7 = vld [vmem:[#allocation40_spill] sm:$0xff] }
 0x3e1   : > { %2897 = vrot.lane.b32.xlu0 %v1683_v26, %s6145_s22  ;;  %2905 = vrot.lane.b32.xlu2 %v1687_v40, %s6144_s21  ;;  %v2730_v18 = vpop.permute.xlu0 %2729  ;;  %s6147_s21 = smov 108   ;;  %s6146_s22 = smov 106   ;;  %v1707_v26 = vperm.slane %v1699_v54, %v4515_v10  ;;  %v1746_v40 = vrot.slane %v1703_v6, 4  ;;  %v1792_v27 = vrot.slane %v1775_v30, 4  ;;  %v1820_v63 = vrot.slane %v6283_v7, 4  ;;  %v6285_v54 = vld [vmem:[#allocation20_spill] sm:$0xff] }
 0x3e2   : > { %2901 = vrot.lane.b32.xlu1 %v1685_v22, %s6143_s20  ;;  %v3221_v50 = vsel %vm3220_vm7, %v3219_v4, %v2730_v18  ;;  %v1723_v4 = vsel %vm912_vm0, %v6278_v49, %v1722_v55  ;;  %v1691_v3 = vsel %vm912_vm0, %v1675_v37, %v1690_v11  ;;  %s6148_s20 = smov 104   ;;  %v1751_v49 = vperm.slane %v1745_v62, %v4551_v39  ;;  %v6281_v18 = vld [vmem:[#allocation47_spill] sm:$0xff] }
 0x3e3   : > { %v5096_v45 = vpop.permute.xlu2 %2773  ;;  %v2734_v15 = vpop.permute.xlu1 %2733  ;;  %v1731_v14 = vperm.slane %v1723_v4, %v4515_v10  ;;  %v1771_v22 = vsel %vm912_vm0, %v5070_v41, %v1770_v24  ;;  %v1810_v20 = vrot.slane %v6281_v18, 4  ;;  %v1747_v17 = vsel %vm912_vm0, %v5073_v1, %v1746_v40 }
 0x3e4   : > { %v3223_v38 = vsel %vm3222_vm8, %v3221_v50, %v2734_v15  ;;  %v1808_v50 = vrot.slane %v6282_v32, 4  ;;  %v1794_v55 = vrot.slane %v1751_v49, 4  ;;  %v1756_v15 = vrot.slane %v1719_v21, 4 }
 0x3e5   : > { %v3225_v0 = vsel %vm3224_vm9, %v3223_v38, %v4985_v5  ;;  %v1693_v5 = vsel %vm912_vm0, %v1692_v56, %v1655_v51  ;;  %v1781_v43 = vsel %vm912_vm0, %v1780_v9, %v1731_v14  ;;  %v1695_v38 = vsel %vm912_vm0, %v5082_v59, %v1694_v58 }
 0x3e6   : > { %v1779_v41 = vperm.slane %v1771_v22, %v4551_v39  ;;  %v5151_v60 = vperm.slane %v1781_v43, %v4551_v39  ;;  %v1758_v56 = vrot.slane %v1707_v26, 4  ;;  %v1832_v6 = vrot.slane %v6284_v19, 4 }
 0x3e7   : > { %v1809_v59 = vsel %vm912_vm0, %v1808_v50, %v6281_v18  ;;  %v1844_v51 = vrot.slane %v4786_v28, 4  ;;  %v1821_v11 = vsel %vm912_vm0, %v1820_v63, %v6285_v54  ;;  %v1755_v4 = vperm.slane %v1747_v17, %v4551_v39 }
 0x3e8   : > { %v1782_v9 = vrot.slane %v1731_v14, 4 }
 0x3e9   : > { %2909 = vrot.lane.b32.xlu0 %v1689_v2, %s6148_s20  ;;  %2917 = vrot.lane.b32.xlu2 %v1693_v5, %s6147_s21  ;;  %v2742_v61 = vpop.permute.xlu0 %2741  ;;  %s6150_s21 = smov 114   ;;  %s6149_s20 = smov 112   ;;  %v1757_v2 = vsel %vm912_vm0, %v1756_v15, %v1707_v26  ;;  %v1759_v5 = vsel %vm912_vm0, %v1719_v21, %v1758_v56  ;;  %v1811_v26 = vsel %vm912_vm0, %v6282_v32, %v1810_v20  ;;  %v1798_v22 = vrot.slane %v1755_v4, 4 }
 0x3ea   : > { %2913 = vrot.lane.b32.xlu1 %v1691_v3, %s6146_s22  ;;  %v3227_v12 = vsel %vm3226_vm10, %v3225_v0, %v2742_v61  ;;  %v1793_v0 = vsel %vm912_vm0, %v1792_v27, %v1751_v49  ;;  %s6152_s22 = smov 110   ;;  %v1796_v61 = vrot.slane %v1779_v41, 4  ;;  %v6286_v49 = vld [vmem:[#allocation49_spill] sm:$0xff]  ;;  %v1783_v14 = vsel %vm912_vm0, %v5107_v16, %v1782_v9 }
 0x3eb   : > { %v5132_v57 = vpop.permute.xlu2 %2785  ;;  %v2746_v42 = vpop.permute.xlu1 %2745  ;;  %v1846_v24 = vrot.slane %v6286_v49, 4  ;;  %v1845_v21 = vsel %vm912_vm0, %v1844_v51, %v6286_v49  ;;  %v1763_v43 = vperm.slane %v1757_v2, %v4551_v39  ;;  %v1815_v27 = vperm.slane %v1809_v59, %v4515_v10 }
 0x3ec   : > { %v3229_v37 = vsel %vm3228_vm11, %v3227_v12, %v2746_v42  ;;  %v1822_v12 = vrot.slane %v6285_v54, 4  ;;  %v6287_v42 = vld [vmem:[#allocation45_spill] sm:$0xff]  ;;  %v1767_v18 = vperm.slane %v1759_v5, %v4551_v39  ;;  %v1797_v32 = vsel %vm912_vm0, %v1796_v61, %v1755_v4  ;;  %v6288_v61 = vld [vmem:[#allocation34_spill] sm:$0xff] }
 0x3ed   : > { %v3231_v29 = vsel %vm3230_vm12, %v3229_v37, %v5019_v8  ;;  %v1795_v8 = vsel %vm912_vm0, %v1775_v30, %v1794_v55  ;;  %v1800_v30 = vrot.slane %v5151_v60, 4  ;;  %v1833_v40 = vsel %vm912_vm0, %v1832_v6, %v6287_v42 }
 0x3ee   : > { %v1847_v20 = vsel %vm912_vm0, %v4786_v28, %v1846_v24  ;;  %v1851_v16 = vperm.slane %v1845_v21, %v4515_v10  ;;  %v1791_v58 = vperm.slane %v1783_v14, %v4551_v39  ;;  %v1799_v55 = vsel %vm912_vm0, %v1779_v41, %v1798_v22 }
 0x3ef   : > { %v1801_v50 = vsel %vm912_vm0, %v1800_v30, %v1763_v43  ;;  %v5198_v15 = vperm.slane %v1811_v26, %v4515_v10  ;;  %v1834_v28 = vrot.slane %v6287_v42, 4  ;;  %v1858_v63 = vrot.slane %v1815_v27, 4 }
 0x3f0   : > { %v1823_v17 = vsel %vm912_vm0, %v6283_v7, %v1822_v12  ;;  %v1880_v51 = vrot.slane %v1851_v16, 4  ;;  %v1804_v54 = vrot.slane %v1791_v58, 4  ;;  %v1956_v5 = vrot.slane %v4910_v34, 4 }
 0x3f1   : > { %2921 = vrot.lane.b32.xlu0 %v1695_v38, %s6152_s22  ;;  %2929 = vrot.lane.b32.xlu2 %v1795_v8, %s6150_s21  ;;  %v2754_v1 = vpop.permute.xlu0 %2753  ;;  %s6156_s21 = smov 120   ;;  %s6155_s22 = smov 118   ;;  %v1835_v56 = vsel %vm912_vm0, %v6284_v19, %v1834_v28  ;;  %v5212_v7 = vperm.slane %v1823_v17, %v4515_v10  ;;  %v1932_v30 = vrot.slane %v6288_v61, 4 }
 0x3f2   : > { %2925 = vrot.lane.b32.xlu1 %v1793_v0, %s6149_s20  ;;  %v3233_v36 = vsel %vm6154_vm13, %v3231_v29, %v2754_v1  ;;  %v1827_v29 = vperm.slane %v1821_v11, %v4515_v10  ;;  %s6158_s20 = smov 116   ;;  %vm6157_vm13 = vcmask 293888   ;;  %v1855_v0 = vperm.slane %v1847_v20, %v4515_v10 }
 0x3f3   : > { %v5164_v62 = vpop.permute.xlu2 %2797  ;;  %v2758_v46 = vpop.permute.xlu1 %2757  ;;  %v1806_v11 = vrot.slane %v1767_v18, 4  ;;  %v1843_v2 = vperm.slane %v1835_v56, %v4515_v10  ;;  %v1868_v14 = vrot.slane %v5212_v7, 4 }
 0x3f4   : > { %v3235_v3 = vsel %vm6153_vm14, %v3233_v36, %v2758_v46  ;;  %vm6159_vm14 = vcmask 277504   ;;  %v1856_v38 = vrot.slane %v1827_v29, 4  ;;  %v1802_v46 = vrot.slane %v1763_v43, 4 }
 0x3f5   : > { %v3237_v37 = vsel %vm6151_vm15, %v3235_v3, %v5056_v35  ;;  %v1839_v35 = vperm.slane %v1833_v40, %v4515_v10  ;;  %vm6160_vm15 = vcmask 261120   ;;  %v1859_v9 = vsel %vm912_vm0, %v1827_v29, %v1858_v63 }
 0x3f6   : > { %v1857_v3 = vsel %vm912_vm0, %v1856_v38, %v1815_v27  ;;  %v1892_v12 = vrot.slane %v1855_v0, 4  ;;  %v1803_v49 = vsel %vm912_vm0, %v5151_v60, %v1802_v46  ;;  %v1807_v24 = vsel %vm912_vm0, %v1791_v58, %v1806_v11  ;;  %v6290_v27 = vld [vmem:[#allocation63_spill] sm:$0xff] }
 0x3f7   : > { %v1882_v6 = vrot.slane %v1839_v35, 4  ;;  %v1881_v40 = vsel %vm912_vm0, %v1880_v51, %v1839_v35  ;;  %v1867_v60 = vperm.slane %v1859_v9, %v4551_v39  ;;  %v5234_v21 = vperm.slane %v1857_v3, %v4551_v39  ;;  %v6291_v35 = vld [vmem:[#allocation17_spill] sm:$0xff] }
 0x3f8   : > { %v1894_v43 = vrot.slane %v1843_v2, 4  ;;  %v1957_v29 = vsel %vm912_vm0, %v1956_v5, %v6290_v27  ;;  %v1933_v20 = vsel %vm912_vm0, %v1932_v30, %v6291_v35  ;;  %v1893_v38 = vsel %vm912_vm0, %v1892_v12, %v1843_v2  ;;  %v6294_v5 = vld [vmem:[#allocation13_spill] sm:$0xff] }
 0x3f9   : > { %2933 = vrot.lane.b32.xlu0 %v1797_v32, %s6158_s20  ;;  %2941 = vrot.lane.b32.xlu2 %v1801_v50, %s6156_s21  ;;  %v1883_v19 = vsel %vm912_vm0, %v1851_v16, %v1882_v6  ;;  %s3925_s21 = smov 126   ;;  %s3926_s20 = smov 124   ;;  %v6292_v32 = vld [vmem:[#allocation68_spill] sm:$0xff]  ;;  %v1906_v56 = vrot.slane %v5234_v21, 4  ;;  %v1910_v6 = vrot.slane %v1867_v60, 4  ;;  %v1958_v51 = vrot.slane %v6290_v27, 4 }
 0x3fa   : > { %2937 = vrot.lane.b32.xlu1 %v1799_v55, %s6155_s22  ;;  %s3924_s22 = smov 122   ;;  %v1891_v42 = vperm.slane %v1883_v19, %v4551_v39  ;;  %v1944_v50 = vrot.slane %v6292_v32, 4  ;;  %v5246_v55 = vperm.slane %v1881_v40, %v4551_v39  ;;  %v1895_v28 = vsel %vm912_vm0, %v1855_v0, %v1894_v43 }
 0x3fb   : > { %v5204_v8 = vpop.permute.xlu2 %2809  ;;  %v2766_v41 = vpop.permute.xlu0 %2765  ;;  %v1869_v0 = vsel %vm912_vm0, %v1868_v14, %v5198_v15  ;;  %v1899_v46 = vperm.slane %v1893_v38, %v4551_v39  ;;  %v1959_v3 = vsel %vm912_vm0, %v4910_v34, %v1958_v51  ;;  %v1934_v14 = vrot.slane %v6291_v35, 4 }
 0x3fc   : > { %v2770_v1 = vpop.permute.xlu1 %2769  ;;  %v3239_v59 = vsel %vm6160_vm15, %v3237_v37, %v2766_v41  ;;  %v6289_v37 = vld [vmem:[#allocation29_spill] sm:$0xff]  ;;  %vm6161_vm15 = vcmask 343040   ;;  %v1908_v17 = vrot.slane %v1891_v42, 4  ;;  %v5252_v41 = vperm.slane %v1957_v29, %v4515_v10 }
 0x3fd   : > { %v3241_v36 = vsel %vm6159_vm14, %v3239_v59, %v2770_v1  ;;  %v1920_v26 = vrot.slane %v6289_v37, 4  ;;  %vm6162_vm14 = vcmask 326656   ;;  %v5258_v59 = vperm.slane %v1933_v20, %v4515_v10 }
 0x3fe   : > { %v3243_v4 = vsel %vm6157_vm13, %v3241_v36, %v5096_v45  ;;  %v1805_v45 = vsel %vm912_vm0, %v1804_v54, %v1767_v18  ;;  %vm6163_vm13 = vcmask 310272   ;;  %v5264_v36 = vperm.slane %v1895_v28, %v4551_v39 }
 0x3ff   : > { %v1907_v54 = vsel %vm912_vm0, %v5246_v55, %v1906_v56  ;;  %v1911_v11 = vsel %vm912_vm0, %v1891_v42, %v1910_v6  ;;  %v1909_v2 = vsel %vm912_vm0, %v1908_v17, %v1867_v60  ;;  %v1921_v9 = vsel %vm912_vm0, %v1920_v26, %v6294_v5 }
 0x400   : > { %v1992_v30 = vrot.slane %v5252_v41, 4  ;;  %v1912_v26 = vrot.slane %v1899_v46, 4  ;;  %v1916_v60 = vrot.slane %v5264_v36, 4  ;;  %v1927_v43 = vperm.slane %v1921_v9, %v4515_v10 }
 0x401   : > { %2945 = vrot.lane.b32.xlu0 %v1803_v49, %s3924_s22  ;;  %2953 = vrot.lane.b32.xlu2 %v1807_v24, %s3925_s21  ;;  %v1875_v24 = vperm.slane %v1869_v0, %v4551_v39  ;;  %v5294_v27 = vperm.slane %v1959_v3, %v4515_v10  ;;  %v1935_v35 = vsel %vm912_vm0, %v6288_v61, %v1934_v14  ;;  %v1922_v61 = vrot.slane %v6294_v5, 4  ;;  %v6296_v14 = vld [vmem:[#allocation21_spill] sm:$0xff] }
 0x402   : > { %2949 = vrot.lane.b32.xlu1 %v1805_v45, %s3926_s20  ;;  %v1943_v6 = vperm.slane %v1935_v35, %v4515_v10 }
 0x403   : > { %v5239_v22 = vpop.permute.xlu2 %2821  ;;  %v2778_v18 = vpop.permute.xlu0 %2777  ;;  %v2004_v38 = vrot.slane %v5294_v27, 4 }
 0x404   : > { %v2782_v16 = vpop.permute.xlu1 %2781  ;;  %v3245_v58 = vsel %vm6163_vm13, %v3243_v4, %v2778_v18  ;;  %v6293_v4 = vld [vmem:[#allocation39_spill] sm:$0xff]  ;;  %vm6164_vm13 = vcmask 392192  }
 0x405   : > { %v3247_v63 = vsel %vm6162_vm14, %v3245_v58, %v2782_v16  ;;  %v1945_v19 = vsel %vm912_vm0, %v1944_v50, %v6293_v4  ;;  %vm6165_vm14 = vcmask 375808   ;;  %v1914_v16 = vrot.slane %v1875_v24, 4 }
 0x406   : > { %v3249_v1 = vsel %vm6161_vm15, %v3247_v63, %v5132_v57  ;;  %v1870_v57 = vrot.slane %v5198_v15, 4  ;;  %vm6166_vm15 = vcmask 359424   ;;  %v1968_v15 = vrot.slane %v5258_v59, 4 }
 0x407   : > { %v1951_v42 = vperm.slane %v1945_v19, %v4515_v10  ;;  %v1913_v63 = vsel %vm912_vm0, %v1912_v26, %v1875_v24  ;;  %v1915_v56 = vsel %vm912_vm0, %v1899_v46, %v1914_v16 }
 0x408   : > { %v1871_v45 = vsel %vm912_vm0, %v5212_v7, %v1870_v57  ;;  %v1946_v7 = vrot.slane %v6293_v4, 4  ;;  %v1969_v58 = vsel %vm912_vm0, %v1968_v15, %v1927_v43  ;;  %v1923_v57 = vsel %vm912_vm0, %v6289_v37, %v1922_v61 }
 0x409   : > { %2957 = vrot.lane.b32.xlu0 %v1907_v54, %s3864_s17  ;;  %2965 = vrot.lane.b32.xlu2 %v1911_v11, %s3865_s23  ;;  %v1879_v18 = vperm.slane %v1871_v45, %v4551_v39  ;;  %v1993_v50 = vsel %vm912_vm0, %v1992_v30, %v1951_v42  ;;  %v1994_v51 = vrot.slane %v1951_v42, 4  ;;  %v6295_v11 = vld [vmem:[#allocation32_spill] sm:$0xff]  ;;  %v1970_v4 = vrot.slane %v1927_v43, 4  ;;  %s6306_s17 = smov 36   ;;  %s6307_s23 = smov 34  }
 0x40a   : > { %2961 = vrot.lane.b32.xlu1 %v1909_v2, %s3866_s24  ;;  %v1947_v28 = vsel %vm912_vm0, %v6292_v32, %v1946_v7  ;;  %v1975_v32 = vperm.slane %v1969_v58, %v4551_v39  ;;  %v2044_v46 = vrot.slane %v6295_v11, 4  ;;  %v2068_v15 = vrot.slane %v4818_v25, 4  ;;  %s6309_s24 = smov 38  }
 0x40b   : > { %v5283_v12 = vpop.permute.xlu2 %2833  ;;  %v2790_v49 = vpop.permute.xlu0 %2789  ;;  %v1917_v17 = vsel %vm912_vm0, %v1916_v60, %v1879_v18  ;;  %v1995_v30 = vsel %vm912_vm0, %v5252_v41, %v1994_v51  ;;  %v1980_v37 = vrot.slane %v1943_v6, 4  ;;  %v2056_v42 = vrot.slane %v4604_v31, 4 }
 0x40c   : > { %v2794_v40 = vpop.permute.xlu1 %2793  ;;  %v3251_v34 = vsel %vm6166_vm15, %v3249_v1, %v2790_v49  ;;  %v1955_v1 = vperm.slane %v1947_v28, %v4515_v10  ;;  %vm6167_vm15 = vcmask 441344   ;;  %v1918_v49 = vrot.slane %v1879_v18, 4  ;;  %v6298_v18 = vld [vmem:[#allocation57_spill] sm:$0xff] }
 0x40d   : > { %v3253_v29 = vsel %vm6165_vm14, %v3251_v34, %v2794_v40  ;;  %vm6168_vm14 = vcmask 424960   ;;  %v2018_v24 = vrot.slane %v1975_v32, 4  ;;  %v1971_v40 = vsel %vm912_vm0, %v5258_v59, %v1970_v4 }
 0x40e   : > { %v3255_v20 = vsel %vm6164_vm13, %v3253_v29, %v5164_v62  ;;  %vm6169_vm13 = vcmask 408576   ;;  %v1999_v62 = vperm.slane %v1993_v50, %v4551_v39  ;;  %v2005_v5 = vsel %vm912_vm0, %v2004_v38, %v1955_v1 }
 0x40f   : > { %v1919_v34 = vsel %vm912_vm0, %v5264_v36, %v1918_v49  ;;  %v2003_v41 = vperm.slane %v1995_v30, %v4551_v39  ;;  %v5340_v60 = vperm.slane %v2005_v5, %v4551_v39  ;;  %v2045_v43 = vsel %vm912_vm0, %v2044_v46, %v6296_v14  ;;  %v6297_v36 = vld [vmem:[#allocation25_spill] sm:$0xff] }
 0x410   : > { %v2016_v3 = vrot.slane %v1999_v62, 4  ;;  %v2019_v26 = vsel %vm912_vm0, %v1999_v62, %v2018_v24  ;;  %v2046_v59 = vrot.slane %v6296_v14, 4  ;;  %v2032_v7 = vrot.slane %v6297_v36, 4 }
 0x411   : > { %2969 = vrot.lane.b32.xlu0 %v1913_v63, %s3867_s25  ;;  %2977 = vrot.lane.b32.xlu2 %v1917_v17, %s3868_s26  ;;  %v2006_v50 = vrot.slane %v1955_v1, 4  ;;  %v1979_v35 = vperm.slane %v1971_v40, %v4551_v39  ;;  %v6299_v63 = vld [vmem:[#allocation52_spill] sm:$0xff]  ;;  %v2020_v62 = vrot.slane %v2003_v41, 4  ;;  %v2024_v61 = vrot.slane %v5340_v60, 4  ;;  %s6310_s25 = smov 42   ;;  %s6311_s26 = smov 40  }
 0x412   : > { %2973 = vrot.lane.b32.xlu1 %v1915_v56, %s3869_s27  ;;  %v2017_v29 = vsel %vm912_vm0, %v2016_v3, %v1975_v32  ;;  %v2057_v17 = vsel %vm912_vm0, %v2056_v42, %v6299_v63  ;;  %v6300_v3 = vld [vmem:[#allocation9_spill] sm:$0xff]  ;;  %s6314_s27 = smov 44  }
 0x413   : > { %v5319_v0 = vpop.permute.xlu2 %2845  ;;  %v2802_v54 = vpop.permute.xlu0 %2801  ;;  %v2007_v46 = vsel %vm912_vm0, %v5294_v27, %v2006_v50  ;;  %v2022_v5 = vrot.slane %v1979_v35, 4  ;;  %v2033_v30 = vsel %vm912_vm0, %v2032_v7, %v6300_v3  ;;  %v2021_v27 = vsel %vm912_vm0, %v2020_v62, %v1979_v35 }
 0x414   : > { %v2806_v19 = vpop.permute.xlu1 %2805  ;;  %v3257_v2 = vsel %vm6169_vm13, %v3255_v20, %v2802_v54  ;;  %v2069_v20 = vsel %vm912_vm0, %v2068_v15, %v6298_v18  ;;  %vm6170_vm13 = vcmask 490496   ;;  %v5364_v54 = vperm.slane %v2045_v43, %v4515_v10 }
 0x415   : > { %v3259_v9 = vsel %vm6168_vm14, %v3257_v2, %v2806_v19  ;;  %vm6171_vm14 = vcmask 474112   ;;  %v2075_v1 = vperm.slane %v2069_v20, %v4515_v10  ;;  %v2047_v19 = vsel %vm912_vm0, %v6295_v11, %v2046_v59 }
 0x416   : > { %v3261_v45 = vsel %vm6167_vm15, %v3259_v9, %v5204_v8  ;;  %v1931_v8 = vperm.slane %v1923_v57, %v4515_v10  ;;  %vm6172_vm15 = vcmask 457728   ;;  %v2063_v2 = vperm.slane %v2057_v17, %v4515_v10 }
 0x417   : > { %v2070_v15 = vrot.slane %v6298_v18, 4  ;;  %v2104_v24 = vrot.slane %v2075_v1, 4  ;;  %v2080_v14 = vrot.slane %v5364_v54, 4  ;;  %v2180_v17 = vrot.slane %v4969_v23, 4 }
 0x418   : > { %v1981_v28 = vsel %vm912_vm0, %v1980_v37, %v1931_v8  ;;  %v1982_v32 = vrot.slane %v1931_v8, 4  ;;  %v2039_v37 = vperm.slane %v2033_v30, %v4515_v10  ;;  %v2106_v42 = vrot.slane %v2063_v2, 4 }
 0x419   : > { %2981 = vrot.lane.b32.xlu0 %v1919_v34, %s3870_s28  ;;  %2989 = vrot.lane.b32.xlu2 %v2019_v26, %s3871_s29  ;;  %v1987_v57 = vperm.slane %v1981_v28, %v4551_v39  ;;  %v2071_v40 = vsel %vm912_vm0, %v4818_v25, %v2070_v15  ;;  %v2105_v25 = vsel %vm912_vm0, %v2104_v24, %v2063_v2  ;;  %v6303_v2 = vld [vmem:[#allocation65_spill] sm:$0xff]  ;;  %s6315_s28 = smov 48   ;;  %s6317_s29 = smov 46  }
 0x41a   : > { %2985 = vrot.lane.b32.xlu1 %v2017_v29, %s3872_s30  ;;  %v1983_v9 = vsel %vm912_vm0, %v1943_v6, %v1982_v32  ;;  %v2034_v6 = vrot.slane %v6300_v3, 4  ;;  %v2107_v18 = vsel %vm912_vm0, %v2075_v1, %v2106_v42  ;;  %v5403_v20 = vperm.slane %v2071_v40, %v4515_v10  ;;  %s6322_s30 = smov 50  }
 0x41b   : > { %v5353_v16 = vpop.permute.xlu2 %2857  ;;  %v2814_v58 = vpop.permute.xlu0 %2813  ;;  %v2025_v49 = vsel %vm912_vm0, %v2024_v61, %v1987_v57  ;;  %v1991_v11 = vperm.slane %v1983_v9, %v4551_v39  ;;  %v2026_v50 = vrot.slane %v1987_v57, 4  ;;  %v2082_v28 = vrot.slane %v2039_v37, 4 }
 0x41c   : > { %v2818_v38 = vpop.permute.xlu1 %2817  ;;  %v3263_v56 = vsel %vm6172_vm15, %v3261_v45, %v2814_v58  ;;  %v2023_v45 = vsel %vm912_vm0, %v2003_v41, %v2022_v5  ;;  %vm6173_vm15 = vcmask 539648   ;;  %v5393_v41 = vperm.slane %v2047_v19, %v4515_v10 }
 0x41d   : > { %v3265_v51 = vsel %vm6171_vm14, %v3263_v56, %v2818_v38  ;;  %vm6174_vm14 = vcmask 523264   ;;  %v2035_v43 = vsel %vm912_vm0, %v6297_v36, %v2034_v6  ;;  %v2030_v58 = vrot.slane %v1991_v11, 4  ;;  %v6304_v6 = vld [vmem:[#allocation46_spill] sm:$0xff] }
 0x41e   : > { %v3267_v4 = vsel %vm6170_vm13, %v3265_v51, %v5239_v22  ;;  %v2015_v22 = vperm.slane %v2007_v46, %v4551_v39  ;;  %vm6175_vm13 = vcmask 506880   ;;  %v2058_v36 = vrot.slane %v6299_v63, 4 }
 0x41f   : > { %v2081_v38 = vsel %vm912_vm0, %v2080_v14, %v2039_v37  ;;  %v2027_v56 = vsel %vm912_vm0, %v5340_v60, %v2026_v50  ;;  %v2111_v61 = vperm.slane %v2105_v25, %v4551_v39  ;;  %v5415_v32 = vperm.slane %v2107_v18, %v4551_v39  ;;  %v6301_v60 = vld [vmem:[#allocation69_spill] sm:$0xff] }
 0x420   : > { %v2028_v7 = vrot.slane %v2015_v22, 4  ;;  %v2031_v62 = vsel %vm912_vm0, %v2015_v22, %v2030_v58  ;;  %v5418_v1 = vperm.slane %v2035_v43, %v4515_v10  ;;  %v2168_v51 = vrot.slane %v6301_v60, 4  ;;  %v6305_v43 = vld [vmem:[#allocation18_spill] sm:$0xff] }
 0x421   : > { %2993 = vrot.lane.b32.xlu0 %v2021_v27, %s3873_s2  ;;  %3001 = vrot.lane.b32.xlu2 %v2025_v49, %s3874_s3  ;;  %v2116_v46 = vrot.slane %v5403_v20, 4  ;;  %v2087_v57 = vperm.slane %v2081_v38, %v4551_v39  ;;  %v2083_v3 = vsel %vm912_vm0, %v5364_v54, %v2082_v28  ;;  %v2128_v49 = vrot.slane %v2111_v61, 4  ;;  %s6323_s2 = smov 54   ;;  %s6324_s3 = smov 52  }
 0x422   : > { %2997 = vrot.lane.b32.xlu1 %v2023_v45, %s3875_s4  ;;  %v2029_v63 = vsel %vm912_vm0, %v2028_v7, %v1991_v11  ;;  %v2132_v24 = vrot.slane %v5415_v32, 4  ;;  %v2092_v22 = vrot.slane %v5393_v41, 4  ;;  %v2169_v11 = vsel %vm912_vm0, %v2168_v51, %v6304_v6  ;;  %v6308_v51 = vld [vmem:[#allocation14_spill] sm:$0xff]  ;;  %s6325_s4 = smov 56  }
 0x423   : > { %v5390_v34 = vpop.permute.xlu2 %2869  ;;  %v2826_v26 = vpop.permute.xlu0 %2825  ;;  %v2091_v54 = vperm.slane %v2083_v3, %v4551_v39  ;;  %v5457_v7 = vperm.slane %v2169_v11, %v4515_v10  ;;  %v2094_v18 = vrot.slane %v5418_v1, 4  ;;  %v2144_v50 = vrot.slane %v4935_v52, 4 }
 0x424   : > { %v2830_v8 = vpop.permute.xlu1 %2829  ;;  %v3269_v29 = vsel %vm6175_vm13, %v3267_v4, %v2826_v26  ;;  %v6302_v4 = vld [vmem:[#allocation42_spill] sm:$0xff]  ;;  %vm6176_vm13 = vcmask 588800   ;;  %v2130_v26 = vrot.slane %v2087_v57, 4  ;;  %v2093_v14 = vsel %vm912_vm0, %v2092_v22, %v5418_v1 }
 0x425   : > { %v3271_v59 = vsel %vm6174_vm14, %v3269_v29, %v2830_v8  ;;  %vm6177_vm14 = vcmask 572416   ;;  %v2156_v19 = vrot.slane %v6302_v4, 4  ;;  %v2129_v29 = vsel %vm912_vm0, %v2128_v49, %v2087_v57 }
 0x426   : > { %v3273_v35 = vsel %vm6173_vm15, %v3271_v59, %v5283_v12  ;;  %v2059_v12 = vsel %vm912_vm0, %v4604_v31, %v2058_v36  ;;  %vm6178_vm15 = vcmask 556032   ;;  %v2181_v31 = vsel %vm912_vm0, %v2180_v17, %v6303_v2 }
 0x427   : > { %v2067_v30 = vperm.slane %v2059_v12, %v4515_v10  ;;  %v5448_v40 = vperm.slane %v2181_v31, %v4515_v10  ;;  %v2157_v8 = vsel %vm912_vm0, %v2156_v19, %v6305_v43  ;;  %v2133_v59 = vsel %vm912_vm0, %v2132_v24, %v2091_v54 }
 0x428   : > { %v2131_v25 = vsel %vm912_vm0, %v2111_v61, %v2130_v26  ;;  %v2099_v58 = vperm.slane %v2093_v14, %v4551_v39  ;;  %v2134_v57 = vrot.slane %v2091_v54, 4  ;;  %v2170_v3 = vrot.slane %v6304_v6, 4  ;;  %v6312_v6 = vld [vmem:[#allocation35_spill] sm:$0xff] }
 0x429   : > { %3005 = vrot.lane.b32.xlu0 %v2027_v56, %s3876_s5  ;;  %3013 = vrot.lane.b32.xlu2 %v2031_v62, %s3877_s11  ;;  %v2117_v37 = vsel %vm912_vm0, %v2116_v46, %v2067_v30  ;;  %v2216_v28 = vrot.slane %v5448_v40, 4  ;;  %v2118_v36 = vrot.slane %v2067_v30, 4  ;;  %v2145_v46 = vsel %vm912_vm0, %v2144_v50, %v6308_v51  ;;  %s6326_s5 = smov 60   ;;  %s6327_s11 = smov 58  }
 0x42a   : > { %3009 = vrot.lane.b32.xlu1 %v2029_v63, %s3878_s13  ;;  %v2138_v19 = vrot.slane %v2099_v58, 4  ;;  %v2182_v30 = vrot.slane %v6303_v2, 4  ;;  %v2151_v22 = vperm.slane %v2145_v46, %v4515_v10  ;;  %v2268_v11 = vrot.slane %v6312_v6, 4  ;;  %s6330_s13 = smov 62  }
 0x42b   : > { %v5432_v5 = vpop.permute.xlu2 %2881  ;;  %v2838_v9 = vpop.permute.xlu0 %2837  ;;  %v2119_v61 = vsel %vm912_vm0, %v5403_v20, %v2118_v36  ;;  %v2217_v63 = vsel %vm912_vm0, %v2216_v28, %v5457_v7  ;;  %v2095_v20 = vsel %vm912_vm0, %v5393_v41, %v2094_v18  ;;  %v2171_v41 = vsel %vm912_vm0, %v6301_v60, %v2170_v3 }
 0x42c   : > { %v2842_v15 = vpop.permute.xlu1 %2841  ;;  %v3275_v27 = vsel %vm6178_vm15, %v3273_v35, %v2838_v9  ;;  %v2163_v35 = vperm.slane %v2157_v8, %v4515_v10  ;;  %vm6179_vm15 = vcmask 637952   ;;  %v2127_v49 = vperm.slane %v2119_v61, %v4551_v39 }
 0x42d   : > { %v3277_v45 = vsel %vm6177_vm14, %v3275_v27, %v2842_v15  ;;  %vm6180_vm14 = vcmask 621568   ;;  %v2135_v15 = vsel %vm912_vm0, %v5415_v32, %v2134_v57  ;;  %v5490_v24 = vperm.slane %v2217_v63, %v4551_v39  ;;  %v6316_v63 = vld [vmem:[#allocation30_spill] sm:$0xff] }
 0x42e   : > { %v3279_v42 = vsel %vm6176_vm13, %v3277_v45, %v5319_v0  ;;  %vm6181_vm13 = vcmask 605184   ;;  %v2123_v0 = vperm.slane %v2117_v37, %v4551_v39  ;;  %v2192_v9 = vrot.slane %v2163_v35, 4 }
 0x42f   : > { %v2218_v32 = vrot.slane %v5457_v7, 4  ;;  %v2103_v2 = vperm.slane %v2095_v20, %v4551_v39  ;;  %v2183_v60 = vsel %vm912_vm0, %v4969_v23, %v2182_v30  ;;  %v2140_v8 = vrot.slane %v2127_v49, 4  ;;  %v6319_v30 = vld [vmem:[#allocation66_spill] sm:$0xff] }
 0x430   : > { %v2136_v12 = vrot.slane %v2123_v0, 4  ;;  %v2139_v27 = vsel %vm912_vm0, %v2123_v0, %v2138_v19  ;;  %v2193_v26 = vsel %vm912_vm0, %v2192_v9, %v2151_v22  ;;  %v2194_v7 = vrot.slane %v2151_v22, 4  ;;  %v6318_v19 = vld [vmem:[#allocation58_spill] sm:$0xff] }
 0x431   : > { %3017 = vrot.lane.b32.xlu0 %v2129_v29, %s3879_s14  ;;  %3025 = vrot.lane.b32.xlu2 %v2133_v59, %s6306_s17  ;;  %v2240_v29 = vrot.slane %v5490_v24, 4  ;;  %v2146_v59 = vrot.slane %v6308_v51, 4  ;;  %v2142_v0 = vrot.slane %v2103_v2, 4  ;;  %v2199_v18 = vperm.slane %v2193_v26, %v4551_v39  ;;  %s6331_s17 = smov 66  }
 0x432   : > { %3021 = vrot.lane.b32.xlu1 %v2131_v25, %s6307_s23  ;;  %v2137_v45 = vsel %vm912_vm0, %v2136_v12, %v2099_v58  ;;  %v2219_v23 = vsel %vm912_vm0, %v5448_v40, %v2218_v32  ;;  %v2191_v28 = vperm.slane %v2183_v60, %v4515_v10  ;;  %v2292_v36 = vrot.slane %v4947_v48, 4  ;;  %v6320_v60 = vld [vmem:[#allocation10_spill] sm:$0xff]  ;;  %s6333_s23 = smov 64  }
 0x433   : > { %v5469_v17 = vpop.permute.xlu2 %2893  ;;  %v2850_v38 = vpop.permute.xlu0 %2849  ;;  %v2143_v40 = vsel %vm912_vm0, %v2127_v49, %v2142_v0  ;;  %v2256_v51 = vrot.slane %v6316_v63, 4  ;;  %v2280_v20 = vrot.slane %v6319_v30, 4 }
 0x434   : > { %v2854_v56 = vpop.permute.xlu1 %2853  ;;  %v3281_v62 = vsel %vm6181_vm13, %v3279_v42, %v2850_v38  ;;  %vm6182_vm13 = vcmask 687104   ;;  %v2195_v38 = vsel %vm912_vm0, %v2163_v35, %v2194_v7  ;;  %v2227_v35 = vperm.slane %v2219_v23, %v4551_v39 }
 0x435   : > { %v3283_v1 = vsel %vm6180_vm14, %v3281_v62, %v2854_v56  ;;  %vm6183_vm14 = vcmask 670720   ;;  %v2147_v56 = vsel %vm912_vm0, %v4935_v52, %v2146_v59  ;;  %v6313_v62 = vld [vmem:[#allocation64_spill] sm:$0xff]  ;;  %v2203_v52 = vperm.slane %v2195_v38, %v4551_v39 }
 0x436   : > { %v3285_v31 = vsel %vm6179_vm15, %v3283_v1, %v5353_v16  ;;  %v2158_v16 = vrot.slane %v6305_v43, 4  ;;  %vm6184_vm15 = vcmask 654336   ;;  %v2269_v61 = vsel %vm912_vm0, %v2268_v11, %v6313_v62 }
 0x437   : > { %v2141_v1 = vsel %vm912_vm0, %v2140_v8, %v2103_v2  ;;  %v2228_v57 = vrot.slane %v2191_v28, 4  ;;  %v2242_v11 = vrot.slane %v2199_v18, 4  ;;  %v2270_v26 = vrot.slane %v6313_v62, 4 }
 0x438   : > { %v2159_v37 = vsel %vm912_vm0, %v6302_v4, %v2158_v16  ;;  %v2179_v4 = vperm.slane %v2171_v41, %v4515_v10 }
 0x439   : > { %3029 = vrot.lane.b32.xlu0 %v2135_v15, %s6309_s24  ;;  %3037 = vrot.lane.b32.xlu2 %v2139_v27, %s6310_s25  ;;  %v2167_v58 = vperm.slane %v2159_v37, %v4515_v10  ;;  %v2155_v15 = vperm.slane %v2147_v56, %v4515_v10  ;;  %v5544_v27 = vperm.slane %v2269_v61, %v4515_v10  ;;  %v2246_v37 = vrot.slane %v2203_v52, 4  ;;  %s6337_s24 = smov 68   ;;  %s6338_s25 = smov 72  }
 0x43a   : > { %3033 = vrot.lane.b32.xlu1 %v2137_v45, %s6311_s26  ;;  %v2230_v12 = vrot.slane %v2179_v4, 4  ;;  %v2244_v45 = vrot.slane %v2227_v35, 4  ;;  %v2229_v41 = vsel %vm912_vm0, %v2228_v57, %v2179_v4  ;;  %s6339_s26 = smov 70  }
 0x43b   : > { %v5505_v54 = vpop.permute.xlu2 %2905  ;;  %v2862_v42 = vpop.permute.xlu0 %2861  ;;  %v2204_v46 = vrot.slane %v2167_v58, 4  ;;  %v2247_v59 = vsel %vm912_vm0, %v2227_v35, %v2246_v37  ;;  %v2235_v7 = vperm.slane %v2229_v41, %v4551_v39 }
 0x43c   : > { %v2866_v14 = vpop.permute.xlu1 %2865  ;;  %v3287_v43 = vsel %vm6184_vm15, %v3285_v31, %v2862_v42  ;;  %v2293_v31 = vsel %vm912_vm0, %v2292_v36, %v6318_v19  ;;  %vm6185_vm15 = vcmask 736256   ;;  %v2231_v32 = vsel %vm912_vm0, %v2191_v28, %v2230_v12 }
 0x43d   : > { %v3289_v25 = vsel %vm6183_vm14, %v3287_v43, %v2866_v14  ;;  %vm6186_vm14 = vcmask 719872   ;;  %v5551_v2 = vperm.slane %v2293_v31, %v4515_v10  ;;  %v2257_v14 = vsel %vm912_vm0, %v2256_v51, %v6320_v60 }
 0x43e   : > { %v3291_v50 = vsel %vm6182_vm13, %v3289_v25, %v5390_v34  ;;  %v2241_v34 = vsel %vm912_vm0, %v2240_v29, %v2199_v18  ;;  %vm6187_vm13 = vcmask 703488   ;;  %v2294_v43 = vrot.slane %v6318_v19, 4  ;;  %v6321_v25 = vld [vmem:[#allocation54_spill] sm:$0xff] }
 0x43f   : > { %v2205_v8 = vsel %vm912_vm0, %v2204_v46, %v2155_v15  ;;  %v2243_v29 = vsel %vm912_vm0, %v5490_v24, %v2242_v11  ;;  %v5565_v4 = vperm.slane %v2231_v32, %v4551_v39  ;;  %v2281_v0 = vsel %vm912_vm0, %v2280_v20, %v6321_v25 }
 0x440   : > { %v2245_v18 = vsel %vm912_vm0, %v2244_v45, %v2203_v52  ;;  %v2304_v24 = vrot.slane %v5544_v27, 4  ;;  %v2328_v23 = vrot.slane %v5551_v2, 4  ;;  %v2282_v28 = vrot.slane %v6321_v25, 4 }
 0x441   : > { %3041 = vrot.lane.b32.xlu0 %v2141_v1, %s6314_s27  ;;  %3049 = vrot.lane.b32.xlu2 %v2241_v34, %s6315_s28  ;;  %v2211_v56 = vperm.slane %v2205_v8, %v4551_v39  ;;  %v2287_v61 = vperm.slane %v2281_v0, %v4515_v10  ;;  %v2248_v34 = vrot.slane %v2235_v7, 4  ;;  %v2252_v12 = vrot.slane %v5565_v4, 4  ;;  %s6341_s27 = smov 74   ;;  %s6342_s28 = smov 78  }
 0x442   : > { %3045 = vrot.lane.b32.xlu1 %v2143_v40, %s6317_s29  ;;  %v2263_v40 = vperm.slane %v2257_v14, %v4515_v10  ;;  %v2258_v52 = vrot.slane %v6320_v60, 4  ;;  %v2271_v19 = vsel %vm912_vm0, %v6312_v6, %v2270_v26  ;;  %s6344_s29 = smov 76  }
 0x443   : > { %v5539_v9 = vpop.permute.xlu2 %2917  ;;  %v2874_v3 = vpop.permute.xlu0 %2873  ;;  %v2329_v57 = vsel %vm912_vm0, %v2328_v23, %v2287_v61  ;;  %v2250_v31 = vrot.slane %v2211_v56, 4  ;;  %v2330_v41 = vrot.slane %v2287_v61, 4 }
 0x444   : > { %v2878_v49 = vpop.permute.xlu1 %2877  ;;  %v3293_v16 = vsel %vm6187_vm13, %v3291_v50, %v2874_v3  ;;  %v2295_v50 = vsel %vm912_vm0, %v4947_v48, %v2294_v43  ;;  %vm6188_vm13 = vcmask 785408   ;;  %v2305_v3 = vsel %vm912_vm0, %v2304_v24, %v2263_v40 }
 0x445   : > { %v3295_v22 = vsel %vm6186_vm14, %v3293_v16, %v2878_v49  ;;  %vm6189_vm14 = vcmask 769024   ;;  %v5587_v35 = vperm.slane %v2295_v50, %v4515_v10  ;;  %v2259_v20 = vsel %vm912_vm0, %v6316_v63, %v2258_v52 }
 0x446   : > { %v3297_v42 = vsel %vm6185_vm15, %v3295_v22, %v5432_v5  ;;  %v2206_v5 = vrot.slane %v2155_v15, 4  ;;  %vm6190_vm15 = vcmask 752640   ;;  %v2283_v15 = vsel %vm912_vm0, %v6319_v30, %v2282_v28 }
 0x447   : > { %v2249_v49 = vsel %vm912_vm0, %v2248_v34, %v2211_v56  ;;  %v2251_v22 = vsel %vm912_vm0, %v2235_v7, %v2250_v31  ;;  %v2335_v6 = vperm.slane %v2329_v57, %v4551_v39  ;;  %v2279_v63 = vperm.slane %v2271_v19, %v4515_v10  ;;  %v6334_v34 = vld [vmem:[#allocation22_spill] sm:$0xff] }
 0x448   : > { %v2207_v62 = vsel %vm912_vm0, %v2167_v58, %v2206_v5  ;;  %v2311_v30 = vperm.slane %v2305_v3, %v4551_v39  ;;  %v2291_v45 = vperm.slane %v2283_v15, %v4515_v10  ;;  %v2267_v37 = vperm.slane %v2259_v20, %v4515_v10 }
 0x449   : > { %3053 = vrot.lane.b32.xlu0 %v2243_v29, %s6322_s30  ;;  %3061 = vrot.lane.b32.xlu2 %v2247_v59, %s6323_s2  ;;  %v2215_v58 = vperm.slane %v2207_v62, %v4551_v39  ;;  %v2352_v29 = vrot.slane %v2335_v6, 4  ;;  %v2331_v59 = vsel %vm912_vm0, %v5551_v2, %v2330_v41  ;;  %v2316_v7 = vrot.slane %v2279_v63, 4  ;;  %v6329_v62 = vld [vmem:[#allocation26_spill] sm:$0xff]  ;;  %s6348_s30 = smov 80   ;;  %s6349_s2 = smov 84  }
 0x44a   : > { %3057 = vrot.lane.b32.xlu1 %v2245_v18, %s6324_s3  ;;  %v2404_v5 = vrot.slane %v4847_v47, 4  ;;  %v2354_v25 = vrot.slane %v2311_v30, 4  ;;  %v6328_v18 = vld [vmem:[#allocation44_spill] sm:$0xff]  ;;  %v2392_v28 = vrot.slane %v4631_v13, 4  ;;  %v2339_v2 = vperm.slane %v2331_v59, %v4551_v39  ;;  %s6351_s3 = smov 82  }
 0x44b   : > { %v5578_v36 = vpop.permute.xlu2 %2929  ;;  %v2886_v38 = vpop.permute.xlu0 %2885  ;;  %v2253_v16 = vsel %vm912_vm0, %v2252_v12, %v2215_v58  ;;  %v2254_v14 = vrot.slane %v2215_v58, 4  ;;  %v2380_v24 = vrot.slane %v6328_v18, 4  ;;  %v2368_v61 = vrot.slane %v6329_v62, 4 }
 0x44c   : > { %v2890_v1 = vpop.permute.xlu1 %2889  ;;  %v3299_v48 = vsel %vm6190_vm15, %v3297_v42, %v2886_v38  ;;  %vm6191_vm15 = vcmask 834560   ;;  %v2306_v42 = vrot.slane %v2263_v40, 4  ;;  %v2355_v38 = vsel %vm912_vm0, %v2335_v6, %v2354_v25 }
 0x44d   : > { %v3301_v51 = vsel %vm6189_vm14, %v3299_v48, %v2890_v1  ;;  %vm6192_vm14 = vcmask 818176   ;;  %v2255_v50 = vsel %vm912_vm0, %v5565_v4, %v2254_v14  ;;  %v2318_v4 = vrot.slane %v2267_v37, 4 }
 0x44e   : > { %v3303_v46 = vsel %vm6188_vm13, %v3301_v51, %v5469_v17  ;;  %v2340_v17 = vrot.slane %v5587_v35, 4  ;;  %vm6193_vm13 = vcmask 801792   ;;  %v2307_v23 = vsel %vm912_vm0, %v5544_v27, %v2306_v42  ;;  %v6332_v27 = vld [vmem:[#allocation53_spill] sm:$0xff] }
 0x44f   : > { %v2405_v1 = vsel %vm912_vm0, %v2404_v5, %v6332_v27  ;;  %v2317_v48 = vsel %vm912_vm0, %v2316_v7, %v2267_v37  ;;  %v2381_v12 = vsel %vm912_vm0, %v2380_v24, %v6334_v34  ;;  %v2342_v40 = vrot.slane %v2291_v45, 4 }
 0x450   : > { %v2341_v43 = vsel %vm912_vm0, %v2340_v17, %v2291_v45  ;;  %v2315_v58 = vperm.slane %v2307_v23, %v4551_v39  ;;  %v2356_v3 = vrot.slane %v2339_v2, 4  ;;  %v2411_v15 = vperm.slane %v2405_v1, %v4515_v10  ;;  %v6336_v45 = vld [vmem:[#allocation50_spill] sm:$0xff] }
 0x451   : > { %3065 = vrot.lane.b32.xlu0 %v2249_v49, %s6325_s4  ;;  %3073 = vrot.lane.b32.xlu2 %v2253_v16, %s6326_s5  ;;  %v5633_v56 = vperm.slane %v2341_v43, %v4551_v39  ;;  %v2319_v16 = vsel %vm912_vm0, %v2279_v63, %v2318_v4  ;;  %v2406_v17 = vrot.slane %v6332_v27, 4  ;;  %v2323_v6 = vperm.slane %v2317_v48, %v4551_v39  ;;  %s6353_s4 = smov 86   ;;  %s6354_s5 = smov 90  }
 0x452   : > { %3069 = vrot.lane.b32.xlu1 %v2251_v22, %s6327_s11  ;;  %v2343_v22 = vsel %vm912_vm0, %v5587_v35, %v2342_v40  ;;  %v2369_v41 = vsel %vm912_vm0, %v2368_v61, %v6336_v45  ;;  %v2358_v42 = vrot.slane %v2315_v58, 4  ;;  %v2382_v63 = vrot.slane %v6334_v34, 4  ;;  %s6355_s11 = smov 88  }
 0x453   : > { %v5613_v32 = vpop.permute.xlu2 %2941  ;;  %v2898_v11 = vpop.permute.xlu0 %2897  ;;  %v2360_v20 = vrot.slane %v5633_v56, 4  ;;  %v2327_v35 = vperm.slane %v2319_v16, %v4551_v39  ;;  %v2440_v14 = vrot.slane %v2411_v15, 4  ;;  %v2351_v43 = vperm.slane %v2343_v22, %v4551_v39 }
 0x454   : > { %v2902_v26 = vpop.permute.xlu1 %2901  ;;  %v3305_v60 = vsel %vm6193_vm13, %v3303_v46, %v2898_v11  ;;  %vm6194_vm13 = vcmask 883712   ;;  %v6335_v46 = vld [vmem:[#allocation48_spill] sm:$0xff]  ;;  %v2387_v11 = vperm.slane %v2381_v12, %v4515_v10  ;;  %v2383_v59 = vsel %vm912_vm0, %v6328_v18, %v2382_v63 }
 0x455   : > { %v3307_v8 = vsel %vm6192_vm14, %v3305_v60, %v2902_v26  ;;  %vm6195_vm14 = vcmask 867328   ;;  %v2393_v57 = vsel %vm912_vm0, %v2392_v28, %v6335_v46  ;;  %v2357_v26 = vsel %vm912_vm0, %v2356_v3, %v2315_v58 }
 0x456   : > { %v3309_v0 = vsel %vm6191_vm15, %v3307_v8, %v5505_v54  ;;  %v2353_v54 = vsel %vm912_vm0, %v2352_v29, %v2311_v30  ;;  %vm6196_vm15 = vcmask 850944   ;;  %v2399_v37 = vperm.slane %v2393_v57, %v4515_v10 }
 0x457   : > { %v2361_v60 = vsel %vm912_vm0, %v2360_v20, %v2323_v6  ;;  %v2370_v8 = vrot.slane %v6336_v45, 4  ;;  %v2375_v29 = vperm.slane %v2369_v41, %v4515_v10  ;;  %v2416_v7 = vrot.slane %v2387_v11, 4  ;;  %v6343_v20 = vld [vmem:[#allocation67_spill] sm:$0xff] }
 0x458   : > { %v2442_v5 = vrot.slane %v2399_v37, 4  ;;  %v2407_v25 = vsel %vm912_vm0, %v4847_v47, %v2406_v17  ;;  %v2362_v28 = vrot.slane %v2323_v6, 4  ;;  %v2364_v18 = vrot.slane %v2351_v43, 4 }
 0x459   : > { %3077 = vrot.lane.b32.xlu0 %v2255_v50, %s6330_s13  ;;  %3085 = vrot.lane.b32.xlu2 %v2355_v38, %s6331_s17  ;;  %v2366_v38 = vrot.slane %v2327_v35, 4  ;;  %v2441_v61 = vsel %vm912_vm0, %v2440_v14, %v2399_v37  ;;  %v5687_v4 = vperm.slane %v2383_v59, %v4515_v10  ;;  %v2415_v47 = vperm.slane %v2407_v25, %v4515_v10  ;;  %v6347_v59 = vld [vmem:[#allocation41_spill] sm:$0xff]  ;;  %s6357_s13 = smov 92   ;;  %s6358_s17 = smov 96  }
 0x45a   : > { %3081 = vrot.lane.b32.xlu1 %v2353_v54, %s6333_s23  ;;  %v2443_v54 = vsel %vm912_vm0, %v2411_v15, %v2442_v5  ;;  %v2516_v27 = vrot.slane %v4983_v44, 4  ;;  %v2371_v48 = vsel %vm912_vm0, %v6329_v62, %v2370_v8  ;;  %v2418_v34 = vrot.slane %v2375_v29, 4  ;;  %v6346_v8 = vld [vmem:[#allocation19_spill] sm:$0xff] }
 0x45b   : > { %v5645_v51 = vpop.permute.xlu2 %2953  ;;  %v2910_v52 = vpop.permute.xlu0 %2909  ;;  %v2394_v12 = vrot.slane %v6335_v46, 4  ;;  %v2417_v40 = vsel %vm912_vm0, %v2416_v7, %v2375_v29  ;;  %v2367_v58 = vsel %vm912_vm0, %v2351_v43, %v2366_v38  ;;  %v2447_v57 = vperm.slane %v2441_v61, %v4551_v39 }
 0x45c   : > { %v2914_v19 = vpop.permute.xlu1 %2913  ;;  %v3311_v31 = vsel %vm6196_vm15, %v3309_v0, %v2910_v52  ;;  %vm6197_vm15 = vcmask 932864   ;;  %v2363_v52 = vsel %vm912_vm0, %v5633_v56, %v2362_v28  ;;  %v2365_v62 = vsel %vm912_vm0, %v2364_v18, %v2327_v35 }
 0x45d   : > { %v3313_v49 = vsel %vm6195_vm14, %v3311_v31, %v2914_v19  ;;  %vm6198_vm14 = vcmask 916480   ;;  %v2451_v19 = vperm.slane %v2443_v54, %v4551_v39  ;;  %v6340_v31 = vld [vmem:[#allocation37_spill] sm:$0xff]  ;;  %v2428_v56 = vrot.slane %v5687_v4, 4 }
 0x45e   : > { %v3315_v30 = vsel %vm6194_vm13, %v3313_v49, %v5539_v9  ;;  %v2359_v9 = vsel %vm912_vm0, %v2339_v2, %v2358_v42  ;;  %vm6199_vm13 = vcmask 900096   ;;  %v2492_v3 = vrot.slane %v6340_v31, 4  ;;  %v6345_v49 = vld [vmem:[#allocation70_spill] sm:$0xff] }
 0x45f   : > { %v2452_v46 = vrot.slane %v2415_v47, 4  ;;  %v2517_v15 = vsel %vm912_vm0, %v2516_v27, %v6343_v20  ;;  %v2504_v16 = vrot.slane %v6345_v49, 4  ;;  %v2423_v22 = vperm.slane %v2417_v40, %v4551_v39 }
 0x460   : > { %v2419_v6 = vsel %vm912_vm0, %v2387_v11, %v2418_v34  ;;  %v2464_v37 = vrot.slane %v2447_v57, 4  ;;  %v2468_v42 = vrot.slane %v2451_v19, 4  ;;  %v2379_v63 = vperm.slane %v2371_v48, %v4515_v10 }
 0x461   : > { %3089 = vrot.lane.b32.xlu0 %v2357_v26, %s6337_s24  ;;  %3097 = vrot.lane.b32.xlu2 %v2361_v60, %s6338_s25  ;;  %v5721_v26 = vperm.slane %v2517_v15, %v4515_v10  ;;  %v2427_v14 = vperm.slane %v2419_v6, %v4551_v39  ;;  %v2466_v43 = vrot.slane %v2423_v22, 4  ;;  %v2493_v29 = vsel %vm912_vm0, %v2492_v3, %v6346_v8  ;;  %s6359_s24 = smov 94   ;;  %s6365_s25 = smov 98  }
 0x462   : > { %3093 = vrot.lane.b32.xlu1 %v2359_v9, %s6339_s26  ;;  %v2429_v9 = vsel %vm912_vm0, %v2428_v56, %v2379_v63  ;;  %v2505_v7 = vsel %vm912_vm0, %v2504_v16, %v6347_v59  ;;  %v2465_v5 = vsel %vm912_vm0, %v2464_v37, %v2423_v22  ;;  %v2430_v48 = vrot.slane %v2379_v63, 4  ;;  %s6366_s26 = smov 102  }
 0x463   : > { %v5680_v0 = vpop.permute.xlu2 %2965  ;;  %v2922_v24 = vpop.permute.xlu0 %2921  ;;  %v2469_v25 = vsel %vm912_vm0, %v2468_v42, %v2427_v14  ;;  %v2435_v38 = vperm.slane %v2429_v9, %v4551_v39  ;;  %v2511_v18 = vperm.slane %v2505_v7, %v4515_v10  ;;  %v2470_v3 = vrot.slane %v2427_v14, 4 }
 0x464   : > { %v2926_v50 = vpop.permute.xlu1 %2925  ;;  %v3317_v23 = vsel %vm6199_vm13, %v3315_v30, %v2922_v24  ;;  %vm3326_vm13 = vcmask 982016   ;;  %v2552_v24 = vrot.slane %v5721_v26, 4  ;;  %v2431_v56 = vsel %vm912_vm0, %v5687_v4, %v2430_v48 }
 0x465   : > { %v3319_v2 = vsel %vm6198_vm14, %v3317_v23, %v2926_v50  ;;  %vm3324_vm14 = vcmask 965632   ;;  %v2467_v50 = vsel %vm912_vm0, %v2447_v57, %v2466_v43  ;;  %v6350_v23 = vld [vmem:[#allocation33_spill] sm:$0xff]  ;;  %v1904_v15 = vrot.slane %v5246_v55, 4 }
 0x466   : > { %v3321_v1 = vsel %vm6197_vm15, %v3319_v2, %v5578_v36  ;;  %v2395_v36 = vsel %vm912_vm0, %v4631_v13, %v2394_v12  ;;  %vm3322_vm15 = vcmask 949248   ;;  %v2480_v28 = vrot.slane %v6350_v23, 4 }
 0x467   : > { %v2403_v30 = vperm.slane %v2395_v36, %v4515_v10  ;;  %v2499_v2 = vperm.slane %v2493_v29, %v4515_v10  ;;  %v2553_v40 = vsel %vm912_vm0, %v2552_v24, %v2511_v18  ;;  %v2474_v36 = vrot.slane %v2435_v38, 4 }
 0x468   : > { %v5766_v22 = vperm.slane %v2553_v40, %v4551_v39  ;;  %v2506_v6 = vrot.slane %v6347_v59, 4  ;;  %v2439_v42 = vperm.slane %v2431_v56, %v4551_v39 }
 0x469   : > { %3101 = vrot.lane.b32.xlu0 %v2363_v52, %s6341_s27  ;;  %3109 = vrot.lane.b32.xlu2 %v2367_v58, %s6342_s28  ;;  %v2453_v35 = vsel %vm912_vm0, %v2452_v46, %v2403_v30  ;;  %v2454_v61 = vrot.slane %v2403_v30, 4  ;;  %v2494_v52 = vrot.slane %v6346_v8, 4  ;;  %v6352_v58 = vld [vmem:[#allocation16_spill] sm:$0xff]  ;;  %v2518_v46 = vrot.slane %v6343_v20, 4  ;;  %s6367_s27 = smov 100   ;;  %s6368_s28 = smov 104  }
 0x46a   : > { %3105 = vrot.lane.b32.xlu1 %v2365_v62, %s6344_s29  ;;  %v2481_v57 = vsel %vm912_vm0, %v2480_v28, %v6352_v58  ;;  %v2528_v62 = vrot.slane %v2499_v2, 4  ;;  %v2576_v14 = vrot.slane %v5766_v22, 4  ;;  %v2482_v43 = vrot.slane %v6352_v58, 4  ;;  %v6361_v58 = vld [vmem:[#allocation60_spill] sm:$0xff]  ;;  %s6369_s29 = smov 108  }
 0x46b   : > { %v5713_v17 = vpop.permute.xlu2 %2977  ;;  %v2934_v13 = vpop.permute.xlu0 %2933  ;;  %v2455_v34 = vsel %vm912_vm0, %v2415_v47, %v2454_v61  ;;  %v2471_v47 = vsel %vm912_vm0, %v2451_v19, %v2470_v3  ;;  %v2487_v30 = vperm.slane %v2481_v57, %v4515_v10  ;;  %v2495_v55 = vsel %vm912_vm0, %v6340_v31, %v2494_v52 }
 0x46c   : > { %v2938_v45 = vpop.permute.xlu1 %2937  ;;  %v3323_v41 = vsel %vm3322_vm15, %v3321_v1, %v2934_v13  ;;  %v2463_v13 = vperm.slane %v2455_v34, %v4551_v39  ;;  %v2519_v4 = vsel %vm912_vm0, %v4983_v44, %v2518_v46  ;;  %v2507_v19 = vsel %vm912_vm0, %v6345_v49, %v2506_v6  ;;  %v6360_v34 = vld [vmem:[#allocation27_spill] sm:$0xff] }
 0x46d   : > { %v3325_v60 = vsel %vm3324_vm14, %v3323_v41, %v2938_v45  ;;  %v1905_v41 = vsel %vm912_vm0, %v1904_v15, %v5234_v21  ;;  %v2529_v63 = vsel %vm912_vm0, %v2528_v62, %v2487_v30  ;;  %v2530_v49 = vrot.slane %v2487_v30, 4 }
 0x46e   : > { %v5728_v11 = vsel %vm3326_vm13, %v3325_v60, %v5613_v32  ;;  %v2459_v32 = vperm.slane %v2453_v35, %v4551_v39  ;;  %v2554_v60 = vrot.slane %v2511_v18, 4  ;;  %v2476_v44 = vrot.slane %v2463_v13, 4 }
 0x46f   : > { %v2527_v9 = vperm.slane %v2519_v4, %v4515_v10  ;;  %v2503_v21 = vperm.slane %v2495_v55, %v4515_v10  ;;  %v2535_v29 = vperm.slane %v2529_v63, %v4551_v39  ;;  %v2478_v24 = vrot.slane %v2439_v42, 4 }
 0x470   : > { %v2472_v12 = vrot.slane %v2459_v32, 4  ;;  %v2475_v16 = vsel %vm912_vm0, %v2459_v32, %v2474_v36  ;;  %v2555_v7 = vsel %vm912_vm0, %v5721_v26, %v2554_v60  ;;  %v6356_v32 = vld [vmem:[#allocation36_spill] sm:$0xff]  ;;  %v2483_v61 = vsel %vm912_vm0, %v6350_v23, %v2482_v43 }
 0x471   : > { %3113 = vrot.lane.b32.xlu0 %v2465_v5, %s6348_s30  ;;  %3121 = vrot.lane.b32.xlu2 %v2469_v25, %s6349_s2  ;;  %v2515_v5 = vperm.slane %v2507_v19, %v4515_v10  ;;  %v2628_v25 = vrot.slane %v4877_v53, 4  ;;  %v2604_v28 = vrot.slane %v6356_v32, 4  ;;  %v2577_v18 = vsel %vm912_vm0, %v2576_v14, %v2535_v29  ;;  %v6362_v36 = vld [vmem:[#allocation24_spill] sm:$0xff]  ;;  %s6370_s30 = smov 106   ;;  %s6371_s2 = smov 110  }
 0x472   : > { %3117 = vrot.lane.b32.xlu1 %v2467_v50, %s6351_s3  ;;  %v2473_v45 = vsel %vm912_vm0, %v2472_v12, %v2435_v38  ;;  %v2531_v50 = vsel %vm912_vm0, %v2499_v2, %v2530_v49  ;;  %v2477_v38 = vsel %vm912_vm0, %v2476_v44, %v2439_v42  ;;  %v2479_v48 = vsel %vm912_vm0, %v2463_v13, %v2478_v24  ;;  %v6364_v43 = vld [vmem:[#allocation56_spill] sm:$0xff]  ;;  %s6372_s3 = smov 114  }
 0x473   : > { %v5747_v54 = vpop.permute.xlu2 %2989  ;;  %v5749_v27 = vpop.permute.xlu0 %2945  ;;  %v2563_v26 = vperm.slane %v2555_v7, %v4551_v39  ;;  %v2539_v2 = vperm.slane %v2531_v50, %v4551_v39  ;;  %v2592_v12 = vrot.slane %v6360_v34, 4  ;;  %v2540_v40 = vrot.slane %v2503_v21, 4 }
 0x474   : > { %v5751_v1 = vpop.permute.xlu1 %2949  ;;  %v2566_v52 = vrot.slane %v2515_v5, 4  ;;  %v2629_v23 = vsel %vm912_vm0, %v2628_v25, %v6361_v58  ;;  %v2605_v62 = vsel %vm912_vm0, %v2604_v28, %v6362_v36  ;;  %v2491_v56 = vperm.slane %v2483_v61, %v4515_v10 }
 0x475   : > { %v2616_v46 = vrot.slane %v4648_v33, 4  ;;  %v2580_v6 = vrot.slane %v2563_v26, 4  ;;  %v2578_v55 = vrot.slane %v2535_v29, 4  ;;  %v2582_v4 = vrot.slane %v2539_v2, 4 }
 0x476   : > { %v2630_v42 = vrot.slane %v6361_v58, 4  ;;  %v2541_v63 = vsel %vm912_vm0, %v2540_v40, %v2491_v56  ;;  %v2611_v14 = vperm.slane %v2605_v62, %v4515_v10 }
 0x477   : > { %v2617_v49 = vsel %vm912_vm0, %v2616_v46, %v6364_v43 }
 0x478   : > { %v2623_v24 = vperm.slane %v2617_v49, %v4515_v10  ;;  %v2640_v61 = vrot.slane %v2611_v14, 4 }
 0x479   : > { %3125 = vrot.lane.b32.xlu0 %v2471_v47, %s6353_s4  ;;  %3133 = vrot.lane.b32.xlu2 %v2475_v16, %s6354_s5  ;;  %v2567_v16 = vsel %vm912_vm0, %v2527_v9, %v2566_v52  ;;  %s6373_s4 = smov 112   ;;  %s6377_s5 = smov 116  }
 0x47a   : > { %3129 = vrot.lane.b32.xlu1 %v2473_v45, %s6355_s11  ;;  %v5825_v45 = vperm.slane %v2629_v23, %v4515_v10  ;;  %v5834_v60 = vperm.slane %v2567_v16, %v4551_v39  ;;  %v2666_v16 = vrot.slane %v2623_v24, 4  ;;  %s6378_s11 = smov 120  }
 0x47b   : > { %v5780_v20 = vpop.permute.xlu2 %3001  ;;  %v2958_v37 = vpop.permute.xlu0 %2957 }
 0x47c   : > { %v2962_v31 = vpop.permute.xlu1 %2961  ;;  %v3334_v35 = vsel %vm3208_vm1, %v1905_v41, %v2958_v37  ;;  %v6363_v41 = vld [vmem:[#allocation11_spill] sm:$0xff]  ;;  %vm6374_vm1 = vcmask 211968  }
 0x47d   : > { %v3335_v8 = vsel %vm3210_vm2, %v3334_v35, %v2962_v31  ;;  %v2593_v37 = vsel %vm912_vm0, %v2592_v12, %v6363_v41  ;;  %v2579_v31 = vsel %vm912_vm0, %v5766_v22, %v2578_v55  ;;  %v2583_v35 = vsel %vm912_vm0, %v2563_v26, %v2582_v4 }
 0x47e   : > { %v3336_v59 = vsel %vm3212_vm3, %v3335_v8, %v5680_v0  ;;  %v2564_v0 = vrot.slane %v2527_v9, 4  ;;  %v2581_v9 = vsel %vm912_vm0, %v2580_v6, %v2539_v2  ;;  %v2631_v8 = vsel %vm912_vm0, %v4877_v53, %v2630_v42 }
 0x47f   : > { %v2664_v22 = vrot.slane %v5825_v45, 4  ;;  %v2599_v29 = vperm.slane %v2593_v37, %v4515_v10  ;;  %v2588_v53 = vrot.slane %v5834_v60, 4  ;;  %v2618_v26 = vrot.slane %v6364_v43, 4 }
 0x480   : > { %v2565_v30 = vsel %vm912_vm0, %v2564_v0, %v2515_v5  ;;  %v2547_v5 = vperm.slane %v2541_v63, %v4551_v39  ;;  %v2639_v0 = vperm.slane %v2631_v8, %v4515_v10  ;;  %v2594_v46 = vrot.slane %v6363_v41, 4 }
 0x481   : > { %3137 = vrot.lane.b32.xlu0 %v2477_v38, %s6357_s13  ;;  %3145 = vrot.lane.b32.xlu2 %v2577_v18, %s6358_s17  ;;  %v2571_v44 = vperm.slane %v2565_v30, %v4551_v39  ;;  %v2606_v18 = vrot.slane %v6362_v36, 4  ;;  %v2665_v12 = vsel %vm912_vm0, %v2664_v22, %v2623_v24  ;;  %v2641_v52 = vsel %vm912_vm0, %v2640_v61, %v2599_v29  ;;  %s6379_s13 = smov 118  }
 0x482   : > { %3141 = vrot.lane.b32.xlu1 %v2479_v48, %s6359_s24  ;;  %v2586_v40 = vrot.slane %v2547_v5, 4  ;;  %v2619_v58 = vsel %vm912_vm0, %v4648_v33, %v2618_v26  ;;  %v2676_v62 = vrot.slane %v2639_v0, 4  ;;  %v2647_v33 = vperm.slane %v2641_v52, %v4551_v39 }
 0x483   : > { %v5814_v57 = vpop.permute.xlu2 %3013  ;;  %v2970_v3 = vpop.permute.xlu0 %2969  ;;  %v2584_v38 = vrot.slane %v2571_v44, 4  ;;  %v2607_v36 = vsel %vm912_vm0, %v6356_v32, %v2606_v18  ;;  %v2595_v30 = vsel %vm912_vm0, %v6360_v34, %v2594_v46  ;;  %v2667_v42 = vsel %vm912_vm0, %v5825_v45, %v2666_v16 }
 0x484   : > { %v2974_v15 = vpop.permute.xlu1 %2973  ;;  %v3337_v47 = vsel %vm3214_vm4, %v3336_v59, %v2970_v3  ;;  %v2615_v6 = vperm.slane %v2607_v36, %v4515_v10  ;;  %v2675_v49 = vperm.slane %v2667_v42, %v4551_v39  ;;  %vm6375_vm2 = vcmask 228352  }
 0x485   : > { %v3338_v13 = vsel %vm3216_vm5, %v3337_v47, %v2974_v15  ;;  %v2585_v23 = vsel %vm912_vm0, %v2584_v38, %v2547_v5  ;;  %v2642_v15 = vrot.slane %v2599_v29, 4  ;;  %v2627_v47 = vperm.slane %v2619_v58, %v4515_v10 }
 0x486   : > { %v3339_v19 = vsel %vm3218_vm6, %v3338_v13, %v5713_v17  ;;  %v2542_v17 = vrot.slane %v2491_v56, 4  ;;  %v2587_v56 = vsel %vm912_vm0, %v2571_v44, %v2586_v40  ;;  %v2603_v44 = vperm.slane %v2595_v30, %v4515_v10 }
 0x487   : > { %v2643_v34 = vsel %vm912_vm0, %v2611_v14, %v2642_v15  ;;  %v2652_v8 = vrot.slane %v2615_v6, 4  ;;  %v2678_v29 = vrot.slane %v2627_v47, 4  ;;  %vm6376_vm3 = vcmask 244736  }
 0x488   : > { %v2543_v25 = vsel %vm912_vm0, %v2503_v21, %v2542_v17  ;;  %v2654_v10 = vrot.slane %v2603_v44, 4  ;;  %vm6380_vm4 = vcmask 261120   ;;  %vm6381_vm5 = vcmask 277504  }
 0x489   : > { %3149 = vrot.lane.b32.xlu0 %v2579_v31, %s6365_s25  ;;  %3157 = vrot.lane.b32.xlu2 %v2583_v35, %s6366_s26  ;;  %v2551_v2 = vperm.slane %v2543_v25, %v4551_v39  ;;  %v2690_v31 = vrot.slane %v2647_v33, 4  ;;  %v2653_v22 = vsel %vm912_vm0, %v2652_v8, %v2603_v44  ;;  %v2692_v25 = vrot.slane %v2675_v49, 4 }
 0x48a   : > { %3153 = vrot.lane.b32.xlu1 %v2581_v9, %s6367_s27  ;;  %v2659_v38 = vperm.slane %v2653_v22, %v4551_v39  ;;  %v2655_v61 = vsel %vm912_vm0, %v2615_v6, %v2654_v10  ;;  %vm6382_vm6 = vcmask 293888  }
 0x48b   : > { %v5851_v59 = vpop.permute.xlu2 %3025  ;;  %v2982_v7 = vpop.permute.xlu0 %2981  ;;  %v2589_v3 = vsel %vm912_vm0, %v2588_v53, %v2551_v2  ;;  %v2590_v63 = vrot.slane %v2551_v2, 4 }
 0x48c   : > { %v2986_v50 = vpop.permute.xlu1 %2985  ;;  %v3340_v28 = vsel %vm3220_vm7, %v3339_v19, %v2982_v7  ;;  %v2677_v19 = vsel %vm912_vm0, %v2676_v62, %v2627_v47  ;;  %vm3328_vm7 = vcmask 998400  }
 0x48d   : > { %v3341_v48 = vsel %vm3222_vm8, %v3340_v28, %v2986_v50  ;;  %v2591_v17 = vsel %vm912_vm0, %v5834_v60, %v2590_v63  ;;  %v2683_v9 = vperm.slane %v2677_v19, %v4551_v39  ;;  %v2651_v60 = vperm.slane %v2643_v34, %v4551_v39 }
 0x48e   : > { %v3342_v21 = vsel %vm3224_vm9, %v3341_v48, %v5747_v54  ;;  %v2671_v54 = vperm.slane %v2665_v12, %v4551_v39  ;;  %v2679_v28 = vsel %vm912_vm0, %v2639_v0, %v2678_v29  ;;  %v2663_v0 = vperm.slane %v2655_v61, %v4551_v39 }
 0x48f   : > { %v2696_v24 = vrot.slane %v2683_v9, 4  ;;  %v2694_v18 = vrot.slane %v2651_v60, 4  ;;  %v2693_v48 = vsel %vm912_vm0, %v2692_v25, %v2651_v60  ;;  %v2687_v2 = vperm.slane %v2679_v28, %v4551_v39 }
 0x490   : > { %v2688_v37 = vrot.slane %v2671_v54, 4  ;;  %v2691_v43 = vsel %vm912_vm0, %v2671_v54, %v2690_v31  ;;  %v2702_v36 = vrot.slane %v2663_v0, 4  ;;  %vm3330_vm8 = vcmask 1014784  }
 0x491   : > { %3161 = vrot.lane.b32.xlu0 %v2585_v23, %s6368_s28  ;;  %3169 = vrot.lane.b32.xlu2 %v2589_v3, %s6369_s29  ;;  %v2697_v26 = vsel %vm912_vm0, %v2696_v24, %v2659_v38  ;;  %v2700_v23 = vrot.slane %v2687_v2, 4  ;;  %v2698_v3 = vrot.slane %v2659_v38, 4  ;;  %v3329_v46 = vsel %vm3328_vm7, %v5728_v11, %v5749_v27 }
 0x492   : > { %3165 = vrot.lane.b32.xlu1 %v2587_v56, %s6370_s30  ;;  %v2689_v45 = vsel %vm912_vm0, %v2688_v37, %v2647_v33  ;;  %v2703_v54 = vsel %vm912_vm0, %v2687_v2, %v2702_v36  ;;  %vm6383_vm9 = vcmask 310272   ;;  %v3331_v16 = vsel %vm3330_vm8, %v3329_v46, %v5751_v1  ;;  %s3814_s30 = scalar_lea.hbm %s6044_s1, 64 }
 0x493   : > { %v5881_v32 = vpop.permute.xlu2 %3037  ;;  %v2994_v13 = vpop.permute.xlu0 %2993  ;;  %v2699_v56 = vsel %vm912_vm0, %v2683_v9, %v2698_v3  ;;  %v2701_v39 = vsel %vm912_vm0, %v2700_v23, %v2663_v0 }
 0x494   : > { %v2998_v55 = vpop.permute.xlu1 %2997  ;;  %v3343_v4 = vsel %vm3226_vm10, %v3342_v21, %v2994_v13  ;;  %v2695_v21 = vsel %vm912_vm0, %v2675_v49, %v2694_v18  ;;  %vm6384_vm0 = vcmask 326656   ;;  %vm3332_vm10 = vcmask 1031168  }
 0x495   : > { %v3344_v41 = vsel %vm3228_vm11, %v3343_v4, %v2998_v55  ;;  %vm6385_vm11 = vcmask 343040   ;;  %v5942_v30 = vsel %vm3332_vm10, %v3331_v16, %v5645_v51 }
 0x496   : > { %v3345_v35 = vsel %vm3230_vm12, %v3344_v41, %v5780_v20  ;;  %vm6386_vm12 = vcmask 359424  }
 0x499   : > { %3173 = vrot.lane.b32.xlu0 %v2591_v17, %s6371_s2  ;;  %3181 = vrot.lane.b32.xlu2 %v2691_v43, %s6372_s3 }
 0x49a   : > { %3177 = vrot.lane.b32.xlu1 %v2689_v45, %s6373_s4 }
 0x49b   : > { %v3050_v20 = vpop.permute.xlu2 %3049  ;;  %v3006_v14 = vpop.permute.xlu0 %3005 }
 0x49c   : > { %v3010_v7 = vpop.permute.xlu1 %3009  ;;  %v3346_v5 = vsel %vm6374_vm1, %v3345_v35, %v3006_v14  ;;  %vm6387_vm1 = vcmask 375808  }
 0x49d   : > { %v3347_v50 = vsel %vm6375_vm2, %v3346_v5, %v3010_v7  ;;  %vm6388_vm2 = vcmask 392192  }
 0x49e   : > { %v3348_v53 = vsel %vm6376_vm3, %v3347_v50, %v5814_v57  ;;  %vm6389_vm3 = vcmask 408576  }
 0x4a1   : > { %3185 = vrot.lane.b32.xlu0 %v2693_v48, %s6377_s5  ;;  %3193 = vrot.lane.b32.xlu2 %v2697_v26, %s6378_s11 }
 0x4a2   : > { %3189 = vrot.lane.b32.xlu1 %v2695_v21, %s6379_s13 }
 0x4a3   : > { %v3062_v57 = vpop.permute.xlu2 %3061  ;;  %v3018_v12 = vpop.permute.xlu0 %3017 }
 0x4a4   : > { %v3022_v40 = vpop.permute.xlu1 %3021  ;;  %v3349_v52 = vsel %vm6380_vm4, %v3348_v53, %v3018_v12  ;;  %vm6390_vm4 = vcmask 424960  }
 0x4a5   : > { %v3350_v58 = vsel %vm6381_vm5, %v3349_v52, %v3022_v40  ;;  %vm6391_vm5 = vcmask 441344  }
 0x4a6   : > { %v3351_v62 = vsel %vm6382_vm6, %v3350_v58, %v5851_v59  ;;  %vm6392_vm6 = vcmask 457728  }
 0x4a9   : > { %3197 = vrot.lane.b32.xlu0 %v2699_v56, %s3924_s22  ;;  %3205 = vrot.lane.b32.xlu2 %v2703_v54, %s3925_s21 }
 0x4aa   : > { %3201 = vrot.lane.b32.xlu1 %v2701_v39, %s3926_s20  ;;  %s3527_s20 = sshll.u32 %s4023_s16, 5 }
 0x4ab   : > { %v3030_v33 = vpop.permute.xlu0 %3029  ;;  %v3074_v15 = vpop.permute.xlu2 %3073  ;;  %s133_s21 = scalar_lea.vmem [#allocation5], %s3527_s20 }
 0x4ac   : > { %v3034_v59 = vpop.permute.xlu1 %3033  ;;  %v3352_v47 = vsel %vm6383_vm9, %v3351_v62, %v3030_v33  ;;  %vm6393_vm9 = vcmask 474112   ;;  %s3447_s24 = sshll.u32 %s133_s21, 4  ;;  %s3448_s24 = int_to_ptr.vmem [resolvable:$true] %s3447_s24 }
 0x4ad   : > { %v3353_v13 = vsel %vm6384_vm0, %v3352_v47, %v3034_v59  ;;  %vm6394_vm0 = vcmask 490496  }
 0x4ae   : > { %v3354_v6 = vsel %vm6385_vm11, %v3353_v13, %v5881_v32  ;;  %vm6395_vm11 = vcmask 506880  }
 0x4b1   : > { %3404 = vrot.lane.b32.xlu2 %v5942_v30, %s6358_s17  ;;  %3398 = vrot.lane.b32.xlu0 %v5942_v30, %s3879_s14 }
 0x4b2   : > { %3401 = vrot.lane.b32.xlu1 %v5942_v30, %s6333_s23 }
 0x4b3   : > { %v3042_v11 = vpop.permute.xlu0 %3041  ;;  %v3086_v32 = vpop.permute.xlu2 %3085 }
 0x4b4   : > { %v3046_v27 = vpop.permute.xlu1 %3045  ;;  %v3355_v1 = vsel %vm6386_vm12, %v3354_v6, %v3042_v11  ;;  %vm6396_vm12 = vcmask 523264  }
 0x4b5   : > { %v3356_v55 = vsel %vm6387_vm1, %v3355_v1, %v3046_v27  ;;  %vm6397_vm1 = vcmask 539648  }
 0x4b6   : > { %v3357_v4 = vsel %vm6388_vm2, %v3356_v55, %v3050_v20  ;;  %vm6398_vm2 = vcmask 556032  }
 0x4bb   : > { %v3054_v51 = vpop.permute.xlu0 %3053  ;;  %v3098_v41 = vpop.permute.xlu2 %3097 }
 0x4bc   : > { %v3058_v19 = vpop.permute.xlu1 %3057  ;;  %v3358_v63 = vsel %vm6389_vm3, %v3357_v4, %v3054_v51  ;;  %vm6399_vm3 = vcmask 572416  }
 0x4bd   : > { %v3359_v35 = vsel %vm6390_vm4, %v3358_v63, %v3058_v19  ;;  %vm6400_vm4 = vcmask 588800  }
 0x4be   : > { %v3360_v17 = vsel %vm6391_vm5, %v3359_v35, %v3062_v57  ;;  %vm6401_vm5 = vcmask 605184  }
 0x4c3   : > { %v3066_v37 = vpop.permute.xlu0 %3065  ;;  %v3110_v31 = vpop.permute.xlu2 %3109 }
 0x4c4   : > { %v3070_v42 = vpop.permute.xlu1 %3069  ;;  %v3361_v43 = vsel %vm6392_vm6, %v3360_v17, %v3066_v37  ;;  %vm6402_vm6 = vcmask 621568  }
 0x4c5   : > { %v3362_v49 = vsel %vm6393_vm9, %v3361_v43, %v3070_v42  ;;  %vm6403_vm9 = vcmask 637952  }
 0x4c6   : > { %v3363_v10 = vsel %vm6394_vm0, %v3362_v49, %v3074_v15  ;;  %vm6404_vm0 = vcmask 654336  }
 0x4cb   : > { %v3078_v44 = vpop.permute.xlu0 %3077  ;;  %v3122_v8 = vpop.permute.xlu2 %3121 }
 0x4cc   : > { %v3082_v34 = vpop.permute.xlu1 %3081  ;;  %v3364_v20 = vsel %vm6395_vm11, %v3363_v10, %v3078_v44  ;;  %vm6405_vm11 = vcmask 670720  }
 0x4cd   : > { %v3365_v14 = vsel %vm6396_vm12, %v3364_v20, %v3082_v34  ;;  %vm6406_vm12 = vcmask 687104  }
 0x4ce   : > { %v3366_v22 = vsel %vm6397_vm1, %v3365_v14, %v3086_v32  ;;  %vm6407_vm1 = vcmask 703488  }
 0x4d3   : > { %v3090_v9 = vpop.permute.xlu0 %3089  ;;  %v3134_v5 = vpop.permute.xlu2 %3133 }
 0x4d4   : > { %v3094_v45 = vpop.permute.xlu1 %3093  ;;  %v3367_v7 = vsel %vm6398_vm2, %v3366_v22, %v3090_v9  ;;  %vm6408_vm2 = vcmask 719872  }
 0x4d5   : > { %v3368_v25 = vsel %vm6399_vm3, %v3367_v7, %v3094_v45  ;;  %vm6409_vm3 = vcmask 736256  }
 0x4d6   : > { %v3369_v24 = vsel %vm6400_vm4, %v3368_v25, %v3098_v41  ;;  %vm6410_vm4 = vcmask 752640  }
 0x4db   : > { %v3102_v60 = vpop.permute.xlu0 %3101  ;;  %v3146_v18 = vpop.permute.xlu2 %3145 }
 0x4dc   : > { %v3106_v29 = vpop.permute.xlu1 %3105  ;;  %v3370_v28 = vsel %vm6401_vm5, %v3369_v24, %v3102_v60  ;;  %vm6411_vm5 = vcmask 769024  }
 0x4dd   : > { %v3371_v53 = vsel %vm6402_vm6, %v3370_v28, %v3106_v29  ;;  %vm6412_vm6 = vcmask 785408  }
 0x4de   : > { %v3372_v61 = vsel %vm6403_vm9, %v3371_v53, %v3110_v31  ;;  %vm6413_vm9 = vcmask 801792  }
 0x4e3   : > { %v3114_v50 = vpop.permute.xlu0 %3113  ;;  %v3158_v57 = vpop.permute.xlu2 %3157 }
 0x4e4   : > { %v3118_v38 = vpop.permute.xlu1 %3117  ;;  %v3373_v48 = vsel %vm6404_vm0, %v3372_v61, %v3114_v50  ;;  %vm6414_vm0 = vcmask 818176  }
 0x4e5   : > { %v3374_v21 = vsel %vm6405_vm11, %v3373_v48, %v3118_v38  ;;  %vm6415_vm11 = vcmask 834560  }
 0x4e6   : > { %v3375_v0 = vsel %vm6406_vm12, %v3374_v21, %v3122_v8  ;;  %vm6416_vm12 = vcmask 850944  }
 0x4eb   : > { %v3126_v26 = vpop.permute.xlu0 %3125  ;;  %v3170_v62 = vpop.permute.xlu2 %3169 }
 0x4ec   : > { %v3130_v2 = vpop.permute.xlu1 %3129  ;;  %v3376_v12 = vsel %vm6407_vm1, %v3375_v0, %v3126_v26  ;;  %vm6417_vm1 = vcmask 867328  }
 0x4ed   : > { %v3377_v58 = vsel %vm6408_vm2, %v3376_v12, %v3130_v2  ;;  %vm6418_vm2 = vcmask 883712  }
 0x4ee   : > { %v3378_v23 = vsel %vm6409_vm3, %v3377_v58, %v3134_v5  ;;  %vm6419_vm3 = vcmask 900096  }
 0x4f3   : > { %v3138_v40 = vpop.permute.xlu0 %3137  ;;  %v3182_v47 = vpop.permute.xlu2 %3181 }
 0x4f4   : > { %v3142_v52 = vpop.permute.xlu1 %3141  ;;  %v3379_v3 = vsel %vm6410_vm4, %v3378_v23, %v3138_v40  ;;  %vm6420_vm4 = vcmask 916480  }
 0x4f5   : > { %v3380_v56 = vsel %vm6411_vm5, %v3379_v3, %v3142_v52  ;;  %vm6421_vm5 = vcmask 932864  }
 0x4f6   : > { %v3381_v39 = vsel %vm6412_vm6, %v3380_v56, %v3146_v18 }
 0x4fb   : > { %v3150_v36 = vpop.permute.xlu0 %3149  ;;  %v3194_v32 = vpop.permute.xlu2 %3193 }
 0x4fc   : > { %v3154_v54 = vpop.permute.xlu1 %3153  ;;  %v3382_v46 = vsel %vm6413_vm9, %v3381_v39, %v3150_v36 }
 0x4fd   : > { %v3383_v33 = vsel %vm6414_vm0, %v3382_v46, %v3154_v54 }
 0x4fe   : > { %v3384_v16 = vsel %vm6415_vm11, %v3383_v33, %v3158_v57 }
 0x503   : > { %v3162_v59 = vpop.permute.xlu0 %3161  ;;  %v3206_v63 = vpop.permute.xlu2 %3205 }
 0x504   : > { %v3166_v15 = vpop.permute.xlu1 %3165  ;;  %v3385_v13 = vsel %vm6416_vm12, %v3384_v16, %v3162_v59 }
 0x505   : > { %v3386_v6 = vsel %vm6417_vm1, %v3385_v13, %v3166_v15 }
 0x506   : > { %v3387_v1 = vsel %vm6418_vm2, %v3386_v6, %v3170_v62 }
 0x50b   : > { %v3174_v11 = vpop.permute.xlu0 %3173  ;;  %v3405_v9 = vpop.permute.xlu2 %3404 }
 0x50c   : > { %v3178_v27 = vpop.permute.xlu1 %3177  ;;  %v3388_v55 = vsel %vm6419_vm3, %v3387_v1, %v3174_v11 }
 0x50d   : > { %v3389_v4 = vsel %vm6420_vm4, %v3388_v55, %v3178_v27 }
 0x50e   : > { %v3390_v41 = vsel %vm6421_vm5, %v3389_v4, %v3182_v47 }
 0x513   : > { %v3186_v51 = vpop.permute.xlu0 %3185 }
 0x514   : > { %v3190_v19 = vpop.permute.xlu1 %3189  ;;  %v3391_v37 = vsel %vm3322_vm15, %v3390_v41, %v3186_v51  ;;  %vm6424_vm15 = vcmask 523264  }
 0x515   : > { %v3392_v42 = vsel %vm3324_vm14, %v3391_v37, %v3190_v19 }
 0x516   : > { %v3393_v31 = vsel %vm3326_vm13, %v3392_v42, %v3194_v32  ;;  %vm6422_vm13 = vcmask 261120  }
 0x517   : > { %vm6423_vm14 = vmmov %vm6422_vm13 }
 0x51b   : > { %v3198_v35 = vpop.permute.xlu0 %3197 }
 0x51c   : > { %v3202_v44 = vpop.permute.xlu1 %3201  ;;  %v3394_v34 = vsel %vm3328_vm7, %v3393_v31, %v3198_v35  ;;  %vm6425_vm7 = vmmov %vm6424_vm15 }
 0x51d   : > { %v3395_v17 = vsel %vm3330_vm8, %v3394_v34, %v3202_v44  ;;  %vm6426_vm8 = vmmov %vm6412_vm6 }
 0x51e   : > { %v3396_v43 = vsel %vm3332_vm10, %v3395_v17, %v3206_v63  ;;  %vm6427_vm10 = vmmov %vm6412_vm6 }
 0x51f   : > { %3414 = vrot.lane.b32.xlu2 %v3396_v43, %s6358_s17  ;;  %3411 = vrot.lane.b32.xlu1 %v3396_v43, %s6333_s23  ;;  %vm6428_vm6 = vmmov %vm6422_vm13 }
 0x520   : > { %3408 = vrot.lane.b32.xlu0 %v3396_v43, %s3879_s14  ;;  %s3533_s14 = sshll.u32 %s3958_s10, 5  ;;  %vm6429_vm9 = vmmov %vm6425_vm7  ;;  %s3434_s10 = scalar_lea.sflag [#allocation4], %s4023_s16 }
 0x521   : > { %s3445_s17 = scalar_lea.hbm %s6044_s1, %s3533_s14  ;;  %vm6430_vm0 = vmmov %vm6428_vm6 }
 0x522   : > { %s3449_s25 = sshll.u32 %s3445_s17, 4  ;;  %vm6431_vm11 = vmmov %vm6426_vm8  ;;  %s3450_s25 = int_to_ptr.hbm [resolvable:$true] %s3449_s25 }
 0x523   : > { %v3399_v49 = vpop.permute.xlu0 %3398  ;;  %vm6432_vm12 = vmmov %vm6425_vm7  ;;  %s3808_s26 = sshra.s32 %s3450_s25, 4  ;;  %s3809_s26 = int_to_ptr.hbm [resolvable:$true] %s3808_s26 }
 0x524   : > { %v3402_v8 = vpop.permute.xlu1 %3401  ;;  %v3417_v45 = vsel %vm6422_vm13, %v5942_v30, %v3399_v49  ;;  %vm6433_vm1 = vmmov %vm6426_vm8  ;;  %s3810_s27 = scalar_lea.hbm %s3809_s26, 32  ;;  %p3815_p0 = scmp.lt.s32.totalorder %s3809_s26, %s6044_s1 }
 0x525   : > { %v3420_v10 = vsel %vm6423_vm14, %v3402_v8, %v3405_v9  ;;  %v3418_v20 = vsel %vm6424_vm15, %v3417_v45, %v3399_v49  ;;  %p3811_p6 = scmp.ne.s32.totalorder %s3809_s26, %s3810_s27  ;;  %p3816_p1 = scmp.lt.s32.totalorder %s3814_s30, %s3810_s27 }
 0x526   : > { %v3421_v14 = vsel %vm6425_vm7, %v3420_v10, %v3405_v9  ;;  %v3419_v60 = vsel %vm6426_vm8, %v3418_v20, %v3402_v8 }
 0x527   : > { %v3422_v22 = vsel %vm6427_vm10, %v3421_v14, %v5942_v30  ;;  %3429 = vst [vmem:[%s133_s21] sm:$0xff] %v3419_v60  ;;  %p3812_p9 = pnand %p3811_p6, %p3987_p11  ;;  %p3817_p3 = por %p3816_p1, %p3815_p0 }
 0x528   : > { %3430 = vst [vmem:[%s133_s21 + $0x8] sm:$0xff] %v3422_v22 }
 0x529   : > { %p3813_p13 = pneg %p3812_p9 }
 0x52b   : > { %p3818_p4 = pnand %p3817_p3, %p3813_p13 }
 0x579   : > { %v3415_v29 = vpop.permute.xlu2 %3414 }
 0x591   : > { %v3412_v7 = vpop.permute.xlu1 %3411 }
 0x592   : > { %v3426_v5 = vsel %vm6428_vm6, %v3412_v7, %v3415_v29  ;;  %v3409_v25 = vpop.permute.xlu0 %3408 }
 0x593   : > { %v3427_v24 = vsel %vm6429_vm9, %v3426_v5, %v3415_v29  ;;  %v3423_v30 = vsel %vm6430_vm0, %v3396_v43, %v3409_v25 }
 0x594   : > { %v3428_v50 = vsel %vm6431_vm11, %v3427_v24, %v3396_v43  ;;  %v3424_v28 = vsel %vm6432_vm12, %v3423_v30, %v3409_v25 }
 0x595   : > { %3432 = vst [vmem:[%s133_s21 + $0x18] sm:$0xff] %v3428_v50  ;;  %v3425_v38 = vsel %vm6433_vm1, %v3424_v28, %v3412_v7 }
 0x596   : > { %3431 = vst [vmem:[%s133_s21 + $0x10] sm:$0xff] %v3425_v38 }
 0x597   : > { %3821 = shalt.err (!%p3818_p4)
}
 0x598   : > { %3536 = dma.vmem_to_hbm [thread:$0]  (%p3987_p11), %s3448_s24, 512, %s3450_s25, %s3434_s10  }
 0x599 PF: > { %s3461_s16 = sand.u32 1, %s3848_s6   ;;  %p6434_p7 = scmp.ge.s32.totalorder %s3860_s9, 2 }
 0x59a   : > { %s3462_s4 = scalar_lea.sflag [#allocation4], %s3461_s16 }
 0x59b   : > { %p3543_p5 = pnand %p6434_p7, %p3991_p12 }
 0x59d   : > { %p3544_p8 = pneg %p3543_p5 }
 0x59f   : > { %3843 = dma.done.wait (%p3544_p8), %s3462_s4, 512  }
 0x5a0   : > { %3845 = vsyncadd (%p3544_p8), %s3462_s4, 4294966784  ;;  %p14_p10 = scmp.ge.s32.totalorder %s3962_s12, 4   ;;  %s6435_s6 = smov %s3852_s7 }
 0x5a1   : > { %s6436_s7 = smov %s3856_s8  ;;  %s6437_s8 = smov %s3974_s15 }
 0x5a2   : > { %s6438_s9 = smov %s3962_s12  ;;  %16 = sbr.rel (!%p14_p10) target bundleno = 5 (0x5), region = 69 }
 0x5a7   :  { %3468 = vsyncpa [#allocation3], 1 }
 0x5a8   :  { %3470 = vsyncpa [#allocation3 + $0x1], 1 }
 0x5a9   :  { %3471 = vsyncpa [#allocation4], 1 }
 0x5aa   :  { %3473 = vsyncpa [#allocation4 + $0x1], 1 }

</bundles_post_ra>
